<compile_context>
chip_gen: v5e
topology: v5e:2x2
jax: 0.10.0
libtpu: 0.0.40
codegen_flags: <defaults>
</compile_context>

<pallas_src>
import functools

import jax
import jax.numpy as jnp
from jax import lax
from jax.experimental import pallas as pl
from jax.experimental.pallas import tpu as pltpu


# ----------------------------- VMEM sizing ----------------------------------

def _derive_vmem():
    """Chip-aware per-step VMEM budget + scoped limit (v5e/v6e 128 MiB, v7x 64 MiB)."""
    cap = None
    try:
        info = pltpu.get_tpu_info()
        cap = int(getattr(info, "vmem_capacity_bytes", 0)) or None
    except Exception:
        cap = None
    if cap is None:
        cap = 64 * 1024 * 1024            # conservative default (v7x size); safe everywhere
    limit = min(cap * 3 // 4, 96 * 1024 * 1024)
    return limit // 3, limit


_VMEM_BUDGET, _VMEM_LIMIT = _derive_vmem()


# ----------------------------- tiling helpers --------------------------------

def _pick_n_tile(k, n):
    """Output-column tile: keep the double-buffered bf16 weight block within budget,
    lane-dense (multiple of 128) when we must split."""
    if 2 * (k * n * 2) <= _VMEM_BUDGET // 2:
        return n
    for tn in (2048, 1024, 512, 256, 128):
        if n % tn == 0 and 2 * (k * tn * 2) <= _VMEM_BUDGET // 2:
            return tn
    for tn in (2048, 1024, 512, 256, 128):
        if n % tn == 0:
            return tn
    return n


def _pick_row_tile(m, k, tn, has_residual):
    """Largest row tile that divides m and fits the double-buffered working set."""
    fixed = 2 * (k * tn * 2 + tn * 4 + 2 * k * 4)            # weight(bf16) + bias + ln params
    row = k * 4 + tn * 4 + (tn * 4 if has_residual else 0)   # x + out (+ residual), f32
    cands = [t for t in (2048, 1024, 512, 256, 128, 64, 32, 16, 8) if m % t == 0]
    for tm in cands:
        if fixed + 2 * tm * row <= _VMEM_BUDGET:
            return tm
    return cands[-1] if cands else m


def _pick_attn_problems(bb, s, dh):
    """Largest divisor of the problem count whose working set fits the VMEM budget."""
    per = 2 * 4 * s * dh * 4 + 2 * s * s * 4    # q/kt/v/o double-buffered + scores
    for cand in range(bb, 0, -1):
        if bb % cand == 0 and cand * per <= _VMEM_BUDGET:
            return cand
    return 1


# ----------------------------- Pallas kernels --------------------------------

def _fused_linear_kernel(*refs, eps, apply_ln, apply_relu, has_residual):
    """o = [LayerNorm(x)] @ W + b  [ReLU]  [+ residual], f32 accumulation."""
    it = iter(refs)
    x_ref = next(it)
    if apply_ln:
        g_ref = next(it)
        be_ref = next(it)
    w_ref = next(it)
    b_ref = next(it)
    res_ref = next(it) if has_residual else None
    o_ref = next(it)

    x = x_ref[...].astype(jnp.float32)
    if apply_ln:
        mean = jnp.mean(x, axis=-1, keepdims=True)
        xc = x - mean
        var = jnp.mean(xc * xc, axis=-1, keepdims=True)   # biased variance (PyTorch LN)
        x = xc * lax.rsqrt(var + eps) * g_ref[...] + be_ref[...]
    y = jnp.dot(x.astype(w_ref.dtype), w_ref[...], preferred_element_type=jnp.float32)
    y = y + b_ref[...]
    if apply_relu:
        y = jnp.maximum(y, 0.0)
    if has_residual:
        y = y + res_ref[...].astype(jnp.float32)
    o_ref[...] = y.astype(o_ref.dtype)


def fused_linear(x, w, b, *, ln=None, residual=None, relu=False):
    """x: (m, k) f32, w: (k, n) bf16, b: (n,) f32, ln: (gamma, beta, eps) or None.

    Grid is (n_tiles, m_tiles): the weight block index depends only on the OUTER axis,
    so it stays resident across the inner row sweep (no per-row-tile weight re-DMA)."""
    m, k = x.shape
    k2, n = w.shape
    assert k == k2
    tn = _pick_n_tile(k, n)
    tm = _pick_row_tile(m, k, tn, residual is not None)
    apply_ln = ln is not None

    inputs = [x]
    in_specs = [pl.BlockSpec((tm, k), lambda j, i: (i, 0))]
    eps = 0.0
    if apply_ln:
        gamma, beta, eps = ln
        inputs += [gamma.reshape(1, k), beta.reshape(1, k)]
        in_specs += [pl.BlockSpec((1, k), lambda j, i: (0, 0)),
                     pl.BlockSpec((1, k), lambda j, i: (0, 0))]
    inputs += [w, b.reshape(1, n)]
    in_specs += [pl.BlockSpec((k, tn), lambda j, i: (0, j)),   # constant across inner i loop
                 pl.BlockSpec((1, tn), lambda j, i: (0, j))]
    if residual is not None:
        inputs.append(residual)
        in_specs.append(pl.BlockSpec((tm, tn), lambda j, i: (i, j)))

    return pl.pallas_call(
        functools.partial(_fused_linear_kernel, eps=float(eps), apply_ln=apply_ln,
                          apply_relu=relu, has_residual=residual is not None),
        out_shape=jax.ShapeDtypeStruct((m, n), jnp.float32),
        grid=(n // tn, m // tm),
        in_specs=in_specs,
        out_specs=pl.BlockSpec((tm, tn), lambda j, i: (i, j)),
        compiler_params=pltpu.CompilerParams(
            dimension_semantics=("parallel", "parallel"),
            vmem_limit_bytes=_VMEM_LIMIT),
    )(*inputs)


def fused_linear3d(x, w, b, *, ln=None, residual=None, relu=False):
    bsz, seq, d = x.shape
    res2 = None if residual is None else residual.reshape(bsz * seq, -1)
    y = fused_linear(x.reshape(bsz * seq, d), w, b, ln=ln, residual=res2, relu=relu)
    return y.reshape(bsz, seq, -1)


def _attention_kernel(q_ref, kt_ref, v_ref, o_ref, *, causal, scale, out_scale):
    # Block = P independent attention problems: q/v (P, S, Dh), kt pre-transposed (P, Dh, S)
    # so the score computation is a plain batched MXU matmul (no in-kernel XLU transpose).
    q = q_ref[...].astype(jnp.bfloat16)
    kt = kt_ref[...].astype(jnp.bfloat16)
    s = jnp.einsum('pqd,pdk->pqk', q, kt, preferred_element_type=jnp.float32) * scale
    if causal:
        nq, nk = s.shape[-2], s.shape[-1]
        row = lax.broadcasted_iota(jnp.int32, (nq, nk), 0)
        col = lax.broadcasted_iota(jnp.int32, (nq, nk), 1)
        s = jnp.where((col <= row)[None, :, :], s, -1e30)   # f32 mask fill; softmax stays f32
    m = jnp.max(s, axis=-1, keepdims=True)
    p = jnp.exp(s - m)
    denom = jnp.sum(p, axis=-1, keepdims=True)
    o = jnp.einsum('pqk,pkd->pqd', p.astype(jnp.bfloat16), v_ref[...].astype(jnp.bfloat16),
                   preferred_element_type=jnp.float32)
    # EUP reciprocal on the small output; out_scale folds the /num_groups combine in for free.
    o = o * (pl.reciprocal(denom, approx=True) * out_scale)
    o_ref[...] = o.astype(o_ref.dtype)
    # TODO(synk): lane-dense (head-group packed) writeback when Dh < 128.


def sdpa(q, kt, v, *, causal, out_scale=1.0):
    """q, v: (BB, S, Dh); kt: (BB, Dh, S); one independent attention problem per index."""
    bb, s, dh = q.shape
    scale = 1.0 / float(dh) ** 0.5
    pb = _pick_attn_problems(bb, s, dh)
    return pl.pallas_call(
        functools.partial(_attention_kernel, causal=causal, scale=scale,
                          out_scale=float(out_scale)),
        out_shape=jax.ShapeDtypeStruct((bb, s, dh), q.dtype),
        grid=(bb // pb,),
        in_specs=[pl.BlockSpec((pb, s, dh), lambda i: (i, 0, 0)),
                  pl.BlockSpec((pb, dh, s), lambda i: (i, 0, 0)),
                  pl.BlockSpec((pb, s, dh), lambda i: (i, 0, 0))],
        out_specs=pl.BlockSpec((pb, s, dh), lambda i: (i, 0, 0)),
        compiler_params=pltpu.CompilerParams(
            dimension_semantics=("parallel",),
            vmem_limit_bytes=_VMEM_LIMIT),
    )(q, kt, v)


# ----------------------------- model glue (JAX) ------------------------------

def xpos_embedding(x, scale_base=512.0):
    """XPOS rotary positional embedding applied to (B, N, D), as in torchscale XPOS."""
    _, n, d = x.shape
    half = d // 2
    scale_vec = (jnp.arange(0, d, 2, dtype=jnp.float32) + 0.4 * d) / (1.4 * d)
    min_pos = -((n + 1) // 2)
    power = jnp.arange(min_pos, min_pos + n, dtype=jnp.float32) / scale_base
    scale = scale_vec[None, :] ** power[:, None]                                 # (n, half)
    inv_freq = 1.0 / (10000.0 ** (jnp.arange(half, dtype=jnp.float32) / half))
    sinusoid = jnp.arange(n, dtype=jnp.float32)[:, None] * inv_freq[None, :]     # (n, half)
    sin = jnp.repeat(jnp.sin(sinusoid) * scale, 2, axis=-1)                      # (n, d)
    cos = jnp.repeat(jnp.cos(sinusoid) * scale, 2, axis=-1)
    x_even = x[..., 0::2]
    x_odd = x[..., 1::2]
    rot = jnp.stack([-x_odd, x_even], axis=-1).reshape(x.shape)
    return x * cos + rot * sin


def _gather_group(t, i, r, s, g, *, transpose_last=False):
    """Segment + dilate + select head group.  Returns (b*nseg*g, sp, d) for Q/V and
    (b*nseg*g, d, sp) for K (pre-transposed so the score matmul needs no XLU transpose)."""
    b, n, h, d = t.shape
    nseg = n // s
    offset = i % r
    hmin = i * g
    t = t.reshape(b, nseg, s, h, d)[:, :, :, hmin:hmin + g, :]       # (b, nseg, s, g, d)
    if r > 1:
        if s % r == 0:
            # dilation as reshape + static index (slice), no strided gather
            t = t.reshape(b, nseg, s // r, r, g, d)[:, :, :, offset]
        else:
            t = t[:, :, offset::r]
    if transpose_last:
        t = jnp.transpose(t, (0, 1, 3, 4, 2))                        # (b, nseg, g, d, sp)
        return t.reshape(b * nseg * g, d, t.shape[4])
    t = jnp.transpose(t, (0, 1, 3, 2, 4))                            # (b, nseg, g, sp, d)
    return t.reshape(b * nseg * g, t.shape[3], d)


def dilated_attention(q, k, v, segment_lengths, dilation_rates, is_causal):
    """q, k, v: (B, N, H, Dh). Segment / dilate / per-head attention / re-assemble.
    All dilation groups sharing a dilated sub-sequence length run in one sdpa call."""
    b, n, h, d = q.shape
    num_groups = len(dilation_rates)
    assert h % num_groups == 0
    g = h // num_groups

    gathered = []
    for i, (r, s) in enumerate(zip(dilation_rates, segment_lengths)):
        assert n % s == 0
        qi = _gather_group(q, i, r, s, g)
        ki = _gather_group(k, i, r, s, g, transpose_last=True)
        vi = _gather_group(v, i, r, s, g)
        gathered.append((qi, ki, vi))

    # Bucket groups by sub-sequence length -> one pallas_call per unique length.
    buckets = {}
    for idx, (qi, _, _) in enumerate(gathered):
        buckets.setdefault(qi.shape[1], []).append(idx)

    # The reference divides the combined output by num_groups; that scalar is folded
    # into the attention kernel's output scaling (free), so no extra HBM pass here.
    inv_g = 1.0 / num_groups
    attn_out = [None] * num_groups
    for sp, idxs in buckets.items():
        if len(idxs) == 1:
            qi, ki, vi = gathered[idxs[0]]
            attn_out[idxs[0]] = sdpa(qi, ki, vi, causal=is_causal, out_scale=inv_g)
        else:
            qs = jnp.concatenate([gathered[idx][0] for idx in idxs], axis=0)
            ks = jnp.concatenate([gathered[idx][1] for idx in idxs], axis=0)
            vs = jnp.concatenate([gathered[idx][2] for idx in idxs], axis=0)
            xo = sdpa(qs, ks, vs, causal=is_causal, out_scale=inv_g)
            off = 0
            for idx in idxs:
                cnt = gathered[idx][0].shape[0]
                attn_out[idx] = xo[off:off + cnt]
                off += cnt

    group_outs = []
    for i, (r, s) in enumerate(zip(dilation_rates, segment_lengths)):
        xi = attn_out[i]                                               # (b*nseg*g, sp, d)
        nseg = n // s
        sp = xi.shape[1]
        offset = i % r
        xi = xi.reshape(b, nseg, g, sp, d).transpose(0, 1, 3, 2, 4)    # (b, nseg, sp, g, d)
        if r > 1:
            if s % r == 0:
                parts = [xi if m_ == offset else jnp.zeros_like(xi) for m_ in range(r)]
                xi = jnp.stack(parts, axis=3).reshape(b, nseg, s, g, d)
            else:
                xi = jnp.zeros((b, nseg, s, g, d), xi.dtype).at[:, :, offset::r].set(xi)
        group_outs.append(xi.reshape(b, n, g, d))
    # TODO(synk): direct strided writeback from sdpa into a (B, N, H, Dh) slab via
    #             output index_maps would avoid the zero-stack / concat HBM passes.
    return jnp.concatenate(group_outs, axis=2)                         # head groups disjoint


def mhda_self(p, x, pre_ln, *, cfg, is_causal):
    """Self-attention block. Pre-LN fused into the QKV matmul; MAGNETO sub-LN and the
    residual add fused into the out-projection matmul. Returns x + attn(LN(x))."""
    bsz, n, d = x.shape
    nhead = cfg["nhead"]
    dh = d // nhead
    eps = cfg["eps"]
    qkv = fused_linear3d(x, p["qkv_w"], p["qkv_b"], ln=(pre_ln[0], pre_ln[1], eps))
    qkv = qkv.reshape(bsz, n, 3, nhead, dh)
    q, k, v = qkv[:, :, 0], qkv[:, :, 1], qkv[:, :, 2]
    a = dilated_attention(q, k, v, cfg["segment_lengths"], cfg["dilation_rates"], is_causal)
    a = a.reshape(bsz, n, d)
    return fused_linear3d(a, p["out_w"], p["out_b"],
                          ln=(p["norm_g"], p["norm_b"], eps), residual=x)


def mhda_cross(p, x, mem, pre_ln, *, cfg, is_causal):
    """Cross-attention block: Q from LN(x) (fused), K/V from memory via one fused KV
    matmul (no LN on memory, matching the reference)."""
    bsz, n, d = x.shape
    nhead = cfg["nhead"]
    dh = d // nhead
    eps = cfg["eps"]
    q = fused_linear3d(x, p["q_w"], p["q_b"], ln=(pre_ln[0], pre_ln[1], eps))
    q = q.reshape(bsz, n, nhead, dh)
    kv = fused_linear3d(mem, p["kv_w"], p["kv_b"]).reshape(bsz, n, 2, nhead, dh)
    k, v = kv[:, :, 0], kv[:, :, 1]
    a = dilated_attention(q, k, v, cfg["segment_lengths"], cfg["dilation_rates"], is_causal)
    a = a.reshape(bsz, n, d)
    return fused_linear3d(a, p["out_w"], p["out_b"],
                          ln=(p["norm_g"], p["norm_b"], eps), residual=x)


def encoder_layer_fwd(p, x, *, cfg, is_causal):
    eps = cfg["eps"]
    x = mhda_self(p["self_attn"], x, (p["norm1_g"], p["norm1_b"]), cfg=cfg, is_causal=is_causal)
    h = fused_linear3d(x, p["lin1_w"], p["lin1_b"],
                       ln=(p["norm2_g"], p["norm2_b"], eps), relu=True)
    x = fused_linear3d(h, p["lin2_w"], p["lin2_b"],
                       ln=(p["norm3_g"], p["norm3_b"], eps), residual=x)
    return x


def decoder_layer_fwd(p, x, mem, *, cfg, is_causal):
    eps = cfg["eps"]
    x = mhda_self(p["self_attn"], x, (p["norm1_g"], p["norm1_b"]), cfg=cfg, is_causal=is_causal)
    x = mhda_cross(p["cross_attn"], x, mem, (p["norm2_g"], p["norm2_b"]),
                   cfg=cfg, is_causal=is_causal)
    h = fused_linear3d(x, p["lin1_w"], p["lin1_b"],
                       ln=(p["norm3_g"], p["norm3_b"], eps), relu=True)
    x = fused_linear3d(h, p["lin2_w"], p["lin2_b"],
                       ln=(p["norm4_g"], p["norm4_b"], eps), residual=x)
    return x


def longnet_lm_forward(params, tokens, *, cfg, is_causal=True):
    x = jnp.take(params["embedding"], tokens, axis=0)   # (B, N, D) embedding gather
    x = x + xpos_embedding(x)
    tgt = x
    for lp in params["enc_layers"]:
        x = encoder_layer_fwd(lp, x, cfg=cfg, is_causal=is_causal)
    # encoder.norm is None in the reference module -> skip
    mem = x
    for lp in params["dec_layers"]:
        tgt = decoder_layer_fwd(lp, tgt, mem, cfg=cfg, is_causal=is_causal)
    # decoder.norm is None in the reference module -> skip
    # Final LayerNorm fused into the (weight-resident, N-tiled) vocab projection.
    return fused_linear3d(tgt, params["out_w"], params["out_b"],
                          ln=(params["norm_g"], params["norm_b"], cfg["eps"]))


# ----------------------------- parameter init --------------------------------

def _normal(key, shape, scale=0.02):
    return scale * jax.random.normal(key, shape, jnp.float32)


def init_self_attn(key, d):
    ks = jax.random.split(key, 4)
    qkv_w = jnp.concatenate(
        [_normal(ks[0], (d, d)), _normal(ks[1], (d, d)), _normal(ks[2], (d, d))], axis=1)
    return {
        "qkv_w": qkv_w.astype(jnp.bfloat16),
        "qkv_b": jnp.zeros((3 * d,), jnp.float32),
        "norm_g": jnp.ones((d,), jnp.float32), "norm_b": jnp.zeros((d,), jnp.float32),
        "out_w": _normal(ks[3], (d, d)).astype(jnp.bfloat16),
        "out_b": jnp.zeros((d,), jnp.float32),
    }


def init_cross_attn(key, d):
    ks = jax.random.split(key, 4)
    kv_w = jnp.concatenate([_normal(ks[1], (d, d)), _normal(ks[2], (d, d))], axis=1)
    return {
        "q_w": _normal(ks[0], (d, d)).astype(jnp.bfloat16),
        "q_b": jnp.zeros((d,), jnp.float32),
        "kv_w": kv_w.astype(jnp.bfloat16),
        "kv_b": jnp.zeros((2 * d,), jnp.float32),
        "norm_g": jnp.ones((d,), jnp.float32), "norm_b": jnp.zeros((d,), jnp.float32),
        "out_w": _normal(ks[3], (d, d)).astype(jnp.bfloat16),
        "out_b": jnp.zeros((d,), jnp.float32),
    }


def init_encoder_layer(key, d_model, dff):
    k1, k2, k3 = jax.random.split(key, 3)
    return {
        "norm1_g": jnp.ones((d_model,), jnp.float32), "norm1_b": jnp.zeros((d_model,), jnp.float32),
        "self_attn": init_self_attn(k1, d_model),
        "norm2_g": jnp.ones((d_model,), jnp.float32), "norm2_b": jnp.zeros((d_model,), jnp.float32),
        "lin1_w": _normal(k2, (d_model, dff)).astype(jnp.bfloat16),
        "lin1_b": jnp.zeros((dff,), jnp.float32),
        "norm3_g": jnp.ones((dff,), jnp.float32), "norm3_b": jnp.zeros((dff,), jnp.float32),
        "lin2_w": _normal(k3, (dff, d_model)).astype(jnp.bfloat16),
        "lin2_b": jnp.zeros((d_model,), jnp.float32),
    }


def init_decoder_layer(key, d_model, dff):
    k1, k2, k3, k4 = jax.random.split(key, 4)
    return {
        "norm1_g": jnp.ones((d_model,), jnp.float32), "norm1_b": jnp.zeros((d_model,), jnp.float32),
        "self_attn": init_self_attn(k1, d_model),
        "norm2_g": jnp.ones((d_model,), jnp.float32), "norm2_b": jnp.zeros((d_model,), jnp.float32),
        "cross_attn": init_cross_attn(k2, d_model),
        "norm3_g": jnp.ones((d_model,), jnp.float32), "norm3_b": jnp.zeros((d_model,), jnp.float32),
        "lin1_w": _normal(k3, (d_model, dff)).astype(jnp.bfloat16),
        "lin1_b": jnp.zeros((dff,), jnp.float32),
        "norm4_g": jnp.ones((dff,), jnp.float32), "norm4_b": jnp.zeros((dff,), jnp.float32),
        "lin2_w": _normal(k4, (dff, d_model)).astype(jnp.bfloat16),
        "lin2_b": jnp.zeros((d_model,), jnp.float32),
    }


def init_longnet_lm(key, *, num_tokens, d_model, dff, n_enc, n_dec):
    keys = jax.random.split(key, 2 + n_enc + n_dec)
    return {
        "embedding": _normal(keys[0], (num_tokens, d_model)),
        "enc_layers": [init_encoder_layer(keys[2 + i], d_model, dff) for i in range(n_enc)],
        "dec_layers": [init_decoder_layer(keys[2 + n_enc + i], d_model, dff) for i in range(n_dec)],
        "norm_g": jnp.ones((d_model,), jnp.float32), "norm_b": jnp.zeros((d_model,), jnp.float32),
        "out_w": _normal(keys[1], (d_model, num_tokens)).astype(jnp.bfloat16),
        "out_b": jnp.zeros((num_tokens,), jnp.float32),
    }


# --------------------------------- main ---------------------------------------

if __name__ == "__main__":
    # Small, consistent shapes: seq must be divisible by every segment length,
    # nhead must be divisible by the number of dilation groups.
    cfg = {
        "num_tokens": 512,
        "d_model": 64,
        "nhead": 4,
        "num_encoder_layers": 2,
        "num_decoder_layers": 2,
        "dim_feedforward": 128,
        "segment_lengths": (16, 32),
        "dilation_rates": (1, 2),
        "eps": 1e-5,
    }
    batch, seq = 2, 32

    key = jax.random.PRNGKey(0)
    k_params, k_tok = jax.random.split(key)
    params = init_longnet_lm(
        k_params,
        num_tokens=cfg["num_tokens"],
        d_model=cfg["d_model"],
        dff=cfg["dim_feedforward"],
        n_enc=cfg["num_encoder_layers"],
        n_dec=cfg["num_decoder_layers"],
    )
    tokens = jax.random.randint(k_tok, (batch, seq), 0, cfg["num_tokens"], dtype=jnp.int32)

    fwd = jax.jit(lambda p, t: longnet_lm_forward(p, t, cfg=cfg, is_causal=True))
    logits = fwd(params, tokens)
    jax.block_until_ready(logits)

    assert logits.shape == (batch, seq, cfg["num_tokens"])
    assert bool(jnp.all(jnp.isfinite(logits)))
    print("KERNEL_OK")
</pallas_src>

<mosaic_0001>
module attributes {stable_mosaic.version = 11 : i64} {
  func.func @_fused_linear_kernel(%arg0: i32, %arg1: i32, %arg2: memref<64x64xf32, #tpu.memory_space<vmem>>, %arg3: memref<1x64xf32, #tpu.memory_space<vmem>>, %arg4: memref<1x64xf32, #tpu.memory_space<vmem>>, %arg5: memref<64x192xbf16, #tpu.memory_space<vmem>>, %arg6: memref<1x192xf32, #tpu.memory_space<vmem>>, %arg7: memref<64x192xf32, #tpu.memory_space<vmem>>) attributes {dimension_semantics = [#tpu.dimension_semantics<parallel>, #tpu.dimension_semantics<parallel>], iteration_bounds = array<i64: 1, 1>, scalar_prefetch = 0 : i64, scratch_operands = 0 : i64, tpu.core_type = #tpu.core_type<tc>, window_params = [{transform_indices = @transform_0, window_bounds = array<i64: 64, 64>}, {pipeline_mode = #tpu.pipeline_mode<synchronous>, transform_indices = @transform_1, window_bounds = array<i64: 1, 64>}, {pipeline_mode = #tpu.pipeline_mode<synchronous>, transform_indices = @transform_2, window_bounds = array<i64: 1, 64>}, {transform_indices = @transform_3, window_bounds = array<i64: 64, 192>}, {transform_indices = @transform_4, window_bounds = array<i64: 1, 192>}, {transform_indices = @transform_5, window_bounds = array<i64: 64, 192>}]} {
    %c0 = arith.constant 0 : index
    %c0_0 = arith.constant 0 : index
    %0 = vector.load %arg2[%c0, %c0_0] : memref<64x64xf32, #tpu.memory_space<vmem>>, vector<64x64xf32>
    %cst = arith.constant dense<0.000000e+00> : vector<64xf32>
    %1 = vector.multi_reduction <add>, %0, %cst [1] : vector<64x64xf32> to vector<64xf32>
    %2 = vector.shape_cast %1 : vector<64xf32> to vector<64x1xf32>
    %cst_1 = arith.constant 6.400000e+01 : f32
    %3 = vector.broadcast %cst_1 : f32 to vector<64x1xf32>
    %4 = arith.divf %2, %3 : vector<64x1xf32>
    %5 = vector.broadcast %4 : vector<64x1xf32> to vector<64x64xf32>
    %6 = arith.subf %0, %5 : vector<64x64xf32>
    %7 = arith.mulf %6, %6 : vector<64x64xf32>
    %cst_2 = arith.constant dense<0.000000e+00> : vector<64xf32>
    %8 = vector.multi_reduction <add>, %7, %cst_2 [1] : vector<64x64xf32> to vector<64xf32>
    %9 = vector.shape_cast %8 : vector<64xf32> to vector<64x1xf32>
    %cst_3 = arith.constant 6.400000e+01 : f32
    %10 = vector.broadcast %cst_3 : f32 to vector<64x1xf32>
    %11 = arith.divf %9, %10 : vector<64x1xf32>
    %cst_4 = arith.constant 9.99999974E-6 : f32
    %12 = vector.broadcast %cst_4 : f32 to vector<64x1xf32>
    %13 = arith.addf %11, %12 : vector<64x1xf32>
    %14 = math.rsqrt %13 : vector<64x1xf32>
    %15 = vector.broadcast %14 : vector<64x1xf32> to vector<64x64xf32>
    %16 = arith.mulf %6, %15 : vector<64x64xf32>
    %c0_5 = arith.constant 0 : index
    %c0_6 = arith.constant 0 : index
    %17 = vector.load %arg3[%c0_5, %c0_6] : memref<1x64xf32, #tpu.memory_space<vmem>>, vector<1x64xf32>
    %18 = vector.broadcast %17 : vector<1x64xf32> to vector<64x64xf32>
    %19 = arith.mulf %16, %18 : vector<64x64xf32>
    %c0_7 = arith.constant 0 : index
    %c0_8 = arith.constant 0 : index
    %20 = vector.load %arg4[%c0_7, %c0_8] : memref<1x64xf32, #tpu.memory_space<vmem>>, vector<1x64xf32>
    %21 = vector.broadcast %20 : vector<1x64xf32> to vector<64x64xf32>
    %22 = arith.addf %19, %21 : vector<64x64xf32>
    %23 = arith.truncf %22 : vector<64x64xf32> to vector<64x64xbf16>
    %c0_9 = arith.constant 0 : index
    %c0_10 = arith.constant 0 : index
    %24 = vector.load %arg5[%c0_9, %c0_10] : memref<64x192xbf16, #tpu.memory_space<vmem>>, vector<64x192xbf16>
    %cst_11 = arith.constant dense<0.000000e+00> : vector<64x192xf32>
    %25 = tpu.matmul %23, %24, %cst_11 {dimension_numbers = #tpu.dot_dimension_numbers<[1], [0], [0], [1], [0, 0, 1, 1], [], []>} : vector<64x64xbf16>, vector<64x192xbf16>, vector<64x192xf32> -> vector<64x192xf32>
    %c0_12 = arith.constant 0 : index
    %c0_13 = arith.constant 0 : index
    %26 = vector.load %arg6[%c0_12, %c0_13] : memref<1x192xf32, #tpu.memory_space<vmem>>, vector<1x192xf32>
    %27 = vector.broadcast %26 : vector<1x192xf32> to vector<64x192xf32>
    %28 = arith.addf %25, %27 : vector<64x192xf32>
    %c0_14 = arith.constant 0 : index
    %c0_15 = arith.constant 0 : index
    %29 = vector.load %arg7[%c0_14, %c0_15] : memref<64x192xf32, #tpu.memory_space<vmem>>, vector<64x192xf32>
    tpu.vector_store %arg7[%c0_14, %c0_15], %28 {strides = array<i32>} : memref<64x192xf32, #tpu.memory_space<vmem>>, vector<64x192xf32>,
    return
  }
  func.func @transform_0(%arg0: i32, %arg1: i32) -> (i32, i32) {
    %c0_i32 = arith.constant 0 : i32
    %c0_i32_0 = arith.constant 0 : i32
    return %arg1, %c0_i32 : i32, i32
  }
  func.func @transform_1(%arg0: i32, %arg1: i32) -> (i32, i32) {
    %c0_i32 = arith.constant 0 : i32
    %c0_i32_0 = arith.constant 0 : i32
    %c0_i32_1 = arith.constant 0 : i32
    return %c0_i32, %c0_i32_0 : i32, i32
  }
  func.func @transform_2(%arg0: i32, %arg1: i32) -> (i32, i32) {
    %c0_i32 = arith.constant 0 : i32
    %c0_i32_0 = arith.constant 0 : i32
    %c0_i32_1 = arith.constant 0 : i32
    return %c0_i32, %c0_i32_0 : i32, i32
  }
  func.func @transform_3(%arg0: i32, %arg1: i32) -> (i32, i32) {
    %c0_i32 = arith.constant 0 : i32
    %c0_i32_0 = arith.constant 0 : i32
    return %c0_i32, %arg0 : i32, i32
  }
  func.func @transform_4(%arg0: i32, %arg1: i32) -> (i32, i32) {
    %c0_i32 = arith.constant 0 : i32
    %c0_i32_0 = arith.constant 0 : i32
    return %c0_i32, %arg0 : i32, i32
  }
  func.func @transform_5(%arg0: i32, %arg1: i32) -> (i32, i32) {
    %c0_i32 = arith.constant 0 : i32
    return %arg1, %arg0 : i32, i32
  }
}

module attributes {stable_mosaic.version = 11 : i64} {
  func.func @_fused_linear_kernel(%arg0: i32, %arg1: i32, %arg2: memref<64x64xf32, #tpu.memory_space<vmem>>, %arg3: memref<1x64xf32, #tpu.memory_space<vmem>>, %arg4: memref<1x64xf32, #tpu.memory_space<vmem>>, %arg5: memref<64x64xbf16, #tpu.memory_space<vmem>>, %arg6: memref<1x64xf32, #tpu.memory_space<vmem>>, %arg7: memref<64x64xf32, #tpu.memory_space<vmem>>, %arg8: memref<64x64xf32, #tpu.memory_space<vmem>>) attributes {dimension_semantics = [#tpu.dimension_semantics<parallel>, #tpu.dimension_semantics<parallel>], iteration_bounds = array<i64: 1, 1>, scalar_prefetch = 0 : i64, scratch_operands = 0 : i64, tpu.core_type = #tpu.core_type<tc>, window_params = [{transform_indices = @transform_0, window_bounds = array<i64: 64, 64>}, {pipeline_mode = #tpu.pipeline_mode<synchronous>, transform_indices = @transform_1, window_bounds = array<i64: 1, 64>}, {pipeline_mode = #tpu.pipeline_mode<synchronous>, transform_indices = @transform_2, window_bounds = array<i64: 1, 64>}, {transform_indices = @transform_3, window_bounds = array<i64: 64, 64>}, {transform_indices = @transform_4, window_bounds = array<i64: 1, 64>}, {transform_indices = @transform_5, window_bounds = array<i64: 64, 64>}, {transform_indices = @transform_6, window_bounds = array<i64: 64, 64>}]} {
    %c0 = arith.constant 0 : index
    %c0_0 = arith.constant 0 : index
    %0 = vector.load %arg2[%c0, %c0_0] : memref<64x64xf32, #tpu.memory_space<vmem>>, vector<64x64xf32>
    %cst = arith.constant dense<0.000000e+00> : vector<64xf32>
    %1 = vector.multi_reduction <add>, %0, %cst [1] : vector<64x64xf32> to vector<64xf32>
    %2 = vector.shape_cast %1 : vector<64xf32> to vector<64x1xf32>
    %cst_1 = arith.constant 6.400000e+01 : f32
    %3 = vector.broadcast %cst_1 : f32 to vector<64x1xf32>
    %4 = arith.divf %2, %3 : vector<64x1xf32>
    %5 = vector.broadcast %4 : vector<64x1xf32> to vector<64x64xf32>
    %6 = arith.subf %0, %5 : vector<64x64xf32>
    %7 = arith.mulf %6, %6 : vector<64x64xf32>
    %cst_2 = arith.constant dense<0.000000e+00> : vector<64xf32>
    %8 = vector.multi_reduction <add>, %7, %cst_2 [1] : vector<64x64xf32> to vector<64xf32>
    %9 = vector.shape_cast %8 : vector<64xf32> to vector<64x1xf32>
    %cst_3 = arith.constant 6.400000e+01 : f32
    %10 = vector.broadcast %cst_3 : f32 to vector<64x1xf32>
    %11 = arith.divf %9, %10 : vector<64x1xf32>
    %cst_4 = arith.constant 9.99999974E-6 : f32
    %12 = vector.broadcast %cst_4 : f32 to vector<64x1xf32>
    %13 = arith.addf %11, %12 : vector<64x1xf32>
    %14 = math.rsqrt %13 : vector<64x1xf32>
    %15 = vector.broadcast %14 : vector<64x1xf32> to vector<64x64xf32>
    %16 = arith.mulf %6, %15 : vector<64x64xf32>
    %c0_5 = arith.constant 0 : index
    %c0_6 = arith.constant 0 : index
    %17 = vector.load %arg3[%c0_5, %c0_6] : memref<1x64xf32, #tpu.memory_space<vmem>>, vector<1x64xf32>
    %18 = vector.broadcast %17 : vector<1x64xf32> to vector<64x64xf32>
    %19 = arith.mulf %16, %18 : vector<64x64xf32>
    %c0_7 = arith.constant 0 : index
    %c0_8 = arith.constant 0 : index
    %20 = vector.load %arg4[%c0_7, %c0_8] : memref<1x64xf32, #tpu.memory_space<vmem>>, vector<1x64xf32>
    %21 = vector.broadcast %20 : vector<1x64xf32> to vector<64x64xf32>
    %22 = arith.addf %19, %21 : vector<64x64xf32>
    %23 = arith.truncf %22 : vector<64x64xf32> to vector<64x64xbf16>
    %c0_9 = arith.constant 0 : index
    %c0_10 = arith.constant 0 : index
    %24 = vector.load %arg5[%c0_9, %c0_10] : memref<64x64xbf16, #tpu.memory_space<vmem>>, vector<64x64xbf16>
    %cst_11 = arith.constant dense<0.000000e+00> : vector<64x64xf32>
    %25 = tpu.matmul %23, %24, %cst_11 {dimension_numbers = #tpu.dot_dimension_numbers<[1], [0], [0], [1], [0, 0, 1, 1], [], []>} : vector<64x64xbf16>, vector<64x64xbf16>, vector<64x64xf32> -> vector<64x64xf32>
    %c0_12 = arith.constant 0 : index
    %c0_13 = arith.constant 0 : index
    %26 = vector.load %arg6[%c0_12, %c0_13] : memref<1x64xf32, #tpu.memory_space<vmem>>, vector<1x64xf32>
    %27 = vector.broadcast %26 : vector<1x64xf32> to vector<64x64xf32>
    %28 = arith.addf %25, %27 : vector<64x64xf32>
    %c0_14 = arith.constant 0 : index
    %c0_15 = arith.constant 0 : index
    %29 = vector.load %arg7[%c0_14, %c0_15] : memref<64x64xf32, #tpu.memory_space<vmem>>, vector<64x64xf32>
    %30 = arith.addf %28, %29 : vector<64x64xf32>
    %c0_16 = arith.constant 0 : index
    %c0_17 = arith.constant 0 : index
    %31 = vector.load %arg8[%c0_16, %c0_17] : memref<64x64xf32, #tpu.memory_space<vmem>>, vector<64x64xf32>
    tpu.vector_store %arg8[%c0_16, %c0_17], %30 {strides = array<i32>} : memref<64x64xf32, #tpu.memory_space<vmem>>, vector<64x64xf32>,
    return
  }
  func.func @transform_0(%arg0: i32, %arg1: i32) -> (i32, i32) {
    %c0_i32 = arith.constant 0 : i32
    %c0_i32_0 = arith.constant 0 : i32
    return %arg1, %c0_i32 : i32, i32
  }
  func.func @transform_1(%arg0: i32, %arg1: i32) -> (i32, i32) {
    %c0_i32 = arith.constant 0 : i32
    %c0_i32_0 = arith.constant 0 : i32
    %c0_i32_1 = arith.constant 0 : i32
    return %c0_i32, %c0_i32_0 : i32, i32
  }
  func.func @transform_2(%arg0: i32, %arg1: i32) -> (i32, i32) {
    %c0_i32 = arith.constant 0 : i32
    %c0_i32_0 = arith.constant 0 : i32
    %c0_i32_1 = arith.constant 0 : i32
    return %c0_i32, %c0_i32_0 : i32, i32
  }
  func.func @transform_3(%arg0: i32, %arg1: i32) -> (i32, i32) {
    %c0_i32 = arith.constant 0 : i32
    %c0_i32_0 = arith.constant 0 : i32
    return %c0_i32, %arg0 : i32, i32
  }
  func.func @transform_4(%arg0: i32, %arg1: i32) -> (i32, i32) {
    %c0_i32 = arith.constant 0 : i32
    %c0_i32_0 = arith.constant 0 : i32
    return %c0_i32, %arg0 : i32, i32
  }
  func.func @transform_5(%arg0: i32, %arg1: i32) -> (i32, i32) {
    %c0_i32 = arith.constant 0 : i32
    return %arg1, %arg0 : i32, i32
  }
  func.func @transform_6(%arg0: i32, %arg1: i32) -> (i32, i32) {
    %c0_i32 = arith.constant 0 : i32
    return %arg1, %arg0 : i32, i32
  }
}

module attributes {stable_mosaic.version = 11 : i64} {
  func.func @_attention_kernel(%arg0: i32, %arg1: memref<12x16x16xf32, #tpu.memory_space<vmem>>, %arg2: memref<12x16x16xf32, #tpu.memory_space<vmem>>, %arg3: memref<12x16x16xf32, #tpu.memory_space<vmem>>, %arg4: memref<12x16x16xf32, #tpu.memory_space<vmem>>) attributes {dimension_semantics = [#tpu.dimension_semantics<parallel>], iteration_bounds = array<i64: 1>, scalar_prefetch = 0 : i64, scratch_operands = 0 : i64, tpu.core_type = #tpu.core_type<tc>, window_params = [{transform_indices = @transform_0, window_bounds = array<i64: 12, 16, 16>}, {transform_indices = @transform_1, window_bounds = array<i64: 12, 16, 16>}, {transform_indices = @transform_2, window_bounds = array<i64: 12, 16, 16>}, {transform_indices = @transform_3, window_bounds = array<i64: 12, 16, 16>}]} {
    %c0 = arith.constant 0 : index
    %c0_0 = arith.constant 0 : index
    %c0_1 = arith.constant 0 : index
    %0 = vector.load %arg1[%c0, %c0_0, %c0_1] : memref<12x16x16xf32, #tpu.memory_space<vmem>>, vector<12x16x16xf32>
    %1 = arith.truncf %0 : vector<12x16x16xf32> to vector<12x16x16xbf16>
    %c0_2 = arith.constant 0 : index
    %c0_3 = arith.constant 0 : index
    %c0_4 = arith.constant 0 : index
    %2 = vector.load %arg2[%c0_2, %c0_3, %c0_4] : memref<12x16x16xf32, #tpu.memory_space<vmem>>, vector<12x16x16xf32>
    %3 = arith.truncf %2 : vector<12x16x16xf32> to vector<12x16x16xbf16>
    "tpu.trace_start"() <{level = 10 : i32, message = "pqd,pdk->pqk"}> : () -> ()
    %cst = arith.constant dense<0.000000e+00> : vector<12x16x16xf32>
    %4 = tpu.matmul %1, %3, %cst {dimension_numbers = #tpu.dot_dimension_numbers<[2], [1], [1], [2], [0, 0, 0, 1, 1, 2], [0], [0]>} : vector<12x16x16xbf16>, vector<12x16x16xbf16>, vector<12x16x16xf32> -> vector<12x16x16xf32>
    "tpu.trace_stop"() : () -> ()
    %cst_5 = arith.constant 2.500000e-01 : f32
    %5 = vector.broadcast %cst_5 : f32 to vector<12x16x16xf32>
    %6 = arith.mulf %4, %5 : vector<12x16x16xf32>
    %7 = tpu.iota {dimensions = array<i32: 0>} : vector<16x16xi32>
    %8 = tpu.iota {dimensions = array<i32: 1>} : vector<16x16xi32>
    %9 = arith.cmpi sle, %8, %7 : vector<16x16xi32>
    %10 = vector.shape_cast %9 : vector<16x16xi1> to vector<1x16x16xi1>
    %cst_6 = arith.constant -1.000000e+30 : f32
    %11 = vector.shape_cast %10 : vector<1x16x16xi1> to vector<1x16x16xi1>
    %12 = vector.broadcast %11 : vector<1x16x16xi1> to vector<12x16x16xi1>
    %13 = vector.broadcast %cst_6 : f32 to vector<12x16x16xf32>
    %14 = arith.select %12, %6, %13 : vector<12x16x16xi1>, vector<12x16x16xf32>
    %cst_7 = arith.constant dense<0xFF800000> : vector<12x16xf32>
    %15 = vector.multi_reduction <maximumf>, %14, %cst_7 [2] : vector<12x16x16xf32> to vector<12x16xf32>
    %16 = vector.shape_cast %15 : vector<12x16xf32> to vector<12x16x1xf32>
    %17 = vector.broadcast %16 : vector<12x16x1xf32> to vector<12x16x16xf32>
    %18 = arith.subf %14, %17 : vector<12x16x16xf32>
    %19 = math.exp %18 : vector<12x16x16xf32>
    %cst_8 = arith.constant dense<0.000000e+00> : vector<12x16xf32>
    %20 = vector.multi_reduction <add>, %19, %cst_8 [2] : vector<12x16x16xf32> to vector<12x16xf32>
    %21 = vector.shape_cast %20 : vector<12x16xf32> to vector<12x16x1xf32>
    %22 = arith.truncf %19 : vector<12x16x16xf32> to vector<12x16x16xbf16>
    %c0_9 = arith.constant 0 : index
    %c0_10 = arith.constant 0 : index
    %c0_11 = arith.constant 0 : index
    %23 = vector.load %arg3[%c0_9, %c0_10, %c0_11] : memref<12x16x16xf32, #tpu.memory_space<vmem>>, vector<12x16x16xf32>
    %24 = arith.truncf %23 : vector<12x16x16xf32> to vector<12x16x16xbf16>
    "tpu.trace_start"() <{level = 10 : i32, message = "pqk,pkd->pqd"}> : () -> ()
    %cst_12 = arith.constant dense<0.000000e+00> : vector<12x16x16xf32>
    %25 = tpu.matmul %22, %24, %cst_12 {dimension_numbers = #tpu.dot_dimension_numbers<[2], [1], [1], [2], [0, 0, 0, 1, 1, 2], [0], [0]>} : vector<12x16x16xbf16>, vector<12x16x16xbf16>, vector<12x16x16xf32> -> vector<12x16x16xf32>
    "tpu.trace_stop"() : () -> ()
    %26 = tpu.reciprocal %21 {approx = true} : vector<12x16x1xf32> -> vector<12x16x1xf32>
    %cst_13 = arith.constant 5.000000e-01 : f32
    %27 = vector.broadcast %cst_13 : f32 to vector<12x16x1xf32>
    %28 = arith.mulf %26, %27 : vector<12x16x1xf32>
    %29 = vector.broadcast %28 : vector<12x16x1xf32> to vector<12x16x16xf32>
    %30 = arith.mulf %25, %29 : vector<12x16x16xf32>
    %c0_14 = arith.constant 0 : index
    %c0_15 = arith.constant 0 : index
    %c0_16 = arith.constant 0 : index
    %31 = vector.load %arg4[%c0_14, %c0_15, %c0_16] : memref<12x16x16xf32, #tpu.memory_space<vmem>>, vector<12x16x16xf32>
    tpu.vector_store %arg4[%c0_14, %c0_15, %c0_16], %30 {strides = array<i32>} : memref<12x16x16xf32, #tpu.memory_space<vmem>>, vector<12x16x16xf32>,
    return
  }
  func.func @transform_0(%arg0: i32) -> (i32, i32, i32) {
    %c0_i32 = arith.constant 0 : i32
    %c0_i32_0 = arith.constant 0 : i32
    %c0_i32_1 = arith.constant 0 : i32
    return %arg0, %c0_i32, %c0_i32_0 : i32, i32, i32
  }
  func.func @transform_1(%arg0: i32) -> (i32, i32, i32) {
    %c0_i32 = arith.constant 0 : i32
    %c0_i32_0 = arith.constant 0 : i32
    %c0_i32_1 = arith.constant 0 : i32
    return %arg0, %c0_i32, %c0_i32_0 : i32, i32, i32
  }
  func.func @transform_2(%arg0: i32) -> (i32, i32, i32) {
    %c0_i32 = arith.constant 0 : i32
    %c0_i32_0 = arith.constant 0 : i32
    %c0_i32_1 = arith.constant 0 : i32
    return %arg0, %c0_i32, %c0_i32_0 : i32, i32, i32
  }
  func.func @transform_3(%arg0: i32) -> (i32, i32, i32) {
    %c0_i32 = arith.constant 0 : i32
    %c0_i32_0 = arith.constant 0 : i32
    %c0_i32_1 = arith.constant 0 : i32
    return %arg0, %c0_i32, %c0_i32_0 : i32, i32, i32
  }
}

module attributes {stable_mosaic.version = 11 : i64} {
  func.func @_fused_linear_kernel(%arg0: i32, %arg1: i32, %arg2: memref<64x64xf32, #tpu.memory_space<vmem>>, %arg3: memref<1x64xf32, #tpu.memory_space<vmem>>, %arg4: memref<1x64xf32, #tpu.memory_space<vmem>>, %arg5: memref<64x64xbf16, #tpu.memory_space<vmem>>, %arg6: memref<1x64xf32, #tpu.memory_space<vmem>>, %arg7: memref<64x64xf32, #tpu.memory_space<vmem>>) attributes {dimension_semantics = [#tpu.dimension_semantics<parallel>, #tpu.dimension_semantics<parallel>], iteration_bounds = array<i64: 1, 1>, scalar_prefetch = 0 : i64, scratch_operands = 0 : i64, tpu.core_type = #tpu.core_type<tc>, window_params = [{transform_indices = @transform_0, window_bounds = array<i64: 64, 64>}, {pipeline_mode = #tpu.pipeline_mode<synchronous>, transform_indices = @transform_1, window_bounds = array<i64: 1, 64>}, {pipeline_mode = #tpu.pipeline_mode<synchronous>, transform_indices = @transform_2, window_bounds = array<i64: 1, 64>}, {transform_indices = @transform_3, window_bounds = array<i64: 64, 64>}, {transform_indices = @transform_4, window_bounds = array<i64: 1, 64>}, {transform_indices = @transform_5, window_bounds = array<i64: 64, 64>}]} {
    %c0 = arith.constant 0 : index
    %c0_0 = arith.constant 0 : index
    %0 = vector.load %arg2[%c0, %c0_0] : memref<64x64xf32, #tpu.memory_space<vmem>>, vector<64x64xf32>
    %cst = arith.constant dense<0.000000e+00> : vector<64xf32>
    %1 = vector.multi_reduction <add>, %0, %cst [1] : vector<64x64xf32> to vector<64xf32>
    %2 = vector.shape_cast %1 : vector<64xf32> to vector<64x1xf32>
    %cst_1 = arith.constant 6.400000e+01 : f32
    %3 = vector.broadcast %cst_1 : f32 to vector<64x1xf32>
    %4 = arith.divf %2, %3 : vector<64x1xf32>
    %5 = vector.broadcast %4 : vector<64x1xf32> to vector<64x64xf32>
    %6 = arith.subf %0, %5 : vector<64x64xf32>
    %7 = arith.mulf %6, %6 : vector<64x64xf32>
    %cst_2 = arith.constant dense<0.000000e+00> : vector<64xf32>
    %8 = vector.multi_reduction <add>, %7, %cst_2 [1] : vector<64x64xf32> to vector<64xf32>
    %9 = vector.shape_cast %8 : vector<64xf32> to vector<64x1xf32>
    %cst_3 = arith.constant 6.400000e+01 : f32
    %10 = vector.broadcast %cst_3 : f32 to vector<64x1xf32>
    %11 = arith.divf %9, %10 : vector<64x1xf32>
    %cst_4 = arith.constant 9.99999974E-6 : f32
    %12 = vector.broadcast %cst_4 : f32 to vector<64x1xf32>
    %13 = arith.addf %11, %12 : vector<64x1xf32>
    %14 = math.rsqrt %13 : vector<64x1xf32>
    %15 = vector.broadcast %14 : vector<64x1xf32> to vector<64x64xf32>
    %16 = arith.mulf %6, %15 : vector<64x64xf32>
    %c0_5 = arith.constant 0 : index
    %c0_6 = arith.constant 0 : index
    %17 = vector.load %arg3[%c0_5, %c0_6] : memref<1x64xf32, #tpu.memory_space<vmem>>, vector<1x64xf32>
    %18 = vector.broadcast %17 : vector<1x64xf32> to vector<64x64xf32>
    %19 = arith.mulf %16, %18 : vector<64x64xf32>
    %c0_7 = arith.constant 0 : index
    %c0_8 = arith.constant 0 : index
    %20 = vector.load %arg4[%c0_7, %c0_8] : memref<1x64xf32, #tpu.memory_space<vmem>>, vector<1x64xf32>
    %21 = vector.broadcast %20 : vector<1x64xf32> to vector<64x64xf32>
    %22 = arith.addf %19, %21 : vector<64x64xf32>
    %23 = arith.truncf %22 : vector<64x64xf32> to vector<64x64xbf16>
    %c0_9 = arith.constant 0 : index
    %c0_10 = arith.constant 0 : index
    %24 = vector.load %arg5[%c0_9, %c0_10] : memref<64x64xbf16, #tpu.memory_space<vmem>>, vector<64x64xbf16>
    %cst_11 = arith.constant dense<0.000000e+00> : vector<64x64xf32>
    %25 = tpu.matmul %23, %24, %cst_11 {dimension_numbers = #tpu.dot_dimension_numbers<[1], [0], [0], [1], [0, 0, 1, 1], [], []>} : vector<64x64xbf16>, vector<64x64xbf16>, vector<64x64xf32> -> vector<64x64xf32>
    %c0_12 = arith.constant 0 : index
    %c0_13 = arith.constant 0 : index
    %26 = vector.load %arg6[%c0_12, %c0_13] : memref<1x64xf32, #tpu.memory_space<vmem>>, vector<1x64xf32>
    %27 = vector.broadcast %26 : vector<1x64xf32> to vector<64x64xf32>
    %28 = arith.addf %25, %27 : vector<64x64xf32>
    %c0_14 = arith.constant 0 : index
    %c0_15 = arith.constant 0 : index
    %29 = vector.load %arg7[%c0_14, %c0_15] : memref<64x64xf32, #tpu.memory_space<vmem>>, vector<64x64xf32>
    tpu.vector_store %arg7[%c0_14, %c0_15], %28 {strides = array<i32>} : memref<64x64xf32, #tpu.memory_space<vmem>>, vector<64x64xf32>,
    return
  }
  func.func @transform_0(%arg0: i32, %arg1: i32) -> (i32, i32) {
    %c0_i32 = arith.constant 0 : i32
    %c0_i32_0 = arith.constant 0 : i32
    return %arg1, %c0_i32 : i32, i32
  }
  func.func @transform_1(%arg0: i32, %arg1: i32) -> (i32, i32) {
    %c0_i32 = arith.constant 0 : i32
    %c0_i32_0 = arith.constant 0 : i32
    %c0_i32_1 = arith.constant 0 : i32
    return %c0_i32, %c0_i32_0 : i32, i32
  }
  func.func @transform_2(%arg0: i32, %arg1: i32) -> (i32, i32) {
    %c0_i32 = arith.constant 0 : i32
    %c0_i32_0 = arith.constant 0 : i32
    %c0_i32_1 = arith.constant 0 : i32
    return %c0_i32, %c0_i32_0 : i32, i32
  }
  func.func @transform_3(%arg0: i32, %arg1: i32) -> (i32, i32) {
    %c0_i32 = arith.constant 0 : i32
    %c0_i32_0 = arith.constant 0 : i32
    return %c0_i32, %arg0 : i32, i32
  }
  func.func @transform_4(%arg0: i32, %arg1: i32) -> (i32, i32) {
    %c0_i32 = arith.constant 0 : i32
    %c0_i32_0 = arith.constant 0 : i32
    return %c0_i32, %arg0 : i32, i32
  }
  func.func @transform_5(%arg0: i32, %arg1: i32) -> (i32, i32) {
    %c0_i32 = arith.constant 0 : i32
    return %arg1, %arg0 : i32, i32
  }
}

module attributes {stable_mosaic.version = 11 : i64} {
  func.func @_fused_linear_kernel(%arg0: i32, %arg1: i32, %arg2: memref<64x64xf32, #tpu.memory_space<vmem>>, %arg3: memref<1x64xf32, #tpu.memory_space<vmem>>, %arg4: memref<1x64xf32, #tpu.memory_space<vmem>>, %arg5: memref<64x128xbf16, #tpu.memory_space<vmem>>, %arg6: memref<1x128xf32, #tpu.memory_space<vmem>>, %arg7: memref<64x128xf32, #tpu.memory_space<vmem>>) attributes {dimension_semantics = [#tpu.dimension_semantics<parallel>, #tpu.dimension_semantics<parallel>], iteration_bounds = array<i64: 1, 1>, scalar_prefetch = 0 : i64, scratch_operands = 0 : i64, tpu.core_type = #tpu.core_type<tc>, window_params = [{transform_indices = @transform_0, window_bounds = array<i64: 64, 64>}, {pipeline_mode = #tpu.pipeline_mode<synchronous>, transform_indices = @transform_1, window_bounds = array<i64: 1, 64>}, {pipeline_mode = #tpu.pipeline_mode<synchronous>, transform_indices = @transform_2, window_bounds = array<i64: 1, 64>}, {transform_indices = @transform_3, window_bounds = array<i64: 64, 128>}, {transform_indices = @transform_4, window_bounds = array<i64: 1, 128>}, {transform_indices = @transform_5, window_bounds = array<i64: 64, 128>}]} {
    %c0 = arith.constant 0 : index
    %c0_0 = arith.constant 0 : index
    %0 = vector.load %arg2[%c0, %c0_0] : memref<64x64xf32, #tpu.memory_space<vmem>>, vector<64x64xf32>
    %cst = arith.constant dense<0.000000e+00> : vector<64xf32>
    %1 = vector.multi_reduction <add>, %0, %cst [1] : vector<64x64xf32> to vector<64xf32>
    %2 = vector.shape_cast %1 : vector<64xf32> to vector<64x1xf32>
    %cst_1 = arith.constant 6.400000e+01 : f32
    %3 = vector.broadcast %cst_1 : f32 to vector<64x1xf32>
    %4 = arith.divf %2, %3 : vector<64x1xf32>
    %5 = vector.broadcast %4 : vector<64x1xf32> to vector<64x64xf32>
    %6 = arith.subf %0, %5 : vector<64x64xf32>
    %7 = arith.mulf %6, %6 : vector<64x64xf32>
    %cst_2 = arith.constant dense<0.000000e+00> : vector<64xf32>
    %8 = vector.multi_reduction <add>, %7, %cst_2 [1] : vector<64x64xf32> to vector<64xf32>
    %9 = vector.shape_cast %8 : vector<64xf32> to vector<64x1xf32>
    %cst_3 = arith.constant 6.400000e+01 : f32
    %10 = vector.broadcast %cst_3 : f32 to vector<64x1xf32>
    %11 = arith.divf %9, %10 : vector<64x1xf32>
    %cst_4 = arith.constant 9.99999974E-6 : f32
    %12 = vector.broadcast %cst_4 : f32 to vector<64x1xf32>
    %13 = arith.addf %11, %12 : vector<64x1xf32>
    %14 = math.rsqrt %13 : vector<64x1xf32>
    %15 = vector.broadcast %14 : vector<64x1xf32> to vector<64x64xf32>
    %16 = arith.mulf %6, %15 : vector<64x64xf32>
    %c0_5 = arith.constant 0 : index
    %c0_6 = arith.constant 0 : index
    %17 = vector.load %arg3[%c0_5, %c0_6] : memref<1x64xf32, #tpu.memory_space<vmem>>, vector<1x64xf32>
    %18 = vector.broadcast %17 : vector<1x64xf32> to vector<64x64xf32>
    %19 = arith.mulf %16, %18 : vector<64x64xf32>
    %c0_7 = arith.constant 0 : index
    %c0_8 = arith.constant 0 : index
    %20 = vector.load %arg4[%c0_7, %c0_8] : memref<1x64xf32, #tpu.memory_space<vmem>>, vector<1x64xf32>
    %21 = vector.broadcast %20 : vector<1x64xf32> to vector<64x64xf32>
    %22 = arith.addf %19, %21 : vector<64x64xf32>
    %23 = arith.truncf %22 : vector<64x64xf32> to vector<64x64xbf16>
    %c0_9 = arith.constant 0 : index
    %c0_10 = arith.constant 0 : index
    %24 = vector.load %arg5[%c0_9, %c0_10] : memref<64x128xbf16, #tpu.memory_space<vmem>>, vector<64x128xbf16>
    %cst_11 = arith.constant dense<0.000000e+00> : vector<64x128xf32>
    %25 = tpu.matmul %23, %24, %cst_11 {dimension_numbers = #tpu.dot_dimension_numbers<[1], [0], [0], [1], [0, 0, 1, 1], [], []>} : vector<64x64xbf16>, vector<64x128xbf16>, vector<64x128xf32> -> vector<64x128xf32>
    %c0_12 = arith.constant 0 : index
    %c0_13 = arith.constant 0 : index
    %26 = vector.load %arg6[%c0_12, %c0_13] : memref<1x128xf32, #tpu.memory_space<vmem>>, vector<1x128xf32>
    %27 = vector.broadcast %26 : vector<1x128xf32> to vector<64x128xf32>
    %28 = arith.addf %25, %27 : vector<64x128xf32>
    %cst_14 = arith.constant 0.000000e+00 : f32
    %29 = vector.broadcast %cst_14 : f32 to vector<64x128xf32>
    %30 = arith.maximumf %28, %29 : vector<64x128xf32>
    %c0_15 = arith.constant 0 : index
    %c0_16 = arith.constant 0 : index
    %31 = vector.load %arg7[%c0_15, %c0_16] : memref<64x128xf32, #tpu.memory_space<vmem>>, vector<64x128xf32>
    tpu.vector_store %arg7[%c0_15, %c0_16], %30 {strides = array<i32>} : memref<64x128xf32, #tpu.memory_space<vmem>>, vector<64x128xf32>,
    return
  }
  func.func @transform_0(%arg0: i32, %arg1: i32) -> (i32, i32) {
    %c0_i32 = arith.constant 0 : i32
    %c0_i32_0 = arith.constant 0 : i32
    return %arg1, %c0_i32 : i32, i32
  }
  func.func @transform_1(%arg0: i32, %arg1: i32) -> (i32, i32) {
    %c0_i32 = arith.constant 0 : i32
    %c0_i32_0 = arith.constant 0 : i32
    %c0_i32_1 = arith.constant 0 : i32
    return %c0_i32, %c0_i32_0 : i32, i32
  }
  func.func @transform_2(%arg0: i32, %arg1: i32) -> (i32, i32) {
    %c0_i32 = arith.constant 0 : i32
    %c0_i32_0 = arith.constant 0 : i32
    %c0_i32_1 = arith.constant 0 : i32
    return %c0_i32, %c0_i32_0 : i32, i32
  }
  func.func @transform_3(%arg0: i32, %arg1: i32) -> (i32, i32) {
    %c0_i32 = arith.constant 0 : i32
    %c0_i32_0 = arith.constant 0 : i32
    return %c0_i32, %arg0 : i32, i32
  }
  func.func @transform_4(%arg0: i32, %arg1: i32) -> (i32, i32) {
    %c0_i32 = arith.constant 0 : i32
    %c0_i32_0 = arith.constant 0 : i32
    return %c0_i32, %arg0 : i32, i32
  }
  func.func @transform_5(%arg0: i32, %arg1: i32) -> (i32, i32) {
    %c0_i32 = arith.constant 0 : i32
    return %arg1, %arg0 : i32, i32
  }
}

module attributes {stable_mosaic.version = 11 : i64} {
  func.func @_fused_linear_kernel(%arg0: i32, %arg1: i32, %arg2: memref<64x128xf32, #tpu.memory_space<vmem>>, %arg3: memref<1x128xf32, #tpu.memory_space<vmem>>, %arg4: memref<1x128xf32, #tpu.memory_space<vmem>>, %arg5: memref<128x64xbf16, #tpu.memory_space<vmem>>, %arg6: memref<1x64xf32, #tpu.memory_space<vmem>>, %arg7: memref<64x64xf32, #tpu.memory_space<vmem>>, %arg8: memref<64x64xf32, #tpu.memory_space<vmem>>) attributes {dimension_semantics = [#tpu.dimension_semantics<parallel>, #tpu.dimension_semantics<parallel>], iteration_bounds = array<i64: 1, 1>, scalar_prefetch = 0 : i64, scratch_operands = 0 : i64, tpu.core_type = #tpu.core_type<tc>, window_params = [{transform_indices = @transform_0, window_bounds = array<i64: 64, 128>}, {pipeline_mode = #tpu.pipeline_mode<synchronous>, transform_indices = @transform_1, window_bounds = array<i64: 1, 128>}, {pipeline_mode = #tpu.pipeline_mode<synchronous>, transform_indices = @transform_2, window_bounds = array<i64: 1, 128>}, {transform_indices = @transform_3, window_bounds = array<i64: 128, 64>}, {transform_indices = @transform_4, window_bounds = array<i64: 1, 64>}, {transform_indices = @transform_5, window_bounds = array<i64: 64, 64>}, {transform_indices = @transform_6, window_bounds = array<i64: 64, 64>}]} {
    %c0 = arith.constant 0 : index
    %c0_0 = arith.constant 0 : index
    %0 = vector.load %arg2[%c0, %c0_0] : memref<64x128xf32, #tpu.memory_space<vmem>>, vector<64x128xf32>
    %cst = arith.constant dense<0.000000e+00> : vector<64xf32>
    %1 = vector.multi_reduction <add>, %0, %cst [1] : vector<64x128xf32> to vector<64xf32>
    %2 = vector.shape_cast %1 : vector<64xf32> to vector<64x1xf32>
    %cst_1 = arith.constant 1.280000e+02 : f32
    %3 = vector.broadcast %cst_1 : f32 to vector<64x1xf32>
    %4 = arith.divf %2, %3 : vector<64x1xf32>
    %5 = vector.broadcast %4 : vector<64x1xf32> to vector<64x128xf32>
    %6 = arith.subf %0, %5 : vector<64x128xf32>
    %7 = arith.mulf %6, %6 : vector<64x128xf32>
    %cst_2 = arith.constant dense<0.000000e+00> : vector<64xf32>
    %8 = vector.multi_reduction <add>, %7, %cst_2 [1] : vector<64x128xf32> to vector<64xf32>
    %9 = vector.shape_cast %8 : vector<64xf32> to vector<64x1xf32>
    %cst_3 = arith.constant 1.280000e+02 : f32
    %10 = vector.broadcast %cst_3 : f32 to vector<64x1xf32>
    %11 = arith.divf %9, %10 : vector<64x1xf32>
    %cst_4 = arith.constant 9.99999974E-6 : f32
    %12 = vector.broadcast %cst_4 : f32 to vector<64x1xf32>
    %13 = arith.addf %11, %12 : vector<64x1xf32>
    %14 = math.rsqrt %13 : vector<64x1xf32>
    %15 = vector.broadcast %14 : vector<64x1xf32> to vector<64x128xf32>
    %16 = arith.mulf %6, %15 : vector<64x128xf32>
    %c0_5 = arith.constant 0 : index
    %c0_6 = arith.constant 0 : index
    %17 = vector.load %arg3[%c0_5, %c0_6] : memref<1x128xf32, #tpu.memory_space<vmem>>, vector<1x128xf32>
    %18 = vector.broadcast %17 : vector<1x128xf32> to vector<64x128xf32>
    %19 = arith.mulf %16, %18 : vector<64x128xf32>
    %c0_7 = arith.constant 0 : index
    %c0_8 = arith.constant 0 : index
    %20 = vector.load %arg4[%c0_7, %c0_8] : memref<1x128xf32, #tpu.memory_space<vmem>>, vector<1x128xf32>
    %21 = vector.broadcast %20 : vector<1x128xf32> to vector<64x128xf32>
    %22 = arith.addf %19, %21 : vector<64x128xf32>
    %23 = arith.truncf %22 : vector<64x128xf32> to vector<64x128xbf16>
    %c0_9 = arith.constant 0 : index
    %c0_10 = arith.constant 0 : index
    %24 = vector.load %arg5[%c0_9, %c0_10] : memref<128x64xbf16, #tpu.memory_space<vmem>>, vector<128x64xbf16>
    %cst_11 = arith.constant dense<0.000000e+00> : vector<64x64xf32>
    %25 = tpu.matmul %23, %24, %cst_11 {dimension_numbers = #tpu.dot_dimension_numbers<[1], [0], [0], [1], [0, 0, 1, 1], [], []>} : vector<64x128xbf16>, vector<128x64xbf16>, vector<64x64xf32> -> vector<64x64xf32>
    %c0_12 = arith.constant 0 : index
    %c0_13 = arith.constant 0 : index
    %26 = vector.load %arg6[%c0_12, %c0_13] : memref<1x64xf32, #tpu.memory_space<vmem>>, vector<1x64xf32>
    %27 = vector.broadcast %26 : vector<1x64xf32> to vector<64x64xf32>
    %28 = arith.addf %25, %27 : vector<64x64xf32>
    %c0_14 = arith.constant 0 : index
    %c0_15 = arith.constant 0 : index
    %29 = vector.load %arg7[%c0_14, %c0_15] : memref<64x64xf32, #tpu.memory_space<vmem>>, vector<64x64xf32>
    %30 = arith.addf %28, %29 : vector<64x64xf32>
    %c0_16 = arith.constant 0 : index
    %c0_17 = arith.constant 0 : index
    %31 = vector.load %arg8[%c0_16, %c0_17] : memref<64x64xf32, #tpu.memory_space<vmem>>, vector<64x64xf32>
    tpu.vector_store %arg8[%c0_16, %c0_17], %30 {strides = array<i32>} : memref<64x64xf32, #tpu.memory_space<vmem>>, vector<64x64xf32>,
    return
  }
  func.func @transform_0(%arg0: i32, %arg1: i32) -> (i32, i32) {
    %c0_i32 = arith.constant 0 : i32
    %c0_i32_0 = arith.constant 0 : i32
    return %arg1, %c0_i32 : i32, i32
  }
  func.func @transform_1(%arg0: i32, %arg1: i32) -> (i32, i32) {
    %c0_i32 = arith.constant 0 : i32
    %c0_i32_0 = arith.constant 0 : i32
    %c0_i32_1 = arith.constant 0 : i32
    return %c0_i32, %c0_i32_0 : i32, i32
  }
  func.func @transform_2(%arg0: i32, %arg1: i32) -> (i32, i32) {
    %c0_i32 = arith.constant 0 : i32
    %c0_i32_0 = arith.constant 0 : i32
    %c0_i32_1 = arith.constant 0 : i32
    return %c0_i32, %c0_i32_0 : i32, i32
  }
  func.func @transform_3(%arg0: i32, %arg1: i32) -> (i32, i32) {
    %c0_i32 = arith.constant 0 : i32
    %c0_i32_0 = arith.constant 0 : i32
    return %c0_i32, %arg0 : i32, i32
  }
  func.func @transform_4(%arg0: i32, %arg1: i32) -> (i32, i32) {
    %c0_i32 = arith.constant 0 : i32
    %c0_i32_0 = arith.constant 0 : i32
    return %c0_i32, %arg0 : i32, i32
  }
  func.func @transform_5(%arg0: i32, %arg1: i32) -> (i32, i32) {
    %c0_i32 = arith.constant 0 : i32
    return %arg1, %arg0 : i32, i32
  }
  func.func @transform_6(%arg0: i32, %arg1: i32) -> (i32, i32) {
    %c0_i32 = arith.constant 0 : i32
    return %arg1, %arg0 : i32, i32
  }
}

module attributes {stable_mosaic.version = 11 : i64} {
  func.func @_fused_linear_kernel(%arg0: i32, %arg1: i32, %arg2: memref<64x64xf32, #tpu.memory_space<vmem>>, %arg3: memref<64x128xbf16, #tpu.memory_space<vmem>>, %arg4: memref<1x128xf32, #tpu.memory_space<vmem>>, %arg5: memref<64x128xf32, #tpu.memory_space<vmem>>) attributes {dimension_semantics = [#tpu.dimension_semantics<parallel>, #tpu.dimension_semantics<parallel>], iteration_bounds = array<i64: 1, 1>, scalar_prefetch = 0 : i64, scratch_operands = 0 : i64, tpu.core_type = #tpu.core_type<tc>, window_params = [{transform_indices = @transform_0, window_bounds = array<i64: 64, 64>}, {transform_indices = @transform_1, window_bounds = array<i64: 64, 128>}, {transform_indices = @transform_2, window_bounds = array<i64: 1, 128>}, {transform_indices = @transform_3, window_bounds = array<i64: 64, 128>}]} {
    %c0 = arith.constant 0 : index
    %c0_0 = arith.constant 0 : index
    %0 = vector.load %arg2[%c0, %c0_0] : memref<64x64xf32, #tpu.memory_space<vmem>>, vector<64x64xf32>
    %1 = arith.truncf %0 : vector<64x64xf32> to vector<64x64xbf16>
    %c0_1 = arith.constant 0 : index
    %c0_2 = arith.constant 0 : index
    %2 = vector.load %arg3[%c0_1, %c0_2] : memref<64x128xbf16, #tpu.memory_space<vmem>>, vector<64x128xbf16>
    %cst = arith.constant dense<0.000000e+00> : vector<64x128xf32>
    %3 = tpu.matmul %1, %2, %cst {dimension_numbers = #tpu.dot_dimension_numbers<[1], [0], [0], [1], [0, 0, 1, 1], [], []>} : vector<64x64xbf16>, vector<64x128xbf16>, vector<64x128xf32> -> vector<64x128xf32>
    %c0_3 = arith.constant 0 : index
    %c0_4 = arith.constant 0 : index
    %4 = vector.load %arg4[%c0_3, %c0_4] : memref<1x128xf32, #tpu.memory_space<vmem>>, vector<1x128xf32>
    %5 = vector.broadcast %4 : vector<1x128xf32> to vector<64x128xf32>
    %6 = arith.addf %3, %5 : vector<64x128xf32>
    %c0_5 = arith.constant 0 : index
    %c0_6 = arith.constant 0 : index
    %7 = vector.load %arg5[%c0_5, %c0_6] : memref<64x128xf32, #tpu.memory_space<vmem>>, vector<64x128xf32>
    tpu.vector_store %arg5[%c0_5, %c0_6], %6 {strides = array<i32>} : memref<64x128xf32, #tpu.memory_space<vmem>>, vector<64x128xf32>,
    return
  }
  func.func @transform_0(%arg0: i32, %arg1: i32) -> (i32, i32) {
    %c0_i32 = arith.constant 0 : i32
    %c0_i32_0 = arith.constant 0 : i32
    return %arg1, %c0_i32 : i32, i32
  }
  func.func @transform_1(%arg0: i32, %arg1: i32) -> (i32, i32) {
    %c0_i32 = arith.constant 0 : i32
    %c0_i32_0 = arith.constant 0 : i32
    return %c0_i32, %arg0 : i32, i32
  }
  func.func @transform_2(%arg0: i32, %arg1: i32) -> (i32, i32) {
    %c0_i32 = arith.constant 0 : i32
    %c0_i32_0 = arith.constant 0 : i32
    return %c0_i32, %arg0 : i32, i32
  }
  func.func @transform_3(%arg0: i32, %arg1: i32) -> (i32, i32) {
    %c0_i32 = arith.constant 0 : i32
    return %arg1, %arg0 : i32, i32
  }
}

module attributes {stable_mosaic.version = 11 : i64} {
  func.func @_fused_linear_kernel(%arg0: i32, %arg1: i32, %arg2: memref<64x64xf32, #tpu.memory_space<vmem>>, %arg3: memref<1x64xf32, #tpu.memory_space<vmem>>, %arg4: memref<1x64xf32, #tpu.memory_space<vmem>>, %arg5: memref<64x512xbf16, #tpu.memory_space<vmem>>, %arg6: memref<1x512xf32, #tpu.memory_space<vmem>>, %arg7: memref<64x512xf32, #tpu.memory_space<vmem>>) attributes {dimension_semantics = [#tpu.dimension_semantics<parallel>, #tpu.dimension_semantics<parallel>], iteration_bounds = array<i64: 1, 1>, scalar_prefetch = 0 : i64, scratch_operands = 0 : i64, tpu.core_type = #tpu.core_type<tc>, window_params = [{transform_indices = @transform_0, window_bounds = array<i64: 64, 64>}, {pipeline_mode = #tpu.pipeline_mode<synchronous>, transform_indices = @transform_1, window_bounds = array<i64: 1, 64>}, {pipeline_mode = #tpu.pipeline_mode<synchronous>, transform_indices = @transform_2, window_bounds = array<i64: 1, 64>}, {transform_indices = @transform_3, window_bounds = array<i64: 64, 512>}, {transform_indices = @transform_4, window_bounds = array<i64: 1, 512>}, {transform_indices = @transform_5, window_bounds = array<i64: 64, 512>}]} {
    %c0 = arith.constant 0 : index
    %c0_0 = arith.constant 0 : index
    %0 = vector.load %arg2[%c0, %c0_0] : memref<64x64xf32, #tpu.memory_space<vmem>>, vector<64x64xf32>
    %cst = arith.constant dense<0.000000e+00> : vector<64xf32>
    %1 = vector.multi_reduction <add>, %0, %cst [1] : vector<64x64xf32> to vector<64xf32>
    %2 = vector.shape_cast %1 : vector<64xf32> to vector<64x1xf32>
    %cst_1 = arith.constant 6.400000e+01 : f32
    %3 = vector.broadcast %cst_1 : f32 to vector<64x1xf32>
    %4 = arith.divf %2, %3 : vector<64x1xf32>
    %5 = vector.broadcast %4 : vector<64x1xf32> to vector<64x64xf32>
    %6 = arith.subf %0, %5 : vector<64x64xf32>
    %7 = arith.mulf %6, %6 : vector<64x64xf32>
    %cst_2 = arith.constant dense<0.000000e+00> : vector<64xf32>
    %8 = vector.multi_reduction <add>, %7, %cst_2 [1] : vector<64x64xf32> to vector<64xf32>
    %9 = vector.shape_cast %8 : vector<64xf32> to vector<64x1xf32>
    %cst_3 = arith.constant 6.400000e+01 : f32
    %10 = vector.broadcast %cst_3 : f32 to vector<64x1xf32>
    %11 = arith.divf %9, %10 : vector<64x1xf32>
    %cst_4 = arith.constant 9.99999974E-6 : f32
    %12 = vector.broadcast %cst_4 : f32 to vector<64x1xf32>
    %13 = arith.addf %11, %12 : vector<64x1xf32>
    %14 = math.rsqrt %13 : vector<64x1xf32>
    %15 = vector.broadcast %14 : vector<64x1xf32> to vector<64x64xf32>
    %16 = arith.mulf %6, %15 : vector<64x64xf32>
    %c0_5 = arith.constant 0 : index
    %c0_6 = arith.constant 0 : index
    %17 = vector.load %arg3[%c0_5, %c0_6] : memref<1x64xf32, #tpu.memory_space<vmem>>, vector<1x64xf32>
    %18 = vector.broadcast %17 : vector<1x64xf32> to vector<64x64xf32>
    %19 = arith.mulf %16, %18 : vector<64x64xf32>
    %c0_7 = arith.constant 0 : index
    %c0_8 = arith.constant 0 : index
    %20 = vector.load %arg4[%c0_7, %c0_8] : memref<1x64xf32, #tpu.memory_space<vmem>>, vector<1x64xf32>
    %21 = vector.broadcast %20 : vector<1x64xf32> to vector<64x64xf32>
    %22 = arith.addf %19, %21 : vector<64x64xf32>
    %23 = arith.truncf %22 : vector<64x64xf32> to vector<64x64xbf16>
    %c0_9 = arith.constant 0 : index
    %c0_10 = arith.constant 0 : index
    %24 = vector.load %arg5[%c0_9, %c0_10] : memref<64x512xbf16, #tpu.memory_space<vmem>>, vector<64x512xbf16>
    %cst_11 = arith.constant dense<0.000000e+00> : vector<64x512xf32>
    %25 = tpu.matmul %23, %24, %cst_11 {dimension_numbers = #tpu.dot_dimension_numbers<[1], [0], [0], [1], [0, 0, 1, 1], [], []>} : vector<64x64xbf16>, vector<64x512xbf16>, vector<64x512xf32> -> vector<64x512xf32>
    %c0_12 = arith.constant 0 : index
    %c0_13 = arith.constant 0 : index
    %26 = vector.load %arg6[%c0_12, %c0_13] : memref<1x512xf32, #tpu.memory_space<vmem>>, vector<1x512xf32>
    %27 = vector.broadcast %26 : vector<1x512xf32> to vector<64x512xf32>
    %28 = arith.addf %25, %27 : vector<64x512xf32>
    %c0_14 = arith.constant 0 : index
    %c0_15 = arith.constant 0 : index
    %29 = vector.load %arg7[%c0_14, %c0_15] : memref<64x512xf32, #tpu.memory_space<vmem>>, vector<64x512xf32>
    tpu.vector_store %arg7[%c0_14, %c0_15], %28 {strides = array<i32>} : memref<64x512xf32, #tpu.memory_space<vmem>>, vector<64x512xf32>,
    return
  }
  func.func @transform_0(%arg0: i32, %arg1: i32) -> (i32, i32) {
    %c0_i32 = arith.constant 0 : i32
    %c0_i32_0 = arith.constant 0 : i32
    return %arg1, %c0_i32 : i32, i32
  }
  func.func @transform_1(%arg0: i32, %arg1: i32) -> (i32, i32) {
    %c0_i32 = arith.constant 0 : i32
    %c0_i32_0 = arith.constant 0 : i32
    %c0_i32_1 = arith.constant 0 : i32
    return %c0_i32, %c0_i32_0 : i32, i32
  }
  func.func @transform_2(%arg0: i32, %arg1: i32) -> (i32, i32) {
    %c0_i32 = arith.constant 0 : i32
    %c0_i32_0 = arith.constant 0 : i32
    %c0_i32_1 = arith.constant 0 : i32
    return %c0_i32, %c0_i32_0 : i32, i32
  }
  func.func @transform_3(%arg0: i32, %arg1: i32) -> (i32, i32) {
    %c0_i32 = arith.constant 0 : i32
    %c0_i32_0 = arith.constant 0 : i32
    return %c0_i32, %arg0 : i32, i32
  }
  func.func @transform_4(%arg0: i32, %arg1: i32) -> (i32, i32) {
    %c0_i32 = arith.constant 0 : i32
    %c0_i32_0 = arith.constant 0 : i32
    return %c0_i32, %arg0 : i32, i32
  }
  func.func @transform_5(%arg0: i32, %arg1: i32) -> (i32, i32) {
    %c0_i32 = arith.constant 0 : i32
    return %arg1, %arg0 : i32, i32
  }
}

</mosaic_0001>

<bundles_post_ra>
// kernel: squeeze.68
= control target key start
LH: loop header
LB: loop body
LE: loop exit
PB: predicated region body
PF: predicated region fallthrough
CT: control target
= control target key end

     0   :  { %s1180_s10 = smov 112   ;;  %vm3_vm0 = vcmask 130048   ;;  %s1748_s0 = inlined_call_operand.vmem [shape: f32[2,32,1,4,16], index: 0, kind: input, shape index: {}]   ;;  %s1749_s1 = inlined_call_operand.vmem [shape: f32[2,2,16,4,16], index: 1, kind: output, shape index: {}]  }
   0x1   :  { %v111_v0 = vld [vmem:[%s1748_s0] sm:$0xff]   ;;  %v1038_v1 = vld [vmem:[%s1748_s0 + $0x10] sm:$0xff]   ;;  %v1037_v3 = vld [vmem:[%s1748_s0 + $0x8] sm:$0xff]  }
   0x2   :  { %112 = vrot.lane.b32.xlu0 %v111_v0, %s1180_s10  ;;  %130 = vrot.lane.b32.xlu1 %v1038_v1, %s1180_s10  ;;  %v1040_v2 = vld [vmem:[%s1748_s0 + $0x20] sm:$0xff]   ;;  %v1039_v4 = vld [vmem:[%s1748_s0 + $0x18] sm:$0xff]   ;;  %4 = vst.msk [vmem:[#allocation0] ss:$8 sm:$0xf] %vm3_vm0, %v111_v0  }
   0x3   :  { %148 = vrot.lane.b32.xlu2 %v1040_v2, %s1180_s10  ;;  %v1041_v5 = vld [vmem:[%s1748_s0 + $0x28] sm:$0xff]   ;;  %v1042_v6 = vld [vmem:[%s1748_s0 + $0x30] sm:$0xff]   ;;  %v1043_v7 = vld [vmem:[%s1748_s0 + $0x38] sm:$0xff]   ;;  %5 = vst.msk [vmem:[#allocation0] ss:$8 sm:$0xf0] %vm3_vm0, %v111_v0  }
   0x4   :  { %v1044_v8 = vld [vmem:[%s1748_s0 + $0x40] sm:$0xff]   ;;  %v1045_v9 = vld [vmem:[%s1748_s0 + $0x48] sm:$0xff]   ;;  %v1233_v10 = vld [vmem:[%s1748_s0 + $0x50] sm:$0xff]   ;;  %31 = vst.msk [vmem:[#allocation0 + $0x100] ss:$8 sm:$0xf] %vm3_vm0, %v1040_v2  }
   0x5   :  { %v1047_v11 = vld [vmem:[%s1748_s0 + $0x58] sm:$0xff]   ;;  %v1245_v12 = vld [vmem:[%s1748_s0 + $0x60] sm:$0xff]   ;;  %v1250_v13 = vld [vmem:[%s1748_s0 + $0x68] sm:$0xff]   ;;  %33 = vst.msk [vmem:[#allocation0 + $0x100] ss:$8 sm:$0xf0] %vm3_vm0, %v1040_v2  }
   0x6   :  { %v1255_v14 = vld [vmem:[%s1748_s0 + $0x70] sm:$0xff]   ;;  %v1266_v15 = vld [vmem:[%s1748_s0 + $0x78] sm:$0xff]   ;;  %17 = vst.msk [vmem:[#allocation0 + $0x80] ss:$8 sm:$0xf] %vm3_vm0, %v1038_v1  }
   0x7   :  { %19 = vst.msk [vmem:[#allocation0 + $0x80] ss:$8 sm:$0xf0] %vm3_vm0, %v1038_v1  }
   0x8   :  { %10 = vst.msk [vmem:[#allocation0 + $0x40] ss:$8 sm:$0xf] %vm3_vm0, %v1037_v3  }
   0x9   :  { %12 = vst.msk [vmem:[#allocation0 + $0x40] ss:$8 sm:$0xf0] %vm3_vm0, %v1037_v3  }
   0xa   :  { %121 = vrot.lane.b32.xlu0 %v1037_v3, %s1180_s10  ;;  %139 = vrot.lane.b32.xlu1 %v1039_v4, %s1180_s10  ;;  %38 = vst.msk [vmem:[#allocation0 + $0x140] ss:$8 sm:$0xf] %vm3_vm0, %v1041_v5  }
   0xb   :  { %157 = vrot.lane.b32.xlu2 %v1041_v5, %s1180_s10  ;;  %40 = vst.msk [vmem:[#allocation0 + $0x140] ss:$8 sm:$0xf0] %vm3_vm0, %v1041_v5  }
   0xc   :  { %24 = vst.msk [vmem:[#allocation0 + $0xc0] ss:$8 sm:$0xf] %vm3_vm0, %v1039_v4  }
   0xd   :  { %26 = vst.msk [vmem:[#allocation0 + $0xc0] ss:$8 sm:$0xf0] %vm3_vm0, %v1039_v4  }
   0xe   :  { %45 = vst.msk [vmem:[#allocation0 + $0x180] ss:$8 sm:$0xf] %vm3_vm0, %v1042_v6  }
   0xf   :  { %47 = vst.msk [vmem:[#allocation0 + $0x180] ss:$8 sm:$0xf0] %vm3_vm0, %v1042_v6  }
  0x10   :  { %59 = vst.msk [vmem:[#allocation0 + $0x200] ss:$8 sm:$0xf] %vm3_vm0, %v1044_v8  }
  0x11   :  { %61 = vst.msk [vmem:[#allocation0 + $0x200] ss:$8 sm:$0xf0] %vm3_vm0, %v1044_v8  }
  0x12   :  { %166 = vrot.lane.b32.xlu0 %v1042_v6, %s1180_s10  ;;  %175 = vrot.lane.b32.xlu1 %v1043_v7, %s1180_s10  ;;  %52 = vst.msk [vmem:[#allocation0 + $0x1c0] ss:$8 sm:$0xf] %vm3_vm0, %v1043_v7  }
  0x13   :  { %184 = vrot.lane.b32.xlu2 %v1044_v8, %s1180_s10  ;;  %54 = vst.msk [vmem:[#allocation0 + $0x1c0] ss:$8 sm:$0xf0] %vm3_vm0, %v1043_v7  }
  0x14   :  { %66 = vst.msk [vmem:[#allocation0 + $0x240] ss:$8 sm:$0xf] %vm3_vm0, %v1045_v9  }
  0x15   :  { %68 = vst.msk [vmem:[#allocation0 + $0x240] ss:$8 sm:$0xf0] %vm3_vm0, %v1045_v9  }
  0x16   :  { %80 = vst.msk [vmem:[#allocation0 + $0x2c0] ss:$8 sm:$0xf] %vm3_vm0, %v1047_v11  }
  0x17   :  { %82 = vst.msk [vmem:[#allocation0 + $0x2c0] ss:$8 sm:$0xf0] %vm3_vm0, %v1047_v11  }
  0x18   :  { %73 = vst.msk [vmem:[#allocation0 + $0x280] ss:$8 sm:$0xf] %vm3_vm0, %v1233_v10  }
  0x19   :  { %75 = vst.msk [vmem:[#allocation0 + $0x280] ss:$8 sm:$0xf0] %vm3_vm0, %v1233_v10  }
  0x1a   :  { %193 = vrot.lane.b32.xlu0 %v1045_v9, %s1180_s10  ;;  %202 = vrot.lane.b32.xlu1 %v1233_v10, %s1180_s10  ;;  %87 = vst.msk [vmem:[#allocation0 + $0x300] ss:$8 sm:$0xf] %vm3_vm0, %v1245_v12  }
  0x1b   :  { %211 = vrot.lane.b32.xlu2 %v1047_v11, %s1180_s10  ;;  %89 = vst.msk [vmem:[#allocation0 + $0x300] ss:$8 sm:$0xf0] %vm3_vm0, %v1245_v12  }
  0x1c   :  { %101 = vst.msk [vmem:[#allocation0 + $0x380] ss:$8 sm:$0xf] %vm3_vm0, %v1255_v14  }
  0x1d   :  { %103 = vst.msk [vmem:[#allocation0 + $0x380] ss:$8 sm:$0xf0] %vm3_vm0, %v1255_v14  }
  0x1e   :  { %94 = vst.msk [vmem:[#allocation0 + $0x340] ss:$8 sm:$0xf] %vm3_vm0, %v1250_v13  }
  0x1f   :  { %96 = vst.msk [vmem:[#allocation0 + $0x340] ss:$8 sm:$0xf0] %vm3_vm0, %v1250_v13  }
  0x20   :  { %108 = vst.msk [vmem:[#allocation0 + $0x3c0] ss:$8 sm:$0xf] %vm3_vm0, %v1266_v15  }
  0x21   :  { %110 = vst.msk [vmem:[#allocation0 + $0x3c0] ss:$8 sm:$0xf0] %vm3_vm0, %v1266_v15  }
  0x22   :  { %220 = vrot.lane.b32.xlu0 %v1245_v12, %s1180_s10  ;;  %229 = vrot.lane.b32.xlu1 %v1250_v13, %s1180_s10 }
  0x23   :  { %238 = vrot.lane.b32.xlu2 %v1255_v14, %s1180_s10 }
  0x2a   :  { %247 = vrot.lane.b32.xlu0 %v1266_v15, %s1180_s10 }
  0x5d   :  { %v149_v16 = vpop.permute.xlu2 %148  }
  0x5e   :  { %152 = vst.msk [vmem:[#allocation0 + $0x101] ss:$8 sm:$0xf] %vm3_vm0, %v149_v16  }
  0x5f   :  { %154 = vst.msk [vmem:[#allocation0 + $0x101] ss:$8 sm:$0xf0] %vm3_vm0, %v149_v16  }
  0x65   :  { %v447_v17 = vld [vmem:[#allocation0 + $0x100] sm:$0x3]  ;;  %v453_v18 = vld [vmem:[#allocation0 + $0x108] sm:$0x3]  ;;  %v459_v19 = vld [vmem:[#allocation0 + $0x110] sm:$0x3]  ;;  %v158_v27 = vpop.permute.xlu2 %157  }
  0x66   :  { %1083 = vst [vmem:[%s1749_s1 + $0x40] sm:$0x3] %v447_v17  ;;  %v465_v20 = vld [vmem:[#allocation0 + $0x118] sm:$0x3]  ;;  %v471_v21 = vld [vmem:[#allocation0 + $0x120] sm:$0x3] }
  0x67   :  { %1084 = vst [vmem:[%s1749_s1 + $0x42] sm:$0x3] %v453_v18  ;;  %v477_v22 = vld [vmem:[#allocation0 + $0x128] sm:$0x3]  ;;  %v483_v23 = vld [vmem:[#allocation0 + $0x130] sm:$0x3] }
  0x68   :  { %1085 = vst [vmem:[%s1749_s1 + $0x44] sm:$0x3] %v459_v19  ;;  %v489_v24 = vld [vmem:[#allocation0 + $0x138] sm:$0x3] }
  0x69   :  { %1086 = vst [vmem:[%s1749_s1 + $0x46] sm:$0x3] %v465_v20 }
  0x6a   :  { %1087 = vst [vmem:[%s1749_s1 + $0x48] sm:$0x3] %v471_v21 }
  0x6b   :  { %1088 = vst [vmem:[%s1749_s1 + $0x4a] sm:$0x3] %v477_v22 }
  0x6c   :  { %1089 = vst [vmem:[%s1749_s1 + $0x4c] sm:$0x3] %v483_v23 }
  0x6d   :  { %1090 = vst [vmem:[%s1749_s1 + $0x4e] sm:$0x3] %v489_v24  ;;  %v185_v53 = vpop.permute.xlu2 %184  }
  0x6e   :  { %161 = vst.msk [vmem:[#allocation0 + $0x141] ss:$8 sm:$0xf] %vm3_vm0, %v158_v27  }
  0x6f   :  { %163 = vst.msk [vmem:[#allocation0 + $0x141] ss:$8 sm:$0xf0] %vm3_vm0, %v158_v27  }
  0x70   :  { %188 = vst.msk [vmem:[#allocation0 + $0x201] ss:$8 sm:$0xf] %vm3_vm0, %v185_v53  }
  0x71   :  { %190 = vst.msk [vmem:[#allocation0 + $0x201] ss:$8 sm:$0xf0] %vm3_vm0, %v185_v53  }
  0x74   :  { %v113_v25 = vpop.permute.xlu0 %112   ;;  %v131_v26 = vpop.permute.xlu1 %130  }
  0x75   :  { %116 = vst.msk [vmem:[#allocation0 + $0x1] ss:$8 sm:$0xf] %vm3_vm0, %v113_v25   ;;  %v495_v57 = vld [vmem:[#allocation0 + $0x140] sm:$0x3]  ;;  %v212_v22 = vpop.permute.xlu2 %211  }
  0x76   :  { %118 = vst.msk [vmem:[#allocation0 + $0x1] ss:$8 sm:$0xf0] %vm3_vm0, %v113_v25   ;;  %v501_v58 = vld [vmem:[#allocation0 + $0x148] sm:$0x3] }
  0x77   :  { %134 = vst.msk [vmem:[#allocation0 + $0x81] ss:$8 sm:$0xf] %vm3_vm0, %v131_v26   ;;  %v507_v59 = vld [vmem:[#allocation0 + $0x150] sm:$0x3] }
  0x78   :  { %136 = vst.msk [vmem:[#allocation0 + $0x81] ss:$8 sm:$0xf0] %vm3_vm0, %v131_v26   ;;  %v513_v60 = vld [vmem:[#allocation0 + $0x158] sm:$0x3] }
  0x79   :  { %1091 = vst [vmem:[%s1749_s1 + $0x50] sm:$0x3] %v495_v57  ;;  %v519_v61 = vld [vmem:[#allocation0 + $0x160] sm:$0x3]  ;;  %v525_v62 = vld [vmem:[#allocation0 + $0x168] sm:$0x3] }
  0x7a   :  { %1092 = vst [vmem:[%s1749_s1 + $0x52] sm:$0x3] %v501_v58  ;;  %v531_v63 = vld [vmem:[#allocation0 + $0x170] sm:$0x3]  ;;  %v537_v0 = vld [vmem:[#allocation0 + $0x178] sm:$0x3] }
  0x7b   :  { %1093 = vst [vmem:[%s1749_s1 + $0x54] sm:$0x3] %v507_v59  ;;  %v639_v24 = vld [vmem:[#allocation0 + $0x200] sm:$0x3]  ;;  %v645_v25 = vld [vmem:[#allocation0 + $0x208] sm:$0x3] }
  0x7c   :  { %v256_v28 = vld [vmem:[#allocation0] sm:$0x3]  ;;  %v261_v29 = vld [vmem:[#allocation0 + $0x8] sm:$0x3]  ;;  %v267_v30 = vld [vmem:[#allocation0 + $0x10] sm:$0x3]  ;;  %v122_v31 = vpop.permute.xlu0 %121   ;;  %v140_v32 = vpop.permute.xlu1 %139  }
  0x7d   :  { %259 = vst [vmem:[%s1749_s1] sm:$0x3] %v256_v28  ;;  %v273_v33 = vld [vmem:[#allocation0 + $0x18] sm:$0x3]  ;;  %v279_v34 = vld [vmem:[#allocation0 + $0x20] sm:$0x3] }
  0x7e   :  { %1052 = vst [vmem:[%s1749_s1 + $0x2] sm:$0x3] %v261_v29  ;;  %v285_v35 = vld [vmem:[#allocation0 + $0x28] sm:$0x3]  ;;  %v291_v36 = vld [vmem:[#allocation0 + $0x30] sm:$0x3] }
  0x7f   :  { %1053 = vst [vmem:[%s1749_s1 + $0x4] sm:$0x3] %v267_v30  ;;  %v297_v37 = vld [vmem:[#allocation0 + $0x38] sm:$0x3]  ;;  %v351_v38 = vld [vmem:[#allocation0 + $0x80] sm:$0x3] }
  0x80   :  { %1054 = vst [vmem:[%s1749_s1 + $0x6] sm:$0x3] %v273_v33  ;;  %v357_v39 = vld [vmem:[#allocation0 + $0x88] sm:$0x3]  ;;  %v363_v40 = vld [vmem:[#allocation0 + $0x90] sm:$0x3] }
  0x81   :  { %1055 = vst [vmem:[%s1749_s1 + $0x8] sm:$0x3] %v279_v34  ;;  %v369_v42 = vld [vmem:[#allocation0 + $0x98] sm:$0x3]  ;;  %v375_v43 = vld [vmem:[#allocation0 + $0xa0] sm:$0x3] }
  0x82   :  { %1056 = vst [vmem:[%s1749_s1 + $0xa] sm:$0x3] %v285_v35  ;;  %v381_v44 = vld [vmem:[#allocation0 + $0xa8] sm:$0x3]  ;;  %v387_v45 = vld [vmem:[#allocation0 + $0xb0] sm:$0x3] }
  0x83   :  { %1057 = vst [vmem:[%s1749_s1 + $0xc] sm:$0x3] %v291_v36  ;;  %v393_v46 = vld [vmem:[#allocation0 + $0xb8] sm:$0x3]  ;;  %v651_v26 = vld [vmem:[#allocation0 + $0x210] sm:$0x3] }
  0x84   :  { %1058 = vst [vmem:[%s1749_s1 + $0xe] sm:$0x3] %v297_v37  ;;  %v1350_v41 = vpop.permute.xlu0 %166   ;;  %v1396_v55 = vpop.permute.xlu1 %175   ;;  %v657_v27 = vld [vmem:[#allocation0 + $0x218] sm:$0x3]  ;;  %v663_v28 = vld [vmem:[#allocation0 + $0x220] sm:$0x3] }
  0x85   :  { %1067 = vst [vmem:[%s1749_s1 + $0x20] sm:$0x3] %v351_v38  ;;  %v669_v29 = vld [vmem:[#allocation0 + $0x228] sm:$0x3]  ;;  %v675_v30 = vld [vmem:[#allocation0 + $0x230] sm:$0x3] }
  0x86   :  { %1068 = vst [vmem:[%s1749_s1 + $0x22] sm:$0x3] %v357_v39 }
  0x87   :  { %1069 = vst [vmem:[%s1749_s1 + $0x24] sm:$0x3] %v363_v40 }
  0x88   :  { %1070 = vst [vmem:[%s1749_s1 + $0x26] sm:$0x3] %v369_v42 }
  0x89   :  { %1071 = vst [vmem:[%s1749_s1 + $0x28] sm:$0x3] %v375_v43 }
  0x8a   :  { %1072 = vst [vmem:[%s1749_s1 + $0x2a] sm:$0x3] %v381_v44 }
  0x8b   :  { %1073 = vst [vmem:[%s1749_s1 + $0x2c] sm:$0x3] %v387_v45 }
  0x8c   :  { %1074 = vst [vmem:[%s1749_s1 + $0x2e] sm:$0x3] %v393_v46  ;;  %v194_v8 = vpop.permute.xlu0 %193   ;;  %v1486_v23 = vpop.permute.xlu1 %202  }
  0x8d   :  { %125 = vst.msk [vmem:[#allocation0 + $0x41] ss:$8 sm:$0xf] %vm3_vm0, %v122_v31  }
  0x8e   :  { %127 = vst.msk [vmem:[#allocation0 + $0x41] ss:$8 sm:$0xf0] %vm3_vm0, %v122_v31   ;;  %v681_v31 = vld [vmem:[#allocation0 + $0x238] sm:$0x3] }
  0x8f   :  { %143 = vst.msk [vmem:[#allocation0 + $0xc1] ss:$8 sm:$0xf] %vm3_vm0, %v140_v32  }
  0x90   :  { %145 = vst.msk [vmem:[#allocation0 + $0xc1] ss:$8 sm:$0xf0] %vm3_vm0, %v140_v32  }
  0x91   :  { %170 = vst.msk [vmem:[#allocation0 + $0x181] ss:$8 sm:$0xf] %vm3_vm0, %v1350_v41  }
  0x92   :  { %1094 = vst [vmem:[%s1749_s1 + $0x56] sm:$0x3] %v513_v60 }
  0x93   :  { %1095 = vst [vmem:[%s1749_s1 + $0x58] sm:$0x3] %v519_v61 }
  0x94   :  { %v303_v47 = vld [vmem:[#allocation0 + $0x40] sm:$0x3]  ;;  %v309_v48 = vld [vmem:[#allocation0 + $0x48] sm:$0x3]  ;;  %v315_v49 = vld [vmem:[#allocation0 + $0x50] sm:$0x3]  ;;  %v1517_v32 = vpop.permute.xlu0 %220  }
  0x95   :  { %1059 = vst [vmem:[%s1749_s1 + $0x10] sm:$0x3] %v303_v47  ;;  %v321_v50 = vld [vmem:[#allocation0 + $0x58] sm:$0x3]  ;;  %v327_v51 = vld [vmem:[#allocation0 + $0x60] sm:$0x3] }
  0x96   :  { %1060 = vst [vmem:[%s1749_s1 + $0x12] sm:$0x3] %v309_v48  ;;  %v333_v52 = vld [vmem:[#allocation0 + $0x68] sm:$0x3]  ;;  %v339_v54 = vld [vmem:[#allocation0 + $0x70] sm:$0x3] }
  0x97   :  { %1061 = vst [vmem:[%s1749_s1 + $0x14] sm:$0x3] %v315_v49  ;;  %v345_v56 = vld [vmem:[#allocation0 + $0x78] sm:$0x3]  ;;  %v399_v1 = vld [vmem:[#allocation0 + $0xc0] sm:$0x3] }
  0x98   :  { %1062 = vst [vmem:[%s1749_s1 + $0x16] sm:$0x3] %v321_v50  ;;  %v405_v2 = vld [vmem:[#allocation0 + $0xc8] sm:$0x3]  ;;  %v411_v3 = vld [vmem:[#allocation0 + $0xd0] sm:$0x3] }
  0x99   :  { %1063 = vst [vmem:[%s1749_s1 + $0x18] sm:$0x3] %v327_v51  ;;  %v417_v4 = vld [vmem:[#allocation0 + $0xd8] sm:$0x3]  ;;  %v423_v5 = vld [vmem:[#allocation0 + $0xe0] sm:$0x3] }
  0x9a   :  { %1064 = vst [vmem:[%s1749_s1 + $0x1a] sm:$0x3] %v333_v52  ;;  %v429_v6 = vld [vmem:[#allocation0 + $0xe8] sm:$0x3]  ;;  %v435_v7 = vld [vmem:[#allocation0 + $0xf0] sm:$0x3] }
  0x9b   :  { %1065 = vst [vmem:[%s1749_s1 + $0x1c] sm:$0x3] %v339_v54  ;;  %v441_v9 = vld [vmem:[#allocation0 + $0xf8] sm:$0x3]  ;;  %v543_v10 = vld [vmem:[#allocation0 + $0x180] sm:$0x3] }
  0x9c   :  { %1066 = vst [vmem:[%s1749_s1 + $0x1e] sm:$0x3] %v345_v56  ;;  %v549_v11 = vld [vmem:[#allocation0 + $0x188] sm:$0x3]  ;;  %v555_v16 = vld [vmem:[#allocation0 + $0x190] sm:$0x3]  ;;  %v1581_v56 = vpop.permute.xlu1 %229  }
  0x9d   :  { %1096 = vst [vmem:[%s1749_s1 + $0x5a] sm:$0x3] %v525_v62  ;;  %v561_v17 = vld [vmem:[#allocation0 + $0x198] sm:$0x3] }
  0x9e   :  { %1097 = vst [vmem:[%s1749_s1 + $0x5c] sm:$0x3] %v531_v63 }
  0x9f   :  { %1098 = vst [vmem:[%s1749_s1 + $0x5e] sm:$0x3] %v537_v0 }
  0xa0   :  { %1075 = vst [vmem:[%s1749_s1 + $0x30] sm:$0x3] %v399_v1 }
  0xa1   :  { %1076 = vst [vmem:[%s1749_s1 + $0x32] sm:$0x3] %v405_v2  ;;  %v248_v2 = vpop.permute.xlu0 %247  }
  0xa2   :  { %1077 = vst [vmem:[%s1749_s1 + $0x34] sm:$0x3] %v411_v3 }
  0xa3   :  { %1078 = vst [vmem:[%s1749_s1 + $0x36] sm:$0x3] %v417_v4 }
  0xa4   :  { %1079 = vst [vmem:[%s1749_s1 + $0x38] sm:$0x3] %v423_v5 }
  0xa5   :  { %1080 = vst [vmem:[%s1749_s1 + $0x3a] sm:$0x3] %v429_v6 }
  0xa6   :  { %1081 = vst [vmem:[%s1749_s1 + $0x3c] sm:$0x3] %v435_v7 }
  0xa7   :  { %1082 = vst [vmem:[%s1749_s1 + $0x3e] sm:$0x3] %v441_v9 }
  0xa8   :  { %172 = vst.msk [vmem:[#allocation0 + $0x181] ss:$8 sm:$0xf0] %vm3_vm0, %v1350_v41  }
  0xa9   :  { %1099 = vst [vmem:[%s1749_s1 + $0x60] sm:$0x3] %v543_v10 }
  0xaa   :  { %1100 = vst [vmem:[%s1749_s1 + $0x62] sm:$0x3] %v549_v11 }
  0xab   :  { %1101 = vst [vmem:[%s1749_s1 + $0x64] sm:$0x3] %v555_v16 }
  0xac   :  { %1102 = vst [vmem:[%s1749_s1 + $0x66] sm:$0x3] %v561_v17 }
  0xad   :  { %1115 = vst [vmem:[%s1749_s1 + $0x80] sm:$0x3] %v639_v24 }
  0xae   :  { %1116 = vst [vmem:[%s1749_s1 + $0x82] sm:$0x3] %v645_v25 }
  0xaf   :  { %v567_v18 = vld [vmem:[#allocation0 + $0x1a0] sm:$0x3]  ;;  %v573_v19 = vld [vmem:[#allocation0 + $0x1a8] sm:$0x3]  ;;  %v579_v20 = vld [vmem:[#allocation0 + $0x1b0] sm:$0x3] }
  0xb0   :  { %1103 = vst [vmem:[%s1749_s1 + $0x68] sm:$0x3] %v567_v18  ;;  %v585_v21 = vld [vmem:[#allocation0 + $0x1b8] sm:$0x3] }
  0xb1   :  { %1104 = vst [vmem:[%s1749_s1 + $0x6a] sm:$0x3] %v573_v19 }
  0xb2   :  { %1105 = vst [vmem:[%s1749_s1 + $0x6c] sm:$0x3] %v579_v20 }
  0xb3   :  { %1106 = vst [vmem:[%s1749_s1 + $0x6e] sm:$0x3] %v585_v21 }
  0xb4   :  { %1117 = vst [vmem:[%s1749_s1 + $0x84] sm:$0x3] %v651_v26 }
  0xb5   :  { %1118 = vst [vmem:[%s1749_s1 + $0x86] sm:$0x3] %v657_v27 }
  0xb6   :  { %1119 = vst [vmem:[%s1749_s1 + $0x88] sm:$0x3] %v663_v28 }
  0xb7   :  { %1120 = vst [vmem:[%s1749_s1 + $0x8a] sm:$0x3] %v669_v29 }
  0xb8   :  { %1121 = vst [vmem:[%s1749_s1 + $0x8c] sm:$0x3] %v675_v30 }
  0xb9   :  { %1122 = vst [vmem:[%s1749_s1 + $0x8e] sm:$0x3] %v681_v31 }
  0xba   :  { %179 = vst.msk [vmem:[#allocation0 + $0x1c1] ss:$8 sm:$0xf] %vm3_vm0, %v1396_v55  }
  0xbb   :  { %181 = vst.msk [vmem:[#allocation0 + $0x1c1] ss:$8 sm:$0xf0] %vm3_vm0, %v1396_v55   ;;  %v239_v55 = vpop.permute.xlu2 %238  }
  0xbc   :  { %197 = vst.msk [vmem:[#allocation0 + $0x241] ss:$8 sm:$0xf] %vm3_vm0, %v194_v8  }
  0xbd   :  { %199 = vst.msk [vmem:[#allocation0 + $0x241] ss:$8 sm:$0xf0] %vm3_vm0, %v194_v8  }
  0xbe   :  { %215 = vst.msk [vmem:[#allocation0 + $0x2c1] ss:$8 sm:$0xf] %vm3_vm0, %v212_v22  }
  0xbf   :  { %217 = vst.msk [vmem:[#allocation0 + $0x2c1] ss:$8 sm:$0xf0] %vm3_vm0, %v212_v22  }
  0xc0   :  { %206 = vst.msk [vmem:[#allocation0 + $0x281] ss:$8 sm:$0xf] %vm3_vm0, %v1486_v23  }
  0xc1   :  { %v591_v33 = vld [vmem:[#allocation0 + $0x1c0] sm:$0x3]  ;;  %v597_v34 = vld [vmem:[#allocation0 + $0x1c8] sm:$0x3]  ;;  %v603_v35 = vld [vmem:[#allocation0 + $0x1d0] sm:$0x3] }
  0xc2   :  { %1107 = vst [vmem:[%s1749_s1 + $0x70] sm:$0x3] %v591_v33  ;;  %v609_v36 = vld [vmem:[#allocation0 + $0x1d8] sm:$0x3]  ;;  %v615_v37 = vld [vmem:[#allocation0 + $0x1e0] sm:$0x3] }
  0xc3   :  { %1108 = vst [vmem:[%s1749_s1 + $0x72] sm:$0x3] %v597_v34  ;;  %v621_v38 = vld [vmem:[#allocation0 + $0x1e8] sm:$0x3]  ;;  %v627_v39 = vld [vmem:[#allocation0 + $0x1f0] sm:$0x3] }
  0xc4   :  { %1109 = vst [vmem:[%s1749_s1 + $0x74] sm:$0x3] %v603_v35  ;;  %v633_v40 = vld [vmem:[#allocation0 + $0x1f8] sm:$0x3]  ;;  %v687_v41 = vld [vmem:[#allocation0 + $0x240] sm:$0x3] }
  0xc5   :  { %1110 = vst [vmem:[%s1749_s1 + $0x76] sm:$0x3] %v609_v36  ;;  %v693_v42 = vld [vmem:[#allocation0 + $0x248] sm:$0x3]  ;;  %v699_v43 = vld [vmem:[#allocation0 + $0x250] sm:$0x3] }
  0xc6   :  { %1111 = vst [vmem:[%s1749_s1 + $0x78] sm:$0x3] %v615_v37  ;;  %v705_v44 = vld [vmem:[#allocation0 + $0x258] sm:$0x3]  ;;  %v711_v45 = vld [vmem:[#allocation0 + $0x260] sm:$0x3] }
  0xc7   :  { %1112 = vst [vmem:[%s1749_s1 + $0x7a] sm:$0x3] %v621_v38  ;;  %v717_v46 = vld [vmem:[#allocation0 + $0x268] sm:$0x3]  ;;  %v723_v47 = vld [vmem:[#allocation0 + $0x270] sm:$0x3] }
  0xc8   :  { %1113 = vst [vmem:[%s1749_s1 + $0x7c] sm:$0x3] %v627_v39  ;;  %v729_v48 = vld [vmem:[#allocation0 + $0x278] sm:$0x3]  ;;  %v783_v49 = vld [vmem:[#allocation0 + $0x2c0] sm:$0x3] }
  0xc9   :  { %1114 = vst [vmem:[%s1749_s1 + $0x7e] sm:$0x3] %v633_v40  ;;  %v789_v50 = vld [vmem:[#allocation0 + $0x2c8] sm:$0x3]  ;;  %v795_v51 = vld [vmem:[#allocation0 + $0x2d0] sm:$0x3] }
  0xca   :  { %1123 = vst [vmem:[%s1749_s1 + $0x90] sm:$0x3] %v687_v41  ;;  %v801_v52 = vld [vmem:[#allocation0 + $0x2d8] sm:$0x3]  ;;  %v807_v53 = vld [vmem:[#allocation0 + $0x2e0] sm:$0x3] }
  0xcb   :  { %1124 = vst [vmem:[%s1749_s1 + $0x92] sm:$0x3] %v693_v42  ;;  %v813_v54 = vld [vmem:[#allocation0 + $0x2e8] sm:$0x3]  ;;  %v819_v57 = vld [vmem:[#allocation0 + $0x2f0] sm:$0x3] }
  0xcc   :  { %1125 = vst [vmem:[%s1749_s1 + $0x94] sm:$0x3] %v699_v43  ;;  %v825_v58 = vld [vmem:[#allocation0 + $0x2f8] sm:$0x3]  ;;  %v735_v59 = vld [vmem:[#allocation0 + $0x280] sm:$0x3] }
  0xcd   :  { %1126 = vst [vmem:[%s1749_s1 + $0x96] sm:$0x3] %v705_v44  ;;  %v741_v60 = vld [vmem:[#allocation0 + $0x288] sm:$0x3]  ;;  %v747_v61 = vld [vmem:[#allocation0 + $0x290] sm:$0x3] }
  0xce   :  { %1127 = vst [vmem:[%s1749_s1 + $0x98] sm:$0x3] %v711_v45  ;;  %v753_v62 = vld [vmem:[#allocation0 + $0x298] sm:$0x3] }
  0xcf   :  { %1128 = vst [vmem:[%s1749_s1 + $0x9a] sm:$0x3] %v717_v46 }
  0xd0   :  { %1129 = vst [vmem:[%s1749_s1 + $0x9c] sm:$0x3] %v723_v47 }
  0xd1   :  { %1130 = vst [vmem:[%s1749_s1 + $0x9e] sm:$0x3] %v729_v48 }
  0xd2   :  { %1139 = vst [vmem:[%s1749_s1 + $0xb0] sm:$0x3] %v783_v49 }
  0xd3   :  { %1140 = vst [vmem:[%s1749_s1 + $0xb2] sm:$0x3] %v789_v50 }
  0xd4   :  { %1141 = vst [vmem:[%s1749_s1 + $0xb4] sm:$0x3] %v795_v51 }
  0xd5   :  { %1142 = vst [vmem:[%s1749_s1 + $0xb6] sm:$0x3] %v801_v52 }
  0xd6   :  { %1143 = vst [vmem:[%s1749_s1 + $0xb8] sm:$0x3] %v807_v53 }
  0xd7   :  { %1144 = vst [vmem:[%s1749_s1 + $0xba] sm:$0x3] %v813_v54 }
  0xd8   :  { %1145 = vst [vmem:[%s1749_s1 + $0xbc] sm:$0x3] %v819_v57 }
  0xd9   :  { %1146 = vst [vmem:[%s1749_s1 + $0xbe] sm:$0x3] %v825_v58 }
  0xda   :  { %208 = vst.msk [vmem:[#allocation0 + $0x281] ss:$8 sm:$0xf0] %vm3_vm0, %v1486_v23  }
  0xdb   :  { %1131 = vst [vmem:[%s1749_s1 + $0xa0] sm:$0x3] %v735_v59 }
  0xdc   :  { %1132 = vst [vmem:[%s1749_s1 + $0xa2] sm:$0x3] %v741_v60 }
  0xdd   :  { %1133 = vst [vmem:[%s1749_s1 + $0xa4] sm:$0x3] %v747_v61 }
  0xde   :  { %1134 = vst [vmem:[%s1749_s1 + $0xa6] sm:$0x3] %v753_v62 }
  0xdf   :  { %224 = vst.msk [vmem:[#allocation0 + $0x301] ss:$8 sm:$0xf] %vm3_vm0, %v1517_v32  }
  0xe0   :  { %226 = vst.msk [vmem:[#allocation0 + $0x301] ss:$8 sm:$0xf0] %vm3_vm0, %v1517_v32  }
  0xe1   :  { %v759_v12 = vld [vmem:[#allocation0 + $0x2a0] sm:$0x3]  ;;  %v765_v63 = vld [vmem:[#allocation0 + $0x2a8] sm:$0x3]  ;;  %v771_v0 = vld [vmem:[#allocation0 + $0x2b0] sm:$0x3] }
  0xe2   :  { %1135 = vst [vmem:[%s1749_s1 + $0xa8] sm:$0x3] %v759_v12  ;;  %v777_v1 = vld [vmem:[#allocation0 + $0x2b8] sm:$0x3] }
  0xe3   :  { %1136 = vst [vmem:[%s1749_s1 + $0xaa] sm:$0x3] %v765_v63 }
  0xe4   :  { %1137 = vst [vmem:[%s1749_s1 + $0xac] sm:$0x3] %v771_v0 }
  0xe5   :  { %1138 = vst [vmem:[%s1749_s1 + $0xae] sm:$0x3] %v777_v1 }
  0xe6   :  { %242 = vst.msk [vmem:[#allocation0 + $0x381] ss:$8 sm:$0xf] %vm3_vm0, %v239_v55   ;;  %v831_v14 = vld [vmem:[#allocation0 + $0x300] sm:$0x3] }
  0xe7   :  { %244 = vst.msk [vmem:[#allocation0 + $0x381] ss:$8 sm:$0xf0] %vm3_vm0, %v239_v55   ;;  %v837_v3 = vld [vmem:[#allocation0 + $0x308] sm:$0x3] }
  0xe8   :  { %v843_v4 = vld [vmem:[#allocation0 + $0x310] sm:$0x3]  ;;  %1147 = vst [vmem:[%s1749_s1 + $0xc0] sm:$0x3] %v831_v14  ;;  %v849_v5 = vld [vmem:[#allocation0 + $0x318] sm:$0x3] }
  0xe9   :  { %1148 = vst [vmem:[%s1749_s1 + $0xc2] sm:$0x3] %v837_v3  ;;  %v855_v6 = vld [vmem:[#allocation0 + $0x320] sm:$0x3]  ;;  %v861_v7 = vld [vmem:[#allocation0 + $0x328] sm:$0x3] }
  0xea   :  { %1149 = vst [vmem:[%s1749_s1 + $0xc4] sm:$0x3] %v843_v4  ;;  %v867_v8 = vld [vmem:[#allocation0 + $0x330] sm:$0x3]  ;;  %v873_v9 = vld [vmem:[#allocation0 + $0x338] sm:$0x3] }
  0xeb   :  { %1150 = vst [vmem:[%s1749_s1 + $0xc6] sm:$0x3] %v849_v5 }
  0xec   :  { %1151 = vst [vmem:[%s1749_s1 + $0xc8] sm:$0x3] %v855_v6 }
  0xed   :  { %1152 = vst [vmem:[%s1749_s1 + $0xca] sm:$0x3] %v861_v7  ;;  %v927_v10 = vld [vmem:[#allocation0 + $0x380] sm:$0x3]  ;;  %v933_v11 = vld [vmem:[#allocation0 + $0x388] sm:$0x3] }
  0xee   :  { %1153 = vst [vmem:[%s1749_s1 + $0xcc] sm:$0x3] %v867_v8  ;;  %v939_v16 = vld [vmem:[#allocation0 + $0x390] sm:$0x3]  ;;  %v945_v17 = vld [vmem:[#allocation0 + $0x398] sm:$0x3] }
  0xef   :  { %1154 = vst [vmem:[%s1749_s1 + $0xce] sm:$0x3] %v873_v9  ;;  %v951_v18 = vld [vmem:[#allocation0 + $0x3a0] sm:$0x3]  ;;  %v957_v19 = vld [vmem:[#allocation0 + $0x3a8] sm:$0x3] }
  0xf0   :  { %1163 = vst [vmem:[%s1749_s1 + $0xe0] sm:$0x3] %v927_v10  ;;  %v963_v20 = vld [vmem:[#allocation0 + $0x3b0] sm:$0x3]  ;;  %v969_v21 = vld [vmem:[#allocation0 + $0x3b8] sm:$0x3] }
  0xf1   :  { %1164 = vst [vmem:[%s1749_s1 + $0xe2] sm:$0x3] %v933_v11 }
  0xf2   :  { %1165 = vst [vmem:[%s1749_s1 + $0xe4] sm:$0x3] %v939_v16 }
  0xf3   :  { %1166 = vst [vmem:[%s1749_s1 + $0xe6] sm:$0x3] %v945_v17 }
  0xf4   :  { %1167 = vst [vmem:[%s1749_s1 + $0xe8] sm:$0x3] %v951_v18 }
  0xf5   :  { %1168 = vst [vmem:[%s1749_s1 + $0xea] sm:$0x3] %v957_v19 }
  0xf6   :  { %1169 = vst [vmem:[%s1749_s1 + $0xec] sm:$0x3] %v963_v20 }
  0xf7   :  { %1170 = vst [vmem:[%s1749_s1 + $0xee] sm:$0x3] %v969_v21 }
  0xf8   :  { %233 = vst.msk [vmem:[#allocation0 + $0x341] ss:$8 sm:$0xf] %vm3_vm0, %v1581_v56  }
  0xf9   :  { %235 = vst.msk [vmem:[#allocation0 + $0x341] ss:$8 sm:$0xf0] %vm3_vm0, %v1581_v56  }
  0xfa   :  { %251 = vst.msk [vmem:[#allocation0 + $0x3c1] ss:$8 sm:$0xf] %vm3_vm0, %v248_v2  }
  0xfb   :  { %253 = vst.msk [vmem:[#allocation0 + $0x3c1] ss:$8 sm:$0xf0] %vm3_vm0, %v248_v2  }
  0xff   :  { %v879_v13 = vld [vmem:[#allocation0 + $0x340] sm:$0x3]  ;;  %v885_v15 = vld [vmem:[#allocation0 + $0x348] sm:$0x3]  ;;  %v891_v22 = vld [vmem:[#allocation0 + $0x350] sm:$0x3] }
 0x100   :  { %1155 = vst [vmem:[%s1749_s1 + $0xd0] sm:$0x3] %v879_v13  ;;  %v897_v23 = vld [vmem:[#allocation0 + $0x358] sm:$0x3]  ;;  %v903_v24 = vld [vmem:[#allocation0 + $0x360] sm:$0x3] }
 0x101   :  { %1156 = vst [vmem:[%s1749_s1 + $0xd2] sm:$0x3] %v885_v15  ;;  %v909_v25 = vld [vmem:[#allocation0 + $0x368] sm:$0x3]  ;;  %v915_v26 = vld [vmem:[#allocation0 + $0x370] sm:$0x3] }
 0x102   :  { %1157 = vst [vmem:[%s1749_s1 + $0xd4] sm:$0x3] %v891_v22  ;;  %v921_v27 = vld [vmem:[#allocation0 + $0x378] sm:$0x3]  ;;  %v975_v28 = vld [vmem:[#allocation0 + $0x3c0] sm:$0x3] }
 0x103   :  { %1158 = vst [vmem:[%s1749_s1 + $0xd6] sm:$0x3] %v897_v23  ;;  %v981_v29 = vld [vmem:[#allocation0 + $0x3c8] sm:$0x3]  ;;  %v987_v30 = vld [vmem:[#allocation0 + $0x3d0] sm:$0x3] }
 0x104   :  { %1159 = vst [vmem:[%s1749_s1 + $0xd8] sm:$0x3] %v903_v24  ;;  %v993_v31 = vld [vmem:[#allocation0 + $0x3d8] sm:$0x3]  ;;  %v999_v32 = vld [vmem:[#allocation0 + $0x3e0] sm:$0x3] }
 0x105   :  { %1160 = vst [vmem:[%s1749_s1 + $0xda] sm:$0x3] %v909_v25  ;;  %v1005_v33 = vld [vmem:[#allocation0 + $0x3e8] sm:$0x3]  ;;  %v1011_v34 = vld [vmem:[#allocation0 + $0x3f0] sm:$0x3] }
 0x106   :  { %1161 = vst [vmem:[%s1749_s1 + $0xdc] sm:$0x3] %v915_v26  ;;  %v1017_v35 = vld [vmem:[#allocation0 + $0x3f8] sm:$0x3] }
 0x107   :  { %1162 = vst [vmem:[%s1749_s1 + $0xde] sm:$0x3] %v921_v27 }
 0x108   :  { %1171 = vst [vmem:[%s1749_s1 + $0xf0] sm:$0x3] %v975_v28 }
 0x109   :  { %1172 = vst [vmem:[%s1749_s1 + $0xf2] sm:$0x3] %v981_v29 }
 0x10a   :  { %1173 = vst [vmem:[%s1749_s1 + $0xf4] sm:$0x3] %v987_v30 }
 0x10b   :  { %1174 = vst [vmem:[%s1749_s1 + $0xf6] sm:$0x3] %v993_v31 }
 0x10c   :  { %1175 = vst [vmem:[%s1749_s1 + $0xf8] sm:$0x3] %v999_v32 }
 0x10d   :  { %1176 = vst [vmem:[%s1749_s1 + $0xfa] sm:$0x3] %v1005_v33 }
 0x10e   :  { %1177 = vst [vmem:[%s1749_s1 + $0xfc] sm:$0x3] %v1011_v34 }
 0x10f   :  { %1178 = vst [vmem:[%s1749_s1 + $0xfe] sm:$0x3] %v1017_v35 }

// kernel: _lambda_.39
= control target key start
LH: loop header
LB: loop body
LE: loop exit
PB: predicated region body
PF: predicated region fallthrough
CT: control target
= control target key end

     0   :  { %vm29_vm0 = vcmask 523264   ;;  %v462_v16 = vmov 64.0   ;;  %s777_s0 = inlined_call_operand.vmem [shape: f32[64,64], index: 0, kind: input, shape index: {}]   ;;  %s778_s1 = inlined_call_operand.vmem [shape: f32[1,64], index: 1, kind: input, shape index: {}]   ;;  %s779_s2 = inlined_call_operand.vmem [shape: f32[1,64], index: 2, kind: input, shape index: {}]   ;;  %s780_s3 = inlined_call_operand.vmem [shape: bf16[64,192], index: 3, kind: input, shape index: {}]   ;;  %s781_s4 = inlined_call_operand.vmem [shape: f32[1,192], index: 4, kind: input, shape index: {}]   ;;  %s782_s5 = inlined_call_operand.vmem [shape: f32[64,192], index: 5, kind: output, shape index: {}]  }
   0x1   :  { %v27_v0 = vld [vmem:[%s777_s0 + $0x30] sm:$0xff]  ;;  %v25_v1 = vld [vmem:[%s777_s0 + $0x20] sm:$0xff]  ;;  %v28_v6 = vld [vmem:[%s777_s0 + $0x38] sm:$0xff]  ;;  %444 = vrcp.f32 %v462_v16 }
   0x2   :  { %v21_v2 = vld [vmem:[%s777_s0] sm:$0xff]  ;;  %v48_v3 = vsel %vm29_vm0, %v27_v0, 0.0  ;;  %v42_v4 = vsel %vm29_vm0, %v25_v1, 0.0  ;;  %v26_v7 = vld [vmem:[%s777_s0 + $0x28] sm:$0xff]  ;;  %v51_v9 = vsel %vm29_vm0, %v28_v6, 0.0  ;;  %v23_v12 = vld [vmem:[%s777_s0 + $0x10] sm:$0xff] }
   0x3   :  { %v30_v5 = vsel %vm29_vm0, %v21_v2, 0.0  ;;  %49 = vadd.xlane.f32.xlu2 %v48_v3  ;;  %43 = vadd.xlane.f32.xlu0 %v42_v4  ;;  %v22_v8 = vld [vmem:[%s777_s0 + $0x8] sm:$0xff]  ;;  %v45_v10 = vsel %vm29_vm0, %v26_v7, 0.0  ;;  %v24_v13 = vld [vmem:[%s777_s0 + $0x18] sm:$0xff]  ;;  %v36_v14 = vsel %vm29_vm0, %v23_v12, 0.0 }
   0x4   :  { %31 = vadd.xlane.f32.xlu1 %v30_v5  ;;  %v33_v11 = vsel %vm29_vm0, %v22_v8, 0.0  ;;  %v39_v15 = vsel %vm29_vm0, %v24_v13, 0.0  ;;  %v411_v63 = vld [vmem:[%s780_s3 + $0x30] sm:$0xf]  ;;  %v413_v3 = vld [vmem:[%s780_s3 + $0x38] sm:$0xf0] }
   0x5   :  { %v403_v5 = vld [vmem:[%s780_s3 + $0x20] sm:$0xf] }
   0x7   :  { %v445_v17 = vpop.eup %444 }
   0x8   :  { %v55_v18 = vmul.f32 64.0, %v445_v17  ;;  %vm59_vm1 = vweird.f32 %v445_v17 }
   0xa   :  { %v56_v19 = vsub.f32 1.0, %v55_v18  ;;  %v397_v18 = vld [vmem:[%s780_s3 + $0x18] sm:$0xf0] }
   0xb   :  { %52 = vadd.xlane.f32.xlu2 %v51_v9  ;;  %46 = vadd.xlane.f32.xlu0 %v45_v10  ;;  %v405_v9 = vld [vmem:[%s780_s3 + $0x28] sm:$0xf0] }
   0xc   :  { %34 = vadd.xlane.f32.xlu1 %v33_v11  ;;  %v57_v20 = vmul.f32 %v445_v17, %v56_v19 }
   0xe   :  { %v58_v21 = vadd.f32 %v445_v17, %v57_v20 }
  0x10   :  { %v525_v22 = vsel %vm59_vm1, %v445_v17, %v58_v21 }
  0x13   :  { %37 = vadd.xlane.f32.xlu0 %v36_v14  ;;  %v427_v14 = vld [vmem:[%s780_s3 + $0x14] sm:$0xf] }
  0x14   :  { %40 = vadd.xlane.f32.xlu1 %v39_v15  ;;  %v400_v20 = vor.u32 %v427_v14, %v397_v18  ;;  %v655_v18 = vld [vmem:[%s778_s1] ss:$0 sm:$0xff] }
  0x76   :  { %v50_v23 = vpop.xlane.xlu2 %49  ;;  %v44_v24 = vpop.xlane.xlu0 %43 }
  0x77   :  { %v65_v25 = vmul.f32 %v525_v22, %v44_v24  ;;  %v32_v26 = vpop.xlane.xlu1 %31  ;;  %v67_v36 = vmul.f32 %v525_v22, %v50_v23  ;;  %v387_v24 = vld [vmem:[%s780_s3] sm:$0xf] }
  0x78   :  { %v61_v27 = vmul.f32 %v525_v22, %v32_v26 }
  0x79   :  { %v529_v28 = vsub.f32 %v25_v1, %v65_v25  ;;  %v549_v44 = vsub.f32 %v27_v0, %v67_v36  ;;  %v432_v0 = vld [vmem:[%s780_s3 + $0x34] sm:$0xf0]  ;;  %v431_v1 = vld [vmem:[%s780_s3 + $0x34] sm:$0xf]  ;;  %v426_v25 = vld [vmem:[%s780_s3 + $0x4] sm:$0xf0] }
  0x7a   :  { %v531_v29 = vsub.f32 %v21_v2, %v61_v27  ;;  %v412_v2 = vor.u32 %v432_v0, %v411_v63  ;;  %v416_v4 = vor.u32 %v431_v1, %v413_v3  ;;  %v388_v26 = vor.u32 %v426_v25, %v387_v24  ;;  %v425_v27 = vld [vmem:[%s780_s3 + $0x4] sm:$0xf] }
  0x7b   :  { %v81_v30 = vmul.f32 %v529_v28, %v529_v28  ;;  %v83_v53 = vmul.f32 %v549_v44, %v549_v44 }
  0x7c   :  { %v77_v31 = vmul.f32 %v531_v29, %v531_v29  ;;  %311 = vmatpush.bf16.msra.mxu0 %v412_v2  ;;  %433 = vmatpush.bf16.msra.mxu2 %v412_v2 }
  0x7d   :  { %v97_v32 = vsel %vm29_vm0, %v81_v30, 0.0  ;;  %v103_v57 = vsel %vm29_vm0, %v83_v53, 0.0  ;;  %340 = vmatpush.bf16.msra.mxu1 %v416_v4  ;;  %437 = vmatpush.bf16.msra.mxu3 %v416_v4  ;;  %v389_v30 = vld [vmem:[%s780_s3 + $0x8] sm:$0xf0] }
  0x7e   :  { %v53_v33 = vpop.xlane.xlu2 %52  ;;  %98 = vadd.xlane.f32.xlu2 %v97_v32  ;;  %v47_v34 = vpop.xlane.xlu0 %46  ;;  %v85_v35 = vsel %vm29_vm0, %v77_v31, 0.0  ;;  %v392_v31 = vor.u32 %v425_v27, %v389_v30  ;;  %v443_v30 = vld [vmem:[%s779_s2] ss:$0 sm:$0xff] }
  0x7f   :  { %v68_v37 = vmul.f32 %v525_v22, %v53_v33  ;;  %v66_v38 = vmul.f32 %v525_v22, %v47_v34  ;;  %86 = vadd.xlane.f32.xlu1 %v85_v35  ;;  %v35_v39 = vpop.xlane.xlu1 %34 }
  0x80   :  { %v62_v40 = vmul.f32 %v525_v22, %v35_v39 }
  0x81   :  { %v543_v41 = vsub.f32 %v28_v6, %v68_v37  ;;  %v545_v42 = vsub.f32 %v26_v7, %v66_v38  ;;  %v430_v6 = vld [vmem:[%s780_s3 + $0x24] sm:$0xf0]  ;;  %v429_v7 = vld [vmem:[%s780_s3 + $0x24] sm:$0xf] }
  0x82   :  { %v547_v43 = vsub.f32 %v22_v8, %v62_v40  ;;  %v404_v8 = vor.u32 %v430_v6, %v403_v5  ;;  %v408_v10 = vor.u32 %v429_v7, %v405_v9 }
  0x83   :  { %v82_v45 = vmul.f32 %v545_v42, %v545_v42  ;;  %v84_v46 = vmul.f32 %v543_v41, %v543_v41 }
  0x84   :  { %v78_v47 = vmul.f32 %v547_v43, %v547_v43  ;;  %312 = vmatpush.bf16.msra.mxu0 %v404_v8  ;;  %434 = vmatpush.bf16.msra.mxu2 %v404_v8 }
  0x85   :  { %v100_v48 = vsel %vm29_vm0, %v82_v45, 0.0  ;;  %v106_v49 = vsel %vm29_vm0, %v84_v46, 0.0  ;;  %341 = vmatpush.bf16.msra.mxu1 %v408_v10  ;;  %438 = vmatpush.bf16.msra.mxu3 %v408_v10 }
  0x86   :  { %101 = vadd.xlane.f32.xlu0 %v100_v48  ;;  %v38_v50 = vpop.xlane.xlu0 %37  ;;  %v88_v51 = vsel %vm29_vm0, %v78_v47, 0.0 }
  0x87   :  { %v63_v52 = vmul.f32 %v525_v22, %v38_v50  ;;  %107 = vadd.xlane.f32.xlu1 %v106_v49  ;;  %89 = vadd.xlane.f32.xlu2 %v88_v51  ;;  %v41_v54 = vpop.xlane.xlu1 %40 }
  0x88   :  { %v64_v55 = vmul.f32 %v525_v22, %v41_v54 }
  0x89   :  { %v564_v56 = vsub.f32 %v23_v12, %v63_v52  ;;  %v395_v12 = vld [vmem:[%s780_s3 + $0x10] sm:$0xf]  ;;  %342 = vmatpush.bf16.msra.mxu1 %v400_v20  ;;  %439 = vmatpush.bf16.msra.mxu3 %v400_v20 }
  0x8a   :  { %v569_v59 = vsub.f32 %v24_v13, %v64_v55  ;;  %v428_v13 = vld [vmem:[%s780_s3 + $0x14] sm:$0xf0] }
  0x8b   :  { %v79_v58 = vmul.f32 %v564_v56, %v564_v56  ;;  %v396_v17 = vor.u32 %v428_v13, %v395_v12 }
  0x8c   :  { %v80_v61 = vmul.f32 %v569_v59, %v569_v59 }
  0x8d   :  { %v91_v60 = vsel %vm29_vm0, %v79_v58, 0.0  ;;  %313 = vmatpush.bf16.msra.mxu0 %v396_v17  ;;  %435 = vmatpush.bf16.msra.mxu2 %v396_v17 }
  0x8e   :  { %104 = vadd.xlane.f32.xlu0 %v103_v57  ;;  %v94_v62 = vsel %vm29_vm0, %v80_v61, 0.0  ;;  %343 = vmatpush.bf16.msra.mxu1 %v392_v31 }
  0x8f   :  { %92 = vadd.xlane.f32.xlu2 %v91_v60  ;;  %440 = vmatpush.bf16.msra.mxu3 %v392_v31 }
  0x91   :  { %314 = vmatpush.bf16.msra.mxu0 %v388_v26  ;;  %436 = vmatpush.bf16.msra.mxu2 %v388_v26 }
  0x96   :  { %95 = vadd.xlane.f32.xlu0 %v94_v62 }
  0xf1   :  { %v99_v11 = vpop.xlane.xlu2 %98 }
  0xf2   :  { %v113_v15 = vmul.f32 %v99_v11, %v525_v22  ;;  %v87_v16 = vpop.xlane.xlu1 %86 }
  0xf3   :  { %v109_v19 = vmul.f32 %v87_v16, %v525_v22 }
  0xf4   :  { %v121_v21 = vadd.f32 1e-05, %v113_v15 }
  0xf5   :  { %v117_v23 = vadd.f32 1e-05, %v109_v19 }
  0xf6   :  { %446 = vrsqrt.f32 %v121_v21  ;;  %vm171_vm5 = vweird.f32 %v121_v21 }
  0xf7   :  { %448 = vrsqrt.f32 %v117_v23  ;;  %vm131_vm3 = vweird.f32 %v117_v23 }
  0xf9   :  { %v102_v32 = vpop.xlane.xlu0 %101 }
  0xfa   :  { %v114_v33 = vmul.f32 %v102_v32, %v525_v22  ;;  %v90_v34 = vpop.xlane.xlu2 %89  ;;  %v108_v35 = vpop.xlane.xlu1 %107 }
  0xfb   :  { %v110_v36 = vmul.f32 %v90_v34, %v525_v22  ;;  %v116_v37 = vmul.f32 %v108_v35, %v525_v22 }
  0xfc   :  { %v447_v38 = vpop.eup %446  ;;  %v122_v39 = vadd.f32 1e-05, %v114_v33 }
  0xfd   :  { %v449_v40 = vpop.eup %448  ;;  %v166_v45 = vmul.f32 %v447_v38, %v121_v21  ;;  %v628_v46 = vadd.f32 1e-05, %v110_v36  ;;  %v630_v47 = vadd.f32 1e-05, %v116_v37  ;;  %vm172_vm2 = vweird.f32 %v447_v38 }
  0xfe   :  { %v126_v48 = vmul.f32 %v449_v40, %v117_v23  ;;  %450 = vrsqrt.f32 %v122_v39  ;;  %vm132_vm4 = vweird.f32 %v449_v40  ;;  %vm173_vm6 = vmor %vm171_vm5, %vm172_vm2  ;;  %vm181_vm11 = vweird.f32 %v122_v39 }
  0xff   :  { %v167_v49 = vmul.f32 %v447_v38, %v166_v45  ;;  %452 = vrsqrt.f32 %v628_v46  ;;  %vm133_vm7 = vmor %vm131_vm3, %vm132_vm4  ;;  %vm141_vm9 = vweird.f32 %v628_v46  ;;  %vm201_vm14 = vweird.f32 %v630_v47 }
 0x100   :  { %v127_v50 = vmul.f32 %v449_v40, %v126_v48  ;;  %454 = vrsqrt.f32 %v630_v47 }
 0x101   :  { %v168_v51 = vmul.f32 0.5, %v167_v49  ;;  %v105_v52 = vpop.xlane.xlu0 %104 }
 0x102   :  { %v128_v53 = vmul.f32 0.5, %v127_v50  ;;  %v115_v54 = vmul.f32 %v105_v52, %v525_v22  ;;  %v93_v55 = vpop.xlane.xlu2 %92 }
 0x103   :  { %v169_v57 = vsub.f32 1.5, %v168_v51  ;;  %v111_v58 = vmul.f32 %v93_v55, %v525_v22 }
 0x104   :  { %v451_v60 = vpop.eup %450  ;;  %v129_v61 = vsub.f32 1.5, %v128_v53  ;;  %v636_v62 = vadd.f32 1e-05, %v115_v54 }
 0x105   :  { %v453_v63 = vpop.eup %452  ;;  %v170_v0 = vmul.f32 %v447_v38, %v169_v57  ;;  %v176_v1 = vmul.f32 %v451_v60, %v122_v39  ;;  %v638_v2 = vadd.f32 1e-05, %v111_v58  ;;  %vm182_vm8 = vweird.f32 %v451_v60 }
 0x106   :  { %v640_v3 = vpop.eup %454  ;;  %v130_v4 = vmul.f32 %v449_v40, %v129_v61  ;;  %v136_v5 = vmul.f32 %v453_v63, %v628_v46  ;;  %456 = vrsqrt.f32 %v636_v62  ;;  %vm142_vm10 = vweird.f32 %v453_v63  ;;  %vm183_vm12 = vmor %vm181_vm11, %vm182_vm8 }
 0x107   :  { %v177_v6 = vmul.f32 %v451_v60, %v176_v1  ;;  %v196_v7 = vmul.f32 %v640_v3, %v630_v47  ;;  %v174_v8 = vsel %vm173_vm6, %v447_v38, %v170_v0  ;;  %458 = vrsqrt.f32 %v638_v2  ;;  %vm143_vm13 = vmor %vm141_vm9, %vm142_vm10 }
 0x108   :  { %v137_v9 = vmul.f32 %v453_v63, %v136_v5  ;;  %v134_v10 = vsel %vm133_vm7, %v449_v40, %v130_v4  ;;  %v209_v16 = vmul.f32 %v174_v8, %v529_v28  ;;  %vm202_vm15 = vweird.f32 %v640_v3 }
 0x109   :  { %v178_v11 = vmul.f32 0.5, %v177_v6  ;;  %v197_v12 = vmul.f32 %v640_v3, %v196_v7  ;;  %v96_v13 = vpop.xlane.xlu0 %95  ;;  %v205_v20 = vmul.f32 %v134_v10, %v531_v29  ;;  %vm191_vm1 = vweird.f32 %v636_v62  ;;  %vm683_vm5 = vmor %vm201_vm14, %vm202_vm15 }
 0x10a   :  { %v138_v14 = vmul.f32 0.5, %v137_v9  ;;  %v112_v15 = vmul.f32 %v96_v13, %v525_v22  ;;  %v221_v31 = vmul.f32 %v655_v18, %v209_v16  ;;  %vm151_vm2 = vweird.f32 %v638_v2 }
 0x10b   :  { %v179_v17 = vsub.f32 1.5, %v178_v11  ;;  %v198_v22 = vmul.f32 0.5, %v197_v12  ;;  %v217_v35 = vmul.f32 %v655_v18, %v205_v20 }
 0x10c   :  { %v457_v19 = vpop.eup %456  ;;  %v139_v21 = vsub.f32 1.5, %v138_v14  ;;  %v658_v23 = vadd.f32 1e-05, %v112_v15  ;;  %v233_v46 = vadd.f32 %v443_v30, %v221_v31 }
 0x10d   :  { %v180_v24 = vmul.f32 %v451_v60, %v179_v17  ;;  %v186_v28 = vmul.f32 %v457_v19, %v636_v62  ;;  %v459_v26 = vpop.eup %458  ;;  %v199_v37 = vsub.f32 1.5, %v198_v22  ;;  %vm192_vm3 = vweird.f32 %v457_v19 }
 0x10e   :  { %v140_v25 = vmul.f32 %v453_v63, %v139_v21  ;;  %460 = vrsqrt.f32 %v658_v23  ;;  %v146_v34 = vmul.f32 %v459_v26, %v638_v2  ;;  %vm152_vm4 = vweird.f32 %v459_v26  ;;  %vm193_vm6 = vmor %vm191_vm1, %vm192_vm3 }
 0x10f   :  { %v184_v27 = vsel %vm183_vm12, %v451_v60, %v180_v24  ;;  %v187_v29 = vmul.f32 %v457_v19, %v186_v28  ;;  %v200_v51 = vmul.f32 %v640_v3, %v199_v37  ;;  %vm692_vm7 = vmor %vm151_vm2, %vm152_vm4  ;;  %vm161_vm8 = vweird.f32 %v658_v23 }
 0x110   :  { %v210_v32 = vmul.f32 %v184_v27, %v545_v42  ;;  %v144_v33 = vsel %vm143_vm13, %v453_v63, %v140_v25  ;;  %v147_v39 = vmul.f32 %v459_v26, %v146_v34 }
 0x111   :  { %v206_v36 = vmul.f32 %v144_v33, %v547_v43  ;;  %v188_v38 = vmul.f32 0.5, %v187_v29  ;;  %v229_v43 = vadd.f32 %v443_v30, %v217_v35  ;;  %v204_v62 = vsel %vm683_vm5, %v640_v3, %v200_v51 }
 0x112   :  { %v222_v40 = vmul.f32 %v655_v18, %v210_v32  ;;  %v148_v49 = vmul.f32 0.5, %v147_v39  ;;  %v212_v6 = vmul.f32 %v204_v62, %v543_v41 }
 0x113   :  { %v189_v45 = vsub.f32 1.5, %v188_v38  ;;  %v218_v42 = vmul.f32 %v655_v18, %v206_v36 }
 0x114   :  { %v461_v48 = vpop.eup %460  ;;  %v234_v50 = vadd.f32 %v443_v30, %v222_v40  ;;  %v149_v57 = vsub.f32 1.5, %v148_v49  ;;  %v224_v11 = vmul.f32 %v655_v18, %v212_v6 }
 0x115   :  { %v190_v53 = vmul.f32 %v457_v19, %v189_v45  ;;  %v156_v54 = vmul.f32 %v461_v48, %v658_v23  ;;  %v230_v55 = vadd.f32 %v443_v30, %v218_v42  ;;  %vm162_vm9 = vweird.f32 %v461_v48 }
 0x116   :  { %v239_v58 = vpack.c.bf16 %v234_v50, %v233_v46  ;;  %v150_v0 = vmul.f32 %v459_v26, %v149_v57  ;;  %vm163_vm10 = vmor %vm161_vm8, %vm162_vm9  ;;  %v236_v16 = vadd.f32 %v443_v30, %v224_v11 }
 0x117   :  { %v194_v60 = vsel %vm193_vm6, %v457_v19, %v190_v53  ;;  %v157_v47 = vmul.f32 %v461_v48, %v156_v54  ;;  %v237_v63 = vpack.c.bf16 %v230_v55, %v229_v43 }
 0x118   :  { %419 = vmatmul.msk.bf16.vlgmr.msra.gmra.mxu2 %vm29_vm0, %v239_v58  ;;  %423 = vmatmul.msk.bf16.vlgmr.msra.gmra.mxu3 %vm29_vm0, %v239_v58  ;;  %v211_v2 = vmul.f32 %v194_v60, %v549_v44  ;;  %v154_v4 = vsel %vm692_vm7, %v459_v26, %v150_v0 }
 0x119   :  { %v158_v1 = vmul.f32 0.5, %v157_v47  ;;  %417 = vmatmul.msk.bf16.vlgmr.msra.gmra.mxu0 %vm29_vm0, %v237_v63  ;;  %421 = vmatmul.msk.bf16.vlgmr.msra.gmra.mxu1 %vm29_vm0, %v237_v63  ;;  %v207_v7 = vmul.f32 %v154_v4, %v564_v56  ;;  %v249_v56 = vld [vmem:[%s781_s4] sm:$0x3] }
 0x11a   :  { %v223_v3 = vmul.f32 %v655_v18, %v211_v2 }
 0x11b   :  { %v159_v5 = vsub.f32 1.5, %v158_v1  ;;  %v219_v44 = vmul.f32 %v655_v18, %v207_v7 }
 0x11c   :  { %v235_v13 = vadd.f32 %v443_v30, %v223_v3 }
 0x11d   :  { %v160_v8 = vmul.f32 %v461_v48, %v159_v5  ;;  %v231_v14 = vadd.f32 %v443_v30, %v219_v44 }
 0x11e   :  { %v240_v17 = vpack.c.bf16 %v236_v16, %v235_v13 }
 0x11f   :  { %v164_v9 = vsel %vm163_vm10, %v461_v48, %v160_v8 }
 0x120   :  { %v208_v10 = vmul.f32 %v164_v9, %v569_v59  ;;  %v251_v59 = vperm.slane %v249_v56, 0 }
 0x122   :  { %v220_v12 = vmul.f32 %v655_v18, %v208_v10  ;;  %v252_v18 = vperm.slane %v249_v56, 1 }
 0x124   :  { %v232_v15 = vadd.f32 %v443_v30, %v220_v12 }
 0x126   :  { %v238_v41 = vpack.c.bf16 %v232_v15, %v231_v14 }
 0x128   :  { %420 = vmatmul.msk.bf16.gmra.mxu2 %vm29_vm0, %v240_v17  ;;  %424 = vmatmul.msk.bf16.gmra.mxu3 %vm29_vm0, %v240_v17 }
 0x129   :  { %418 = vmatmul.msk.bf16.gmra.mxu0 %vm29_vm0, %v238_v41  ;;  %422 = vmatmul.msk.bf16.gmra.mxu1 %vm29_vm0, %v238_v41 }
 0x196   :  { %v316_v19 = vpop.f32.mrf.mxu0  ;;  %v345_v20 = vpop.f32.mrf.mxu1 }
 0x197   :  { %v317_v21 = vadd.f32 %v316_v19, %v251_v59  ;;  %v346_v23 = vadd.f32 %v345_v20, %v252_v18 }
 0x199   :  { %365 = vst [vmem:[%s782_s5] sm:$0xff] %v317_v21 }
 0x19a   :  { %366 = vst.msk [vmem:[%s782_s5 + $0x8] sm:$0xff] %vm29_vm0, %v346_v23 }
 0x19b   :  { %v326_v24 = vpop.f32.mrf.mxu2  ;;  %v355_v22 = vpop.f32.mrf.mxu3 }
 0x19c   :  { %v327_v28 = vadd.f32 %v326_v24, %v251_v59  ;;  %v356_v25 = vadd.f32 %v355_v22, %v252_v18 }
 0x19e   :  { %373 = vst [vmem:[%s782_s5 + $0x40] sm:$0xff] %v327_v28  ;;  %v318_v26 = vpop.f32.mrf.mxu0  ;;  %v347_v27 = vpop.f32.mrf.mxu1 }
 0x19f   :  { %374 = vst.msk [vmem:[%s782_s5 + $0x48] sm:$0xff] %vm29_vm0, %v356_v25  ;;  %v319_v29 = vadd.f32 %v318_v26, %v251_v59  ;;  %v348_v30 = vadd.f32 %v347_v27, %v252_v18 }
 0x1a1   :  { %367 = vst [vmem:[%s782_s5 + $0x10] sm:$0xff] %v319_v29 }
 0x1a2   :  { %368 = vst.msk [vmem:[%s782_s5 + $0x18] sm:$0xff] %vm29_vm0, %v348_v30 }
 0x1a3   :  { %v328_v31 = vpop.f32.mrf.mxu2  ;;  %v357_v32 = vpop.f32.mrf.mxu3 }
 0x1a4   :  { %v329_v33 = vadd.f32 %v328_v31, %v251_v59  ;;  %v358_v34 = vadd.f32 %v357_v32, %v252_v18 }
 0x1a6   :  { %375 = vst [vmem:[%s782_s5 + $0x50] sm:$0xff] %v329_v33  ;;  %v321_v35 = vpop.f32.mrf.mxu0  ;;  %v350_v36 = vpop.f32.mrf.mxu1 }
 0x1a7   :  { %376 = vst.msk [vmem:[%s782_s5 + $0x58] sm:$0xff] %vm29_vm0, %v358_v34  ;;  %v322_v37 = vadd.f32 %v321_v35, %v251_v59  ;;  %v351_v38 = vadd.f32 %v350_v36, %v252_v18 }
 0x1a9   :  { %369 = vst [vmem:[%s782_s5 + $0x20] sm:$0xff] %v322_v37 }
 0x1aa   :  { %370 = vst.msk [vmem:[%s782_s5 + $0x28] sm:$0xff] %vm29_vm0, %v351_v38 }
 0x1ab   :  { %v331_v39 = vpop.f32.mrf.mxu2  ;;  %v360_v40 = vpop.f32.mrf.mxu3 }
 0x1ac   :  { %v332_v45 = vadd.f32 %v331_v39, %v251_v59  ;;  %v361_v42 = vadd.f32 %v360_v40, %v252_v18 }
 0x1ae   :  { %377 = vst [vmem:[%s782_s5 + $0x60] sm:$0xff] %v332_v45  ;;  %v323_v46 = vpop.f32.mrf.mxu0  ;;  %v352_v48 = vpop.f32.mrf.mxu1 }
 0x1af   :  { %378 = vst.msk [vmem:[%s782_s5 + $0x68] sm:$0xff] %vm29_vm0, %v361_v42  ;;  %v324_v49 = vadd.f32 %v323_v46, %v251_v59  ;;  %v353_v43 = vadd.f32 %v352_v48, %v252_v18 }
 0x1b1   :  { %371 = vst [vmem:[%s782_s5 + $0x30] sm:$0xff] %v324_v49 }
 0x1b2   :  { %372 = vst.msk [vmem:[%s782_s5 + $0x38] sm:$0xff] %vm29_vm0, %v353_v43 }
 0x1b3   :  { %v333_v50 = vpop.f32.mrf.mxu2  ;;  %v362_v51 = vpop.f32.mrf.mxu3 }
 0x1b4   :  { %v334_v52 = vadd.f32 %v333_v50, %v251_v59  ;;  %v363_v53 = vadd.f32 %v362_v51, %v252_v18 }
 0x1b6   :  { %379 = vst [vmem:[%s782_s5 + $0x70] sm:$0xff] %v334_v52 }
 0x1b7   :  { %380 = vst.msk [vmem:[%s782_s5 + $0x78] sm:$0xff] %vm29_vm0, %v363_v53 }

// kernel: _lambda_.41
= control target key start
LH: loop header
LB: loop body
LE: loop exit
PB: predicated region body
PF: predicated region fallthrough
CT: control target
= control target key end

     0   :  { %vm32_vm0 = vcmask 523264   ;;  %v407_v16 = vmov 64.0   ;;  %s682_s0 = inlined_call_operand.vmem [shape: f32[64,64], index: 0, kind: input, shape index: {}]   ;;  %s683_s1 = inlined_call_operand.vmem [shape: f32[1,64], index: 1, kind: input, shape index: {}]   ;;  %s684_s2 = inlined_call_operand.vmem [shape: f32[1,64], index: 2, kind: input, shape index: {}]   ;;  %s685_s4 = inlined_call_operand.vmem [shape: f32[1,64], index: 4, kind: input, shape index: {}]   ;;  %s686_s3 = inlined_call_operand.vmem [shape: bf16[64,64], index: 3, kind: input, shape index: {}]   ;;  %s687_s5 = inlined_call_operand.vmem [shape: f32[64,64], index: 5, kind: input, shape index: {}]   ;;  %s688_s6 = inlined_call_operand.vmem [shape: f32[64,64], index: 6, kind: output, shape index: {}]  }
   0x1   :  { %v30_v0 = vld [vmem:[%s682_s0 + $0x30] sm:$0xff]  ;;  %v28_v1 = vld [vmem:[%s682_s0 + $0x20] sm:$0xff]  ;;  %v31_v6 = vld [vmem:[%s682_s0 + $0x38] sm:$0xff]  ;;  %389 = vrcp.f32 %v407_v16 }
   0x2   :  { %v24_v2 = vld [vmem:[%s682_s0] sm:$0xff]  ;;  %v51_v3 = vsel %vm32_vm0, %v30_v0, 0.0  ;;  %v45_v4 = vsel %vm32_vm0, %v28_v1, 0.0  ;;  %v29_v7 = vld [vmem:[%s682_s0 + $0x28] sm:$0xff]  ;;  %v54_v9 = vsel %vm32_vm0, %v31_v6, 0.0  ;;  %v26_v12 = vld [vmem:[%s682_s0 + $0x10] sm:$0xff] }
   0x3   :  { %v33_v5 = vsel %vm32_vm0, %v24_v2, 0.0  ;;  %52 = vadd.xlane.f32.xlu1 %v51_v3  ;;  %46 = vadd.xlane.f32.xlu0 %v45_v4  ;;  %v25_v8 = vld [vmem:[%s682_s0 + $0x8] sm:$0xff]  ;;  %v48_v10 = vsel %vm32_vm0, %v29_v7, 0.0  ;;  %v27_v13 = vld [vmem:[%s682_s0 + $0x18] sm:$0xff]  ;;  %v39_v14 = vsel %vm32_vm0, %v26_v12, 0.0 }
   0x4   :  { %34 = vadd.xlane.f32.xlu2 %v33_v5  ;;  %v36_v11 = vsel %vm32_vm0, %v25_v8, 0.0  ;;  %v42_v15 = vsel %vm32_vm0, %v27_v13, 0.0  ;;  %v372_v63 = vld [vmem:[%s686_s3 + $0x18] sm:$0xff]  ;;  %v370_v5 = vld [vmem:[%s686_s3 + $0x8] sm:$0xff] }
   0x5   :  { %374 = vmatpush.bf16.msra.mxu2 %v372_v63  ;;  %375 = vmatpush.bf16.msra.mxu3 %v372_v63 }
   0x6   :  { %296 = vmatpush.bf16.msra.mxu0 %v372_v63  ;;  %373 = vmatpush.bf16.msra.mxu1 %v372_v63 }
   0x7   :  { %v390_v17 = vpop.eup %389 }
   0x8   :  { %v58_v18 = vmul.f32 64.0, %v390_v17  ;;  %vm62_vm1 = vweird.f32 %v390_v17 }
   0xa   :  { %v59_v19 = vsub.f32 1.0, %v58_v18 }
   0xb   :  { %55 = vadd.xlane.f32.xlu1 %v54_v9  ;;  %49 = vadd.xlane.f32.xlu0 %v48_v10 }
   0xc   :  { %37 = vadd.xlane.f32.xlu2 %v36_v11  ;;  %v60_v20 = vmul.f32 %v390_v17, %v59_v19 }
   0xe   :  { %v61_v21 = vadd.f32 %v390_v17, %v60_v20 }
  0x10   :  { %v475_v22 = vsel %vm62_vm1, %v390_v17, %v61_v21 }
  0x13   :  { %40 = vadd.xlane.f32.xlu0 %v39_v14  ;;  %43 = vadd.xlane.f32.xlu1 %v42_v15 }
  0x76   :  { %v53_v23 = vpop.xlane.xlu1 %52  ;;  %v47_v24 = vpop.xlane.xlu0 %46 }
  0x77   :  { %v70_v25 = vmul.f32 %v475_v22, %v53_v23  ;;  %v68_v26 = vmul.f32 %v475_v22, %v47_v24  ;;  %v35_v27 = vpop.xlane.xlu2 %34 }
  0x78   :  { %v64_v36 = vmul.f32 %v475_v22, %v35_v27 }
  0x79   :  { %v479_v28 = vsub.f32 %v30_v0, %v70_v25  ;;  %v481_v29 = vsub.f32 %v28_v1, %v68_v26  ;;  %v371_v0 = vld [vmem:[%s686_s3 + $0x10] sm:$0xff] }
  0x7a   :  { %v499_v44 = vsub.f32 %v24_v2, %v64_v36  ;;  %377 = vmatpush.bf16.msra.mxu2 %v371_v0  ;;  %378 = vmatpush.bf16.msra.mxu3 %v371_v0 }
  0x7b   :  { %v86_v30 = vmul.f32 %v479_v28, %v479_v28  ;;  %v84_v31 = vmul.f32 %v481_v29, %v481_v29  ;;  %297 = vmatpush.bf16.msra.mxu0 %v371_v0  ;;  %376 = vmatpush.bf16.msra.mxu1 %v371_v0 }
  0x7c   :  { %v80_v55 = vmul.f32 %v499_v44, %v499_v44 }
  0x7d   :  { %v106_v32 = vsel %vm32_vm0, %v86_v30, 0.0  ;;  %v100_v33 = vsel %vm32_vm0, %v84_v31, 0.0 }
  0x7e   :  { %v56_v34 = vpop.xlane.xlu1 %55  ;;  %v50_v35 = vpop.xlane.xlu0 %49  ;;  %107 = vadd.xlane.f32.xlu1 %v106_v32  ;;  %101 = vadd.xlane.f32.xlu2 %v100_v33  ;;  %v88_v59 = vsel %vm32_vm0, %v80_v55, 0.0 }
  0x7f   :  { %v71_v37 = vmul.f32 %v475_v22, %v56_v34  ;;  %v69_v38 = vmul.f32 %v475_v22, %v50_v35  ;;  %v38_v39 = vpop.xlane.xlu2 %37  ;;  %380 = vmatpush.bf16.msra.mxu2 %v370_v5  ;;  %381 = vmatpush.bf16.msra.mxu3 %v370_v5 }
  0x80   :  { %v65_v40 = vmul.f32 %v475_v22, %v38_v39  ;;  %298 = vmatpush.bf16.msra.mxu0 %v370_v5  ;;  %379 = vmatpush.bf16.msra.mxu1 %v370_v5 }
  0x81   :  { %v493_v41 = vsub.f32 %v31_v6, %v71_v37  ;;  %v495_v42 = vsub.f32 %v29_v7, %v69_v38 }
  0x82   :  { %v497_v43 = vsub.f32 %v25_v8, %v65_v40  ;;  %v369_v8 = vld [vmem:[%s686_s3] sm:$0xff] }
  0x83   :  { %v85_v45 = vmul.f32 %v495_v42, %v495_v42  ;;  %v87_v46 = vmul.f32 %v493_v41, %v493_v41  ;;  %383 = vmatpush.bf16.msra.mxu2 %v369_v8  ;;  %384 = vmatpush.bf16.msra.mxu3 %v369_v8 }
  0x84   :  { %v81_v47 = vmul.f32 %v497_v43, %v497_v43  ;;  %299 = vmatpush.bf16.msra.mxu0 %v369_v8  ;;  %382 = vmatpush.bf16.msra.mxu1 %v369_v8 }
  0x85   :  { %v103_v48 = vsel %vm32_vm0, %v85_v45, 0.0  ;;  %v109_v49 = vsel %vm32_vm0, %v87_v46, 0.0 }
  0x86   :  { %104 = vadd.xlane.f32.xlu0 %v103_v48  ;;  %v41_v50 = vpop.xlane.xlu0 %40  ;;  %110 = vadd.xlane.f32.xlu2 %v109_v49  ;;  %v91_v51 = vsel %vm32_vm0, %v81_v47, 0.0  ;;  %v44_v52 = vpop.xlane.xlu1 %43 }
  0x87   :  { %v66_v53 = vmul.f32 %v475_v22, %v41_v50  ;;  %92 = vadd.xlane.f32.xlu1 %v91_v51  ;;  %v67_v54 = vmul.f32 %v475_v22, %v44_v52 }
  0x89   :  { %v514_v56 = vsub.f32 %v26_v12, %v66_v53  ;;  %v516_v57 = vsub.f32 %v27_v13, %v67_v54 }
  0x8b   :  { %v82_v58 = vmul.f32 %v514_v56, %v514_v56  ;;  %v83_v61 = vmul.f32 %v516_v57, %v516_v57 }
  0x8d   :  { %v94_v60 = vsel %vm32_vm0, %v82_v58, 0.0  ;;  %v97_v62 = vsel %vm32_vm0, %v83_v61, 0.0 }
  0x8e   :  { %95 = vadd.xlane.f32.xlu2 %v94_v60  ;;  %89 = vadd.xlane.f32.xlu0 %v88_v59 }
  0x96   :  { %98 = vadd.xlane.f32.xlu0 %v97_v62 }
  0xf1   :  { %v108_v1 = vpop.xlane.xlu1 %107  ;;  %v102_v2 = vpop.xlane.xlu2 %101 }
  0xf2   :  { %v118_v3 = vmul.f32 %v108_v1, %v475_v22  ;;  %v116_v4 = vmul.f32 %v102_v2, %v475_v22  ;;  %v578_v1 = vld [vmem:[%s683_s1] ss:$0 sm:$0xff] }
  0xf4   :  { %v126_v6 = vadd.f32 1e-05, %v118_v3  ;;  %v124_v7 = vadd.f32 1e-05, %v116_v4 }
  0xf6   :  { %391 = vrsqrt.f32 %v126_v6  ;;  %vm194_vm2 = vweird.f32 %v126_v6  ;;  %vm174_vm5 = vweird.f32 %v124_v7 }
  0xf7   :  { %393 = vrsqrt.f32 %v124_v7 }
  0xf9   :  { %v105_v9 = vpop.xlane.xlu0 %104  ;;  %v111_v10 = vpop.xlane.xlu2 %110 }
  0xfa   :  { %v117_v11 = vmul.f32 %v105_v9, %v475_v22  ;;  %v93_v12 = vpop.xlane.xlu1 %92  ;;  %v119_v13 = vmul.f32 %v111_v10, %v475_v22 }
  0xfb   :  { %v113_v14 = vmul.f32 %v93_v12, %v475_v22 }
  0xfc   :  { %v392_v15 = vpop.eup %391  ;;  %v125_v16 = vadd.f32 1e-05, %v117_v11  ;;  %v542_v17 = vadd.f32 1e-05, %v119_v13  ;;  %v387_v13 = vld [vmem:[%s684_s2] ss:$0 sm:$0xff] }
  0xfd   :  { %v394_v18 = vpop.eup %393  ;;  %v189_v19 = vmul.f32 %v392_v15, %v126_v6  ;;  %v121_v20 = vadd.f32 1e-05, %v113_v14  ;;  %vm195_vm4 = vweird.f32 %v392_v15 }
  0xfe   :  { %v169_v21 = vmul.f32 %v394_v18, %v124_v7  ;;  %395 = vrsqrt.f32 %v125_v16  ;;  %vm175_vm3 = vweird.f32 %v394_v18  ;;  %vm184_vm7 = vweird.f32 %v125_v16  ;;  %vm565_vm8 = vmor %vm194_vm2, %vm195_vm4 }
  0xff   :  { %v190_v23 = vmul.f32 %v392_v15, %v189_v19  ;;  %397 = vrsqrt.f32 %v121_v20  ;;  %vm555_vm6 = vmor %vm174_vm5, %vm175_vm3  ;;  %vm144_vm9 = vweird.f32 %v121_v20  ;;  %vm204_vm12 = vweird.f32 %v542_v17 }
 0x100   :  { %v170_v24 = vmul.f32 %v394_v18, %v169_v21  ;;  %399 = vrsqrt.f32 %v542_v17 }
 0x101   :  { %v191_v25 = vmul.f32 0.5, %v190_v23  ;;  %v90_v26 = vpop.xlane.xlu0 %89  ;;  %v96_v27 = vpop.xlane.xlu2 %95 }
 0x102   :  { %v171_v30 = vmul.f32 0.5, %v170_v24  ;;  %v112_v31 = vmul.f32 %v90_v26, %v475_v22  ;;  %v114_v32 = vmul.f32 %v96_v27, %v475_v22 }
 0x103   :  { %v192_v33 = vsub.f32 1.5, %v191_v25 }
 0x104   :  { %v396_v34 = vpop.eup %395  ;;  %v172_v35 = vsub.f32 1.5, %v171_v30  ;;  %v547_v36 = vadd.f32 1e-05, %v112_v31  ;;  %v551_v39 = vadd.f32 1e-05, %v114_v32 }
 0x105   :  { %v549_v37 = vpop.eup %397  ;;  %v179_v38 = vmul.f32 %v396_v34, %v125_v16  ;;  %v193_v45 = vmul.f32 %v392_v15, %v192_v33  ;;  %vm185_vm10 = vweird.f32 %v396_v34 }
 0x106   :  { %v400_v40 = vpop.eup %399  ;;  %v173_v46 = vmul.f32 %v394_v18, %v172_v35  ;;  %v139_v47 = vmul.f32 %v549_v37, %v121_v20  ;;  %401 = vrsqrt.f32 %v547_v36  ;;  %vm145_vm11 = vweird.f32 %v549_v37  ;;  %vm186_vm14 = vmor %vm184_vm7, %vm185_vm10 }
 0x107   :  { %v180_v49 = vmul.f32 %v396_v34, %v179_v38  ;;  %v199_v50 = vmul.f32 %v400_v40, %v542_v17  ;;  %403 = vrsqrt.f32 %v551_v39  ;;  %v197_v59 = vsel %vm565_vm8, %v392_v15, %v193_v45  ;;  %vm587_vm15 = vmor %vm144_vm9, %vm145_vm11 }
 0x108   :  { %v177_v51 = vsel %vm555_vm6, %v394_v18, %v173_v46  ;;  %v140_v52 = vmul.f32 %v549_v37, %v139_v47  ;;  %vm205_vm13 = vweird.f32 %v400_v40  ;;  %v214_v5 = vmul.f32 %v197_v59, %v479_v28 }
 0x109   :  { %v181_v54 = vmul.f32 0.5, %v180_v49  ;;  %v200_v55 = vmul.f32 %v400_v40, %v199_v50  ;;  %v99_v58 = vpop.xlane.xlu0 %98  ;;  %v212_v62 = vmul.f32 %v177_v51, %v481_v29  ;;  %vm206_vm1 = vmor %vm204_vm12, %vm205_vm13  ;;  %vm134_vm2 = vweird.f32 %v547_v36 }
 0x10a   :  { %v141_v60 = vmul.f32 0.5, %v140_v52  ;;  %v115_v61 = vmul.f32 %v99_v58, %v475_v22  ;;  %v226_v20 = vmul.f32 %v578_v1, %v214_v5  ;;  %vm154_vm4 = vweird.f32 %v551_v39 }
 0x10b   :  { %v182_v63 = vsub.f32 1.5, %v181_v54  ;;  %v201_v0 = vmul.f32 0.5, %v200_v55  ;;  %v224_v28 = vmul.f32 %v578_v1, %v212_v62 }
 0x10c   :  { %v402_v2 = vpop.eup %401  ;;  %v142_v3 = vsub.f32 1.5, %v141_v60  ;;  %v123_v4 = vadd.f32 1e-05, %v115_v61 }
 0x10d   :  { %v183_v22 = vmul.f32 %v396_v34, %v182_v63  ;;  %v202_v29 = vsub.f32 1.5, %v201_v0  ;;  %v129_v6 = vmul.f32 %v402_v2, %v547_v36  ;;  %v404_v9 = vpop.eup %403  ;;  %vm135_vm3 = vweird.f32 %v402_v2 }
 0x10e   :  { %v143_v7 = vmul.f32 %v549_v37, %v142_v3  ;;  %405 = vrsqrt.f32 %v123_v4  ;;  %v149_v15 = vmul.f32 %v404_v9, %v551_v39  ;;  %v236_v17 = vadd.f32 %v387_v13, %v224_v28  ;;  %vm136_vm5 = vmor %vm134_vm2, %vm135_vm3 }
 0x10f   :  { %v187_v10 = vsel %vm186_vm14, %v396_v34, %v183_v22  ;;  %v203_v11 = vmul.f32 %v400_v40, %v202_v29  ;;  %v130_v12 = vmul.f32 %v402_v2, %v129_v6  ;;  %vm155_vm6 = vweird.f32 %v404_v9 }
 0x110   :  { %v213_v14 = vmul.f32 %v187_v10, %v495_v42  ;;  %v147_v16 = vsel %vm587_vm15, %v549_v37, %v143_v7  ;;  %v150_v23 = vmul.f32 %v404_v9, %v149_v15  ;;  %vm156_vm7 = vmor %vm154_vm4, %vm155_vm6  ;;  %vm164_vm9 = vweird.f32 %v123_v4 }
 0x111   :  { %v207_v18 = vsel %vm206_vm1, %v400_v40, %v203_v11  ;;  %v131_v19 = vmul.f32 0.5, %v130_v12  ;;  %v209_v26 = vmul.f32 %v147_v16, %v497_v43  ;;  %v328_v12 = vld [vmem:[%s687_s5 + $0x38] sm:$0xff] }
 0x112   :  { %v215_v21 = vmul.f32 %v207_v18, %v493_v41  ;;  %v225_v24 = vmul.f32 %v578_v1, %v213_v14  ;;  %v151_v27 = vmul.f32 0.5, %v150_v23  ;;  %v238_v41 = vadd.f32 %v387_v13, %v226_v20 }
 0x113   :  { %v132_v42 = vsub.f32 1.5, %v131_v19  ;;  %v221_v46 = vmul.f32 %v578_v1, %v209_v26  ;;  %v323_v19 = vld [vmem:[%s687_s5 + $0x10] sm:$0xff] }
 0x114   :  { %v406_v25 = vpop.eup %405  ;;  %v237_v30 = vadd.f32 %v387_v13, %v225_v24  ;;  %v227_v31 = vmul.f32 %v578_v1, %v215_v21  ;;  %v152_v34 = vsub.f32 1.5, %v151_v27 }
 0x115   :  { %v133_v32 = vmul.f32 %v402_v2, %v132_v42  ;;  %v159_v33 = vmul.f32 %v406_v25, %v123_v4  ;;  %vm165_vm8 = vweird.f32 %v406_v25  ;;  %v233_v52 = vadd.f32 %v387_v13, %v221_v46  ;;  %v321_v4 = vld [vmem:[%s687_s5] sm:$0xff] }
 0x116   :  { %v242_v35 = vpack.c.bf16 %v237_v30, %v236_v17  ;;  %v239_v37 = vadd.f32 %v387_v13, %v227_v31  ;;  %v153_v45 = vmul.f32 %v404_v9, %v152_v34  ;;  %vm166_vm10 = vmor %vm164_vm9, %vm165_vm8  ;;  %v324_v17 = vld [vmem:[%s687_s5 + $0x18] sm:$0xff] }
 0x117   :  { %v137_v36 = vsel %vm136_vm5, %v402_v2, %v133_v32  ;;  %v160_v38 = vmul.f32 %v406_v25, %v159_v33 }
 0x118   :  { %v208_v40 = vmul.f32 %v137_v36, %v499_v44  ;;  %367 = vmatmul.msk.bf16.vlgmr.msra.gmra.mxu2 %vm32_vm0, %v242_v35  ;;  %v243_v43 = vpack.c.bf16 %v239_v37, %v238_v41  ;;  %v157_v48 = vsel %vm156_vm7, %v404_v9, %v153_v45  ;;  %v326_v9 = vld [vmem:[%s687_s5 + $0x28] sm:$0xff] }
 0x119   :  { %v161_v47 = vmul.f32 0.5, %v160_v38  ;;  %v210_v51 = vmul.f32 %v157_v48, %v514_v56  ;;  %v388_v56 = vld [vmem:[%s685_s4] ss:$0 sm:$0xff] }
 0x11a   :  { %368 = vmatmul.msk.bf16.vlgmr.msra.gmra.mxu3 %vm32_vm0, %v243_v43  ;;  %v220_v49 = vmul.f32 %v578_v1, %v208_v40 }
 0x11b   :  { %v162_v50 = vsub.f32 1.5, %v161_v47  ;;  %v222_v58 = vmul.f32 %v578_v1, %v210_v51 }
 0x11c   :  { %v232_v44 = vadd.f32 %v387_v13, %v220_v49 }
 0x11d   :  { %v163_v53 = vmul.f32 %v406_v25, %v162_v50  ;;  %v234_v60 = vadd.f32 %v387_v13, %v222_v58 }
 0x11e   :  { %v240_v54 = vpack.c.bf16 %v233_v52, %v232_v44 }
 0x11f   :  { %v167_v55 = vsel %vm166_vm10, %v406_v25, %v163_v53 }
 0x120   :  { %v211_v39 = vmul.f32 %v167_v55, %v516_v57  ;;  %365 = vmatmul.msk.bf16.vlgmr.msra.gmra.mxu0 %vm32_vm0, %v240_v54  ;;  %v325_v57 = vld [vmem:[%s687_s5 + $0x20] sm:$0xff] }
 0x122   :  { %v223_v59 = vmul.f32 %v578_v1, %v211_v39  ;;  %v327_v1 = vld [vmem:[%s687_s5 + $0x30] sm:$0xff] }
 0x124   :  { %v235_v61 = vadd.f32 %v387_v13, %v223_v59  ;;  %v322_v13 = vld [vmem:[%s687_s5 + $0x8] sm:$0xff] }
 0x126   :  { %v241_v62 = vpack.c.bf16 %v235_v61, %v234_v60 }
 0x128   :  { %366 = vmatmul.msk.bf16.vlgmr.msra.gmra.mxu1 %vm32_vm0, %v241_v62 }
 0x19b   :  { %v311_v63 = vpop.f32.mrf.mxu2 }
 0x19c   :  { %v312_v0 = vadd.f32 %v388_v56, %v311_v63 }
 0x19d   :  { %v316_v2 = vpop.f32.mrf.mxu3  ;;  %v301_v3 = vpop.f32.mrf.mxu0 }
 0x19e   :  { %v333_v5 = vadd.f32 %v325_v57, %v312_v0  ;;  %v317_v22 = vadd.f32 %v388_v56, %v316_v2  ;;  %v302_v29 = vadd.f32 %v388_v56, %v301_v3 }
 0x1a0   :  { %341 = vst.msk [vmem:[%s688_s6 + $0x20] sm:$0xff] %vm32_vm0, %v333_v5  ;;  %v335_v6 = vadd.f32 %v327_v1, %v317_v22  ;;  %v329_v7 = vadd.f32 %v321_v4, %v302_v29 }
 0x1a2   :  { %343 = vst.msk [vmem:[%s688_s6 + $0x30] sm:$0xff] %vm32_vm0, %v335_v6 }
 0x1a3   :  { %337 = vst.msk [vmem:[%s688_s6] sm:$0xff] %vm32_vm0, %v329_v7  ;;  %v313_v8 = vpop.f32.mrf.mxu2 }
 0x1a4   :  { %v314_v10 = vadd.f32 %v388_v56, %v313_v8 }
 0x1a5   :  { %v318_v11 = vpop.f32.mrf.mxu3  ;;  %v303_v28 = vpop.f32.mrf.mxu0 }
 0x1a6   :  { %v334_v14 = vadd.f32 %v326_v9, %v314_v10  ;;  %v319_v15 = vadd.f32 %v388_v56, %v318_v11  ;;  %v304_v16 = vadd.f32 %v388_v56, %v303_v28  ;;  %v306_v18 = vpop.f32.mrf.mxu1 }
 0x1a7   :  { %v307_v20 = vadd.f32 %v388_v56, %v306_v18 }
 0x1a8   :  { %342 = vst.msk [vmem:[%s688_s6 + $0x28] sm:$0xff] %vm32_vm0, %v334_v14  ;;  %v336_v21 = vadd.f32 %v328_v12, %v319_v15  ;;  %v330_v23 = vadd.f32 %v322_v13, %v304_v16 }
 0x1a9   :  { %v331_v24 = vadd.f32 %v323_v19, %v307_v20 }
 0x1aa   :  { %344 = vst.msk [vmem:[%s688_s6 + $0x38] sm:$0xff] %vm32_vm0, %v336_v21 }
 0x1ab   :  { %338 = vst.msk [vmem:[%s688_s6 + $0x8] sm:$0xff] %vm32_vm0, %v330_v23 }
 0x1ac   :  { %339 = vst.msk [vmem:[%s688_s6 + $0x10] sm:$0xff] %vm32_vm0, %v331_v24 }
 0x1ae   :  { %v308_v42 = vpop.f32.mrf.mxu1 }
 0x1af   :  { %v309_v25 = vadd.f32 %v388_v56, %v308_v42 }
 0x1b1   :  { %v332_v26 = vadd.f32 %v324_v17, %v309_v25 }
 0x1b3   :  { %340 = vst.msk [vmem:[%s688_s6 + $0x18] sm:$0xff] %vm32_vm0, %v332_v26 }

// kernel: _lambda_.42
= control target key start
LH: loop header
LB: loop body
LE: loop exit
PB: predicated region body
PF: predicated region fallthrough
CT: control target
= control target key end

     0   :  { %vm29_vm0 = vcmask 523264   ;;  %v388_v16 = vmov 64.0   ;;  %s634_s0 = inlined_call_operand.vmem [shape: f32[64,64], index: 0, kind: input, shape index: {}]   ;;  %s635_s1 = inlined_call_operand.vmem [shape: f32[1,64], index: 1, kind: input, shape index: {}]   ;;  %s636_s2 = inlined_call_operand.vmem [shape: f32[1,64], index: 2, kind: input, shape index: {}]   ;;  %s637_s4 = inlined_call_operand.vmem [shape: f32[1,64], index: 4, kind: input, shape index: {}]   ;;  %s638_s3 = inlined_call_operand.vmem [shape: bf16[64,64], index: 3, kind: input, shape index: {}]   ;;  %s639_s5 = inlined_call_operand.vmem [shape: f32[64,64], index: 5, kind: output, shape index: {}]  }
   0x1   :  { %v27_v0 = vld [vmem:[%s634_s0 + $0x30] sm:$0xff]  ;;  %v25_v1 = vld [vmem:[%s634_s0 + $0x20] sm:$0xff]  ;;  %v28_v6 = vld [vmem:[%s634_s0 + $0x38] sm:$0xff]  ;;  %370 = vrcp.f32 %v388_v16 }
   0x2   :  { %v21_v2 = vld [vmem:[%s634_s0] sm:$0xff]  ;;  %v48_v3 = vsel %vm29_vm0, %v27_v0, 0.0  ;;  %v42_v4 = vsel %vm29_vm0, %v25_v1, 0.0  ;;  %v26_v7 = vld [vmem:[%s634_s0 + $0x28] sm:$0xff]  ;;  %v51_v9 = vsel %vm29_vm0, %v28_v6, 0.0  ;;  %v23_v12 = vld [vmem:[%s634_s0 + $0x10] sm:$0xff] }
   0x3   :  { %v30_v5 = vsel %vm29_vm0, %v21_v2, 0.0  ;;  %49 = vadd.xlane.f32.xlu1 %v48_v3  ;;  %43 = vadd.xlane.f32.xlu0 %v42_v4  ;;  %v22_v8 = vld [vmem:[%s634_s0 + $0x8] sm:$0xff]  ;;  %v45_v10 = vsel %vm29_vm0, %v26_v7, 0.0  ;;  %v24_v13 = vld [vmem:[%s634_s0 + $0x18] sm:$0xff]  ;;  %v36_v14 = vsel %vm29_vm0, %v23_v12, 0.0 }
   0x4   :  { %31 = vadd.xlane.f32.xlu2 %v30_v5  ;;  %v33_v11 = vsel %vm29_vm0, %v22_v8, 0.0  ;;  %v39_v15 = vsel %vm29_vm0, %v24_v13, 0.0  ;;  %v353_v63 = vld [vmem:[%s638_s3 + $0x18] sm:$0xff]  ;;  %v351_v5 = vld [vmem:[%s638_s3 + $0x8] sm:$0xff] }
   0x5   :  { %355 = vmatpush.bf16.msra.mxu2 %v353_v63  ;;  %356 = vmatpush.bf16.msra.mxu3 %v353_v63 }
   0x6   :  { %293 = vmatpush.bf16.msra.mxu0 %v353_v63  ;;  %354 = vmatpush.bf16.msra.mxu1 %v353_v63 }
   0x7   :  { %v371_v17 = vpop.eup %370 }
   0x8   :  { %v55_v18 = vmul.f32 64.0, %v371_v17  ;;  %vm59_vm1 = vweird.f32 %v371_v17 }
   0xa   :  { %v56_v19 = vsub.f32 1.0, %v55_v18 }
   0xb   :  { %52 = vadd.xlane.f32.xlu1 %v51_v9  ;;  %46 = vadd.xlane.f32.xlu0 %v45_v10 }
   0xc   :  { %34 = vadd.xlane.f32.xlu2 %v33_v11  ;;  %v57_v20 = vmul.f32 %v371_v17, %v56_v19 }
   0xe   :  { %v58_v21 = vadd.f32 %v371_v17, %v57_v20 }
  0x10   :  { %v451_v22 = vsel %vm59_vm1, %v371_v17, %v58_v21 }
  0x13   :  { %37 = vadd.xlane.f32.xlu0 %v36_v14  ;;  %40 = vadd.xlane.f32.xlu1 %v39_v15 }
  0x76   :  { %v50_v23 = vpop.xlane.xlu1 %49  ;;  %v44_v24 = vpop.xlane.xlu0 %43 }
  0x77   :  { %v67_v25 = vmul.f32 %v451_v22, %v50_v23  ;;  %v65_v26 = vmul.f32 %v451_v22, %v44_v24  ;;  %v32_v27 = vpop.xlane.xlu2 %31 }
  0x78   :  { %v61_v36 = vmul.f32 %v451_v22, %v32_v27 }
  0x79   :  { %v455_v28 = vsub.f32 %v27_v0, %v67_v25  ;;  %v457_v29 = vsub.f32 %v25_v1, %v65_v26  ;;  %v352_v0 = vld [vmem:[%s638_s3 + $0x10] sm:$0xff] }
  0x7a   :  { %v475_v44 = vsub.f32 %v21_v2, %v61_v36  ;;  %358 = vmatpush.bf16.msra.mxu2 %v352_v0  ;;  %359 = vmatpush.bf16.msra.mxu3 %v352_v0 }
  0x7b   :  { %v83_v30 = vmul.f32 %v455_v28, %v455_v28  ;;  %v81_v31 = vmul.f32 %v457_v29, %v457_v29  ;;  %294 = vmatpush.bf16.msra.mxu0 %v352_v0  ;;  %357 = vmatpush.bf16.msra.mxu1 %v352_v0 }
  0x7c   :  { %v77_v55 = vmul.f32 %v475_v44, %v475_v44 }
  0x7d   :  { %v103_v32 = vsel %vm29_vm0, %v83_v30, 0.0  ;;  %v97_v33 = vsel %vm29_vm0, %v81_v31, 0.0 }
  0x7e   :  { %v53_v34 = vpop.xlane.xlu1 %52  ;;  %v47_v35 = vpop.xlane.xlu0 %46  ;;  %104 = vadd.xlane.f32.xlu1 %v103_v32  ;;  %98 = vadd.xlane.f32.xlu2 %v97_v33  ;;  %v85_v59 = vsel %vm29_vm0, %v77_v55, 0.0 }
  0x7f   :  { %v68_v37 = vmul.f32 %v451_v22, %v53_v34  ;;  %v66_v38 = vmul.f32 %v451_v22, %v47_v35  ;;  %v35_v39 = vpop.xlane.xlu2 %34  ;;  %361 = vmatpush.bf16.msra.mxu2 %v351_v5  ;;  %362 = vmatpush.bf16.msra.mxu3 %v351_v5 }
  0x80   :  { %v62_v40 = vmul.f32 %v451_v22, %v35_v39  ;;  %295 = vmatpush.bf16.msra.mxu0 %v351_v5  ;;  %360 = vmatpush.bf16.msra.mxu1 %v351_v5 }
  0x81   :  { %v469_v41 = vsub.f32 %v28_v6, %v68_v37  ;;  %v471_v42 = vsub.f32 %v26_v7, %v66_v38 }
  0x82   :  { %v473_v43 = vsub.f32 %v22_v8, %v62_v40  ;;  %v350_v8 = vld [vmem:[%s638_s3] sm:$0xff] }
  0x83   :  { %v82_v45 = vmul.f32 %v471_v42, %v471_v42  ;;  %v84_v46 = vmul.f32 %v469_v41, %v469_v41  ;;  %364 = vmatpush.bf16.msra.mxu2 %v350_v8  ;;  %365 = vmatpush.bf16.msra.mxu3 %v350_v8 }
  0x84   :  { %v78_v47 = vmul.f32 %v473_v43, %v473_v43  ;;  %296 = vmatpush.bf16.msra.mxu0 %v350_v8  ;;  %363 = vmatpush.bf16.msra.mxu1 %v350_v8 }
  0x85   :  { %v100_v48 = vsel %vm29_vm0, %v82_v45, 0.0  ;;  %v106_v49 = vsel %vm29_vm0, %v84_v46, 0.0 }
  0x86   :  { %101 = vadd.xlane.f32.xlu0 %v100_v48  ;;  %v38_v50 = vpop.xlane.xlu0 %37  ;;  %107 = vadd.xlane.f32.xlu2 %v106_v49  ;;  %v88_v51 = vsel %vm29_vm0, %v78_v47, 0.0  ;;  %v41_v52 = vpop.xlane.xlu1 %40 }
  0x87   :  { %v63_v53 = vmul.f32 %v451_v22, %v38_v50  ;;  %89 = vadd.xlane.f32.xlu1 %v88_v51  ;;  %v64_v54 = vmul.f32 %v451_v22, %v41_v52 }
  0x89   :  { %v490_v56 = vsub.f32 %v23_v12, %v63_v53  ;;  %v492_v57 = vsub.f32 %v24_v13, %v64_v54 }
  0x8b   :  { %v79_v58 = vmul.f32 %v490_v56, %v490_v56  ;;  %v80_v61 = vmul.f32 %v492_v57, %v492_v57 }
  0x8d   :  { %v91_v60 = vsel %vm29_vm0, %v79_v58, 0.0  ;;  %v94_v62 = vsel %vm29_vm0, %v80_v61, 0.0 }
  0x8e   :  { %92 = vadd.xlane.f32.xlu2 %v91_v60  ;;  %86 = vadd.xlane.f32.xlu0 %v85_v59 }
  0x96   :  { %95 = vadd.xlane.f32.xlu0 %v94_v62 }
  0xf1   :  { %v105_v1 = vpop.xlane.xlu1 %104  ;;  %v99_v2 = vpop.xlane.xlu2 %98 }
  0xf2   :  { %v115_v3 = vmul.f32 %v105_v1, %v451_v22  ;;  %v113_v4 = vmul.f32 %v99_v2, %v451_v22  ;;  %v554_v1 = vld [vmem:[%s635_s1] ss:$0 sm:$0xff] }
  0xf4   :  { %v123_v6 = vadd.f32 1e-05, %v115_v3  ;;  %v121_v7 = vadd.f32 1e-05, %v113_v4 }
  0xf6   :  { %372 = vrsqrt.f32 %v123_v6  ;;  %vm191_vm2 = vweird.f32 %v123_v6  ;;  %vm171_vm5 = vweird.f32 %v121_v7 }
  0xf7   :  { %374 = vrsqrt.f32 %v121_v7 }
  0xf9   :  { %v102_v9 = vpop.xlane.xlu0 %101  ;;  %v108_v10 = vpop.xlane.xlu2 %107 }
  0xfa   :  { %v114_v11 = vmul.f32 %v102_v9, %v451_v22  ;;  %v90_v12 = vpop.xlane.xlu1 %89  ;;  %v116_v13 = vmul.f32 %v108_v10, %v451_v22 }
  0xfb   :  { %v110_v14 = vmul.f32 %v90_v12, %v451_v22 }
  0xfc   :  { %v373_v15 = vpop.eup %372  ;;  %v122_v16 = vadd.f32 1e-05, %v114_v11  ;;  %v518_v17 = vadd.f32 1e-05, %v116_v13  ;;  %v368_v13 = vld [vmem:[%s636_s2] ss:$0 sm:$0xff] }
  0xfd   :  { %v375_v18 = vpop.eup %374  ;;  %v186_v19 = vmul.f32 %v373_v15, %v123_v6  ;;  %v118_v20 = vadd.f32 1e-05, %v110_v14  ;;  %vm192_vm4 = vweird.f32 %v373_v15 }
  0xfe   :  { %v166_v21 = vmul.f32 %v375_v18, %v121_v7  ;;  %376 = vrsqrt.f32 %v122_v16  ;;  %vm172_vm3 = vweird.f32 %v375_v18  ;;  %vm181_vm7 = vweird.f32 %v122_v16  ;;  %vm541_vm8 = vmor %vm191_vm2, %vm192_vm4 }
  0xff   :  { %v187_v23 = vmul.f32 %v373_v15, %v186_v19  ;;  %378 = vrsqrt.f32 %v118_v20  ;;  %vm531_vm6 = vmor %vm171_vm5, %vm172_vm3  ;;  %vm141_vm9 = vweird.f32 %v118_v20  ;;  %vm201_vm12 = vweird.f32 %v518_v17 }
 0x100   :  { %v167_v24 = vmul.f32 %v375_v18, %v166_v21  ;;  %380 = vrsqrt.f32 %v518_v17 }
 0x101   :  { %v188_v25 = vmul.f32 0.5, %v187_v23  ;;  %v87_v26 = vpop.xlane.xlu0 %86  ;;  %v93_v27 = vpop.xlane.xlu2 %92 }
 0x102   :  { %v168_v30 = vmul.f32 0.5, %v167_v24  ;;  %v109_v31 = vmul.f32 %v87_v26, %v451_v22  ;;  %v111_v32 = vmul.f32 %v93_v27, %v451_v22 }
 0x103   :  { %v189_v33 = vsub.f32 1.5, %v188_v25 }
 0x104   :  { %v377_v34 = vpop.eup %376  ;;  %v169_v35 = vsub.f32 1.5, %v168_v30  ;;  %v523_v36 = vadd.f32 1e-05, %v109_v31  ;;  %v527_v39 = vadd.f32 1e-05, %v111_v32 }
 0x105   :  { %v525_v37 = vpop.eup %378  ;;  %v176_v38 = vmul.f32 %v377_v34, %v122_v16  ;;  %v190_v45 = vmul.f32 %v373_v15, %v189_v33  ;;  %vm182_vm10 = vweird.f32 %v377_v34 }
 0x106   :  { %v381_v40 = vpop.eup %380  ;;  %v170_v46 = vmul.f32 %v375_v18, %v169_v35  ;;  %v136_v47 = vmul.f32 %v525_v37, %v118_v20  ;;  %382 = vrsqrt.f32 %v523_v36  ;;  %vm142_vm11 = vweird.f32 %v525_v37  ;;  %vm183_vm14 = vmor %vm181_vm7, %vm182_vm10 }
 0x107   :  { %v177_v49 = vmul.f32 %v377_v34, %v176_v38  ;;  %v196_v50 = vmul.f32 %v381_v40, %v518_v17  ;;  %384 = vrsqrt.f32 %v527_v39  ;;  %v194_v59 = vsel %vm541_vm8, %v373_v15, %v190_v45  ;;  %vm563_vm15 = vmor %vm141_vm9, %vm142_vm11 }
 0x108   :  { %v174_v51 = vsel %vm531_vm6, %v375_v18, %v170_v46  ;;  %v137_v52 = vmul.f32 %v525_v37, %v136_v47  ;;  %vm202_vm13 = vweird.f32 %v381_v40  ;;  %v211_v5 = vmul.f32 %v194_v59, %v455_v28 }
 0x109   :  { %v178_v54 = vmul.f32 0.5, %v177_v49  ;;  %v197_v55 = vmul.f32 %v381_v40, %v196_v50  ;;  %v96_v58 = vpop.xlane.xlu0 %95  ;;  %v209_v62 = vmul.f32 %v174_v51, %v457_v29  ;;  %vm203_vm1 = vmor %vm201_vm12, %vm202_vm13  ;;  %vm131_vm2 = vweird.f32 %v523_v36 }
 0x10a   :  { %v138_v60 = vmul.f32 0.5, %v137_v52  ;;  %v112_v61 = vmul.f32 %v96_v58, %v451_v22  ;;  %v223_v20 = vmul.f32 %v554_v1, %v211_v5  ;;  %vm151_vm4 = vweird.f32 %v527_v39 }
 0x10b   :  { %v179_v63 = vsub.f32 1.5, %v178_v54  ;;  %v198_v0 = vmul.f32 0.5, %v197_v55  ;;  %v221_v28 = vmul.f32 %v554_v1, %v209_v62 }
 0x10c   :  { %v383_v2 = vpop.eup %382  ;;  %v139_v3 = vsub.f32 1.5, %v138_v60  ;;  %v120_v4 = vadd.f32 1e-05, %v112_v61 }
 0x10d   :  { %v180_v22 = vmul.f32 %v377_v34, %v179_v63  ;;  %v199_v29 = vsub.f32 1.5, %v198_v0  ;;  %v126_v6 = vmul.f32 %v383_v2, %v523_v36  ;;  %v385_v9 = vpop.eup %384  ;;  %vm132_vm3 = vweird.f32 %v383_v2 }
 0x10e   :  { %v140_v7 = vmul.f32 %v525_v37, %v139_v3  ;;  %386 = vrsqrt.f32 %v120_v4  ;;  %v146_v15 = vmul.f32 %v385_v9, %v527_v39  ;;  %v233_v17 = vadd.f32 %v368_v13, %v221_v28  ;;  %vm133_vm5 = vmor %vm131_vm2, %vm132_vm3 }
 0x10f   :  { %v184_v10 = vsel %vm183_vm14, %v377_v34, %v180_v22  ;;  %v200_v11 = vmul.f32 %v381_v40, %v199_v29  ;;  %v127_v12 = vmul.f32 %v383_v2, %v126_v6  ;;  %vm152_vm6 = vweird.f32 %v385_v9 }
 0x110   :  { %v210_v14 = vmul.f32 %v184_v10, %v471_v42  ;;  %v144_v16 = vsel %vm563_vm15, %v525_v37, %v140_v7  ;;  %v147_v23 = vmul.f32 %v385_v9, %v146_v15  ;;  %vm153_vm7 = vmor %vm151_vm4, %vm152_vm6  ;;  %vm161_vm9 = vweird.f32 %v120_v4 }
 0x111   :  { %v204_v18 = vsel %vm203_vm1, %v381_v40, %v200_v11  ;;  %v128_v19 = vmul.f32 0.5, %v127_v12  ;;  %v206_v26 = vmul.f32 %v144_v16, %v473_v43 }
 0x112   :  { %v212_v21 = vmul.f32 %v204_v18, %v469_v41  ;;  %v222_v24 = vmul.f32 %v554_v1, %v210_v14  ;;  %v148_v27 = vmul.f32 0.5, %v147_v23  ;;  %v235_v41 = vadd.f32 %v368_v13, %v223_v20 }
 0x113   :  { %v129_v42 = vsub.f32 1.5, %v128_v19  ;;  %v218_v46 = vmul.f32 %v554_v1, %v206_v26 }
 0x114   :  { %v387_v25 = vpop.eup %386  ;;  %v234_v30 = vadd.f32 %v368_v13, %v222_v24  ;;  %v224_v31 = vmul.f32 %v554_v1, %v212_v21  ;;  %v149_v34 = vsub.f32 1.5, %v148_v27 }
 0x115   :  { %v130_v32 = vmul.f32 %v383_v2, %v129_v42  ;;  %v156_v33 = vmul.f32 %v387_v25, %v120_v4  ;;  %vm162_vm8 = vweird.f32 %v387_v25  ;;  %v230_v52 = vadd.f32 %v368_v13, %v218_v46 }
 0x116   :  { %v239_v35 = vpack.c.bf16 %v234_v30, %v233_v17  ;;  %v236_v37 = vadd.f32 %v368_v13, %v224_v31  ;;  %v150_v45 = vmul.f32 %v385_v9, %v149_v34  ;;  %vm163_vm10 = vmor %vm161_vm9, %vm162_vm8 }
 0x117   :  { %v134_v36 = vsel %vm133_vm5, %v383_v2, %v130_v32  ;;  %v157_v38 = vmul.f32 %v387_v25, %v156_v33 }
 0x118   :  { %v205_v40 = vmul.f32 %v134_v36, %v475_v44  ;;  %348 = vmatmul.msk.bf16.vlgmr.msra.gmra.mxu2 %vm29_vm0, %v239_v35  ;;  %v240_v43 = vpack.c.bf16 %v236_v37, %v235_v41  ;;  %v154_v48 = vsel %vm153_vm7, %v385_v9, %v150_v45 }
 0x119   :  { %v158_v47 = vmul.f32 0.5, %v157_v38  ;;  %v207_v51 = vmul.f32 %v154_v48, %v490_v56  ;;  %v369_v56 = vld [vmem:[%s637_s4] ss:$0 sm:$0xff] }
 0x11a   :  { %349 = vmatmul.msk.bf16.vlgmr.msra.gmra.mxu3 %vm29_vm0, %v240_v43  ;;  %v217_v49 = vmul.f32 %v554_v1, %v205_v40 }
 0x11b   :  { %v159_v50 = vsub.f32 1.5, %v158_v47  ;;  %v219_v58 = vmul.f32 %v554_v1, %v207_v51 }
 0x11c   :  { %v229_v44 = vadd.f32 %v368_v13, %v217_v49 }
 0x11d   :  { %v160_v53 = vmul.f32 %v387_v25, %v159_v50  ;;  %v231_v60 = vadd.f32 %v368_v13, %v219_v58 }
 0x11e   :  { %v237_v54 = vpack.c.bf16 %v230_v52, %v229_v44 }
 0x11f   :  { %v164_v55 = vsel %vm163_vm10, %v387_v25, %v160_v53 }
 0x120   :  { %v208_v39 = vmul.f32 %v164_v55, %v492_v57  ;;  %346 = vmatmul.msk.bf16.vlgmr.msra.gmra.mxu0 %vm29_vm0, %v237_v54 }
 0x122   :  { %v220_v59 = vmul.f32 %v554_v1, %v208_v39 }
 0x124   :  { %v232_v61 = vadd.f32 %v368_v13, %v220_v59 }
 0x126   :  { %v238_v62 = vpack.c.bf16 %v232_v61, %v231_v60 }
 0x128   :  { %347 = vmatmul.msk.bf16.vlgmr.msra.gmra.mxu1 %vm29_vm0, %v238_v62 }
 0x19b   :  { %v308_v63 = vpop.f32.mrf.mxu2 }
 0x19c   :  { %v309_v0 = vadd.f32 %v369_v56, %v308_v63 }
 0x19d   :  { %v313_v2 = vpop.f32.mrf.mxu3  ;;  %v298_v3 = vpop.f32.mrf.mxu0 }
 0x19e   :  { %322 = vst.msk [vmem:[%s639_s5 + $0x20] sm:$0xff] %vm29_vm0, %v309_v0  ;;  %v314_v57 = vadd.f32 %v369_v56, %v313_v2  ;;  %v299_v1 = vadd.f32 %v369_v56, %v298_v3 }
 0x1a0   :  { %324 = vst.msk [vmem:[%s639_s5 + $0x30] sm:$0xff] %vm29_vm0, %v314_v57 }
 0x1a1   :  { %318 = vst.msk [vmem:[%s639_s5] sm:$0xff] %vm29_vm0, %v299_v1 }
 0x1a3   :  { %v310_v4 = vpop.f32.mrf.mxu2 }
 0x1a4   :  { %v311_v5 = vadd.f32 %v369_v56, %v310_v4 }
 0x1a5   :  { %v315_v22 = vpop.f32.mrf.mxu3  ;;  %v300_v29 = vpop.f32.mrf.mxu0 }
 0x1a6   :  { %323 = vst.msk [vmem:[%s639_s5 + $0x28] sm:$0xff] %vm29_vm0, %v311_v5  ;;  %v316_v6 = vadd.f32 %v369_v56, %v315_v22  ;;  %v301_v7 = vadd.f32 %v369_v56, %v300_v29  ;;  %v303_v8 = vpop.f32.mrf.mxu1 }
 0x1a7   :  { %v304_v9 = vadd.f32 %v369_v56, %v303_v8 }
 0x1a8   :  { %325 = vst.msk [vmem:[%s639_s5 + $0x38] sm:$0xff] %vm29_vm0, %v316_v6 }
 0x1a9   :  { %319 = vst.msk [vmem:[%s639_s5 + $0x8] sm:$0xff] %vm29_vm0, %v301_v7 }
 0x1aa   :  { %320 = vst.msk [vmem:[%s639_s5 + $0x10] sm:$0xff] %vm29_vm0, %v304_v9 }
 0x1ae   :  { %v305_v10 = vpop.f32.mrf.mxu1 }
 0x1af   :  { %v306_v11 = vadd.f32 %v369_v56, %v305_v10 }
 0x1b1   :  { %321 = vst.msk [vmem:[%s639_s5 + $0x18] sm:$0xff] %vm29_vm0, %v306_v11 }

// kernel: _lambda_.43
= control target key start
LH: loop header
LB: loop body
LE: loop exit
PB: predicated region body
PF: predicated region fallthrough
CT: control target
= control target key end

     0   :  { %vm63_vm0 = vcmask 523264   ;;  %s237_s1 = inlined_call_operand.vmem [shape: bf16[64,128], index: 1, kind: input, shape index: {}]   ;;  %s238_s2 = inlined_call_operand.vmem [shape: f32[1,128], index: 2, kind: input, shape index: {}]   ;;  %s239_s0 = inlined_call_operand.vmem [shape: f32[64,64], index: 0, kind: input, shape index: {}]   ;;  %s240_s3 = inlined_call_operand.vmem [shape: f32[64,128], index: 3, kind: output, shape index: {}]  }
   0x1   :  { %v140_v0 = vld [vmem:[%s237_s1 + $0x18] sm:$0xff]  ;;  %v139_v1 = vld [vmem:[%s237_s1 + $0x10] sm:$0xff]  ;;  %v138_v2 = vld [vmem:[%s237_s1 + $0x8] sm:$0xff] }
   0x2   :  { %80 = vmatpush.bf16.msra.mxu0 %v140_v0  ;;  %141 = vmatpush.bf16.msra.mxu1 %v140_v0  ;;  %v137_v3 = vld [vmem:[%s237_s1] sm:$0xff]  ;;  %v16_v5 = vld [vmem:[%s239_s0 + $0x8] sm:$0xff]  ;;  %v17_v6 = vld [vmem:[%s239_s0 + $0x10] sm:$0xff] }
   0x3   :  { %142 = vmatpush.bf16.msra.mxu2 %v140_v0  ;;  %143 = vmatpush.bf16.msra.mxu3 %v140_v0  ;;  %v15_v4 = vld [vmem:[%s239_s0] sm:$0xff]  ;;  %v18_v7 = vld [vmem:[%s239_s0 + $0x18] sm:$0xff]  ;;  %v20_v9 = vld [vmem:[%s239_s0 + $0x28] sm:$0xff] }
   0x4   :  { %v19_v8 = vld [vmem:[%s239_s0 + $0x20] sm:$0xff]  ;;  %v21_v10 = vld [vmem:[%s239_s0 + $0x30] sm:$0xff]  ;;  %v22_v11 = vld [vmem:[%s239_s0 + $0x38] sm:$0xff]  ;;  %v23_v12 = vpack.c.bf16 %v16_v5, %v15_v4  ;;  %v24_v13 = vpack.c.bf16 %v18_v7, %v17_v6 }
   0x5   :  { %v25_v14 = vpack.c.bf16 %v20_v9, %v19_v8  ;;  %v26_v15 = vpack.c.bf16 %v22_v11, %v21_v10  ;;  %v153_v16 = vld [vmem:[%s238_s2] ss:$0 sm:$0xff] }
   0x6   :  { %81 = vmatpush.bf16.msra.mxu0 %v139_v1  ;;  %144 = vmatpush.bf16.msra.mxu1 %v139_v1 }
   0x7   :  { %145 = vmatpush.bf16.msra.mxu2 %v139_v1  ;;  %146 = vmatpush.bf16.msra.mxu3 %v139_v1 }
   0xa   :  { %82 = vmatpush.bf16.msra.mxu0 %v138_v2  ;;  %147 = vmatpush.bf16.msra.mxu1 %v138_v2 }
   0xb   :  { %148 = vmatpush.bf16.msra.mxu2 %v138_v2  ;;  %149 = vmatpush.bf16.msra.mxu3 %v138_v2 }
   0xe   :  { %83 = vmatpush.bf16.msra.mxu0 %v137_v3  ;;  %150 = vmatpush.bf16.msra.mxu1 %v137_v3 }
   0xf   :  { %151 = vmatpush.bf16.msra.mxu2 %v137_v3  ;;  %152 = vmatpush.bf16.msra.mxu3 %v137_v3 }
  0x11   :  { %133 = vmatmul.msk.bf16.vlgmr.msra.gmra.mxu0 %vm63_vm0, %v23_v12  ;;  %134 = vmatmul.msk.bf16.vlgmr.msra.gmra.mxu1 %vm63_vm0, %v24_v13 }
  0x12   :  { %135 = vmatmul.msk.bf16.vlgmr.msra.gmra.mxu2 %vm63_vm0, %v25_v14  ;;  %136 = vmatmul.msk.bf16.vlgmr.msra.gmra.mxu3 %vm63_vm0, %v26_v15 }
  0x8e   :  { %v85_v17 = vpop.f32.mrf.mxu0  ;;  %v90_v18 = vpop.f32.mrf.mxu1 }
  0x8f   :  { %v86_v19 = vadd.f32 %v153_v16, %v85_v17  ;;  %v91_v20 = vadd.f32 %v153_v16, %v90_v18 }
  0x91   :  { %105 = vst [vmem:[%s240_s3] sm:$0xff] %v86_v19 }
  0x92   :  { %107 = vst [vmem:[%s240_s3 + $0x10] sm:$0xff] %v91_v20 }
  0x95   :  { %v95_v21 = vpop.f32.mrf.mxu2  ;;  %v100_v22 = vpop.f32.mrf.mxu3 }
  0x96   :  { %v96_v23 = vadd.f32 %v153_v16, %v95_v21  ;;  %v101_v24 = vadd.f32 %v153_v16, %v100_v22  ;;  %v87_v25 = vpop.f32.mrf.mxu0  ;;  %v92_v26 = vpop.f32.mrf.mxu1 }
  0x97   :  { %v88_v27 = vadd.f32 %v153_v16, %v87_v25  ;;  %v93_v28 = vadd.f32 %v153_v16, %v92_v26 }
  0x98   :  { %109 = vst [vmem:[%s240_s3 + $0x20] sm:$0xff] %v96_v23 }
  0x99   :  { %111 = vst [vmem:[%s240_s3 + $0x30] sm:$0xff] %v101_v24 }
  0x9a   :  { %106 = vst [vmem:[%s240_s3 + $0x8] sm:$0xff] %v88_v27 }
  0x9b   :  { %108 = vst [vmem:[%s240_s3 + $0x18] sm:$0xff] %v93_v28 }
  0x9d   :  { %v97_v29 = vpop.f32.mrf.mxu2  ;;  %v102_v30 = vpop.f32.mrf.mxu3 }
  0x9e   :  { %v98_v31 = vadd.f32 %v153_v16, %v97_v29  ;;  %v103_v32 = vadd.f32 %v153_v16, %v102_v30 }
  0xa0   :  { %110 = vst [vmem:[%s240_s3 + $0x28] sm:$0xff] %v98_v31 }
  0xa1   :  { %112 = vst [vmem:[%s240_s3 + $0x38] sm:$0xff] %v103_v32 }

// kernel: _lambda_.40
= control target key start
LH: loop header
LB: loop body
LE: loop exit
PB: predicated region body
PF: predicated region fallthrough
CT: control target
= control target key end

     0   :  { %vm122_vm0 = vcmask 130048   ;;  %s1930_s1 = inlined_call_operand.vmem [shape: f32[12,16,16], index: 1, kind: input, shape index: {}]   ;;  %s1931_s0 = inlined_call_operand.vmem [shape: f32[12,16,16], index: 0, kind: input, shape index: {}]   ;;  %s1932_s2 = inlined_call_operand.vmem [shape: f32[12,16,16], index: 2, kind: input, shape index: {}]   ;;  %s1933_s3 = inlined_call_operand.vmem [shape: f32[12,16,16], index: 3, kind: output, shape index: {}]  }
   0x1   :  { %v63_v0 = vld [vmem:[%s1930_s1] sm:$0xff]  ;;  %v64_v1 = vld [vmem:[%s1930_s1 + $0x8] sm:$0xff]  ;;  %v65_v2 = vld [vmem:[%s1930_s1 + $0x10] sm:$0xff] }
   0x2   :  { %v87_v3 = vpack.c.bf16 %v63_v0, %v63_v0  ;;  %v88_v4 = vpack.c.bf16 %v64_v1, %v64_v1  ;;  %v66_v5 = vld [vmem:[%s1930_s1 + $0x18] sm:$0xff]  ;;  %v89_v6 = vpack.c.bf16 %v65_v2, %v65_v2  ;;  %v67_v7 = vld [vmem:[%s1930_s1 + $0x20] sm:$0xff]  ;;  %v68_v8 = vld [vmem:[%s1930_s1 + $0x28] sm:$0xff] }
   0x3   :  { %v90_v9 = vpack.c.bf16 %v66_v5, %v66_v5  ;;  %v91_v10 = vpack.c.bf16 %v67_v7, %v67_v7  ;;  %v92_v11 = vpack.c.bf16 %v68_v8, %v68_v8  ;;  %v69_v12 = vld [vmem:[%s1930_s1 + $0x30] sm:$0xff]  ;;  %v70_v13 = vld [vmem:[%s1930_s1 + $0x38] sm:$0xff]  ;;  %v15_v14 = vld [vmem:[%s1931_s0] sm:$0xff] }
   0x4   :  { %v118_v15 = vunpack.c.l.b16 %v87_v3  ;;  %v119_v16 = vunpack.c.l.b16 %v88_v4  ;;  %v147_v17 = vunpack.c.l.b16 %v89_v6  ;;  %v93_v18 = vpack.c.bf16 %v69_v12, %v69_v12  ;;  %v16_v19 = vld [vmem:[%s1931_s0 + $0x8] sm:$0xff]  ;;  %v17_v20 = vld [vmem:[%s1931_s0 + $0x10] sm:$0xff]  ;;  %v18_v25 = vld [vmem:[%s1931_s0 + $0x18] sm:$0xff] }
   0x5   :  { %v148_v21 = vunpack.c.l.b16 %v90_v9  ;;  %v175_v22 = vunpack.c.l.b16 %v91_v10  ;;  %v176_v23 = vunpack.c.l.b16 %v92_v11  ;;  %v94_v24 = vpack.c.bf16 %v70_v13, %v70_v13  ;;  %v19_v26 = vld [vmem:[%s1931_s0 + $0x20] sm:$0xff]  ;;  %v20_v31 = vld [vmem:[%s1931_s0 + $0x28] sm:$0xff]  ;;  %v21_v32 = vld [vmem:[%s1931_s0 + $0x30] sm:$0xff] }
   0x6   :  { %v120_v27 = vpack.c.b16 %v119_v16, %v118_v15  ;;  %v203_v28 = vunpack.c.l.b16 %v93_v18  ;;  %v39_v29 = vpack.c.bf16 %v15_v14, %v15_v14  ;;  %v40_v30 = vpack.c.bf16 %v16_v19, %v16_v19  ;;  %v22_v37 = vld [vmem:[%s1931_s0 + $0x38] sm:$0xff]  ;;  %v73_v42 = vld [vmem:[%s1930_s1 + $0x50] sm:$0xff]  ;;  %v75_v48 = vld [vmem:[%s1930_s1 + $0x60] sm:$0xff] }
   0x7   :  { %v149_v33 = vpack.c.b16 %v148_v21, %v147_v17  ;;  %v177_v34 = vpack.c.b16 %v176_v23, %v175_v22  ;;  %v204_v35 = vunpack.c.l.b16 %v94_v24  ;;  %v41_v36 = vpack.c.bf16 %v17_v20, %v17_v20  ;;  %v74_v43 = vld [vmem:[%s1930_s1 + $0x58] sm:$0xff]  ;;  %v76_v49 = vld [vmem:[%s1930_s1 + $0x68] sm:$0xff]  ;;  %v77_v54 = vld [vmem:[%s1930_s1 + $0x70] sm:$0xff] }
   0x8   :  { %133 = vmatpush.bf16.msra.mxu0 %v120_v27  ;;  %v113_v38 = vunpack.c.l.b16 %v39_v29  ;;  %v114_v39 = vunpack.c.l.b16 %v40_v30  ;;  %v42_v40 = vpack.c.bf16 %v18_v25, %v18_v25  ;;  %v43_v41 = vpack.c.bf16 %v19_v26, %v19_v26  ;;  %v78_v59 = vld [vmem:[%s1930_s1 + $0x78] sm:$0xff]  ;;  %v71_v0 = vld [vmem:[%s1930_s1 + $0x40] sm:$0xff]  ;;  %v72_v1 = vld [vmem:[%s1930_s1 + $0x48] sm:$0xff] }
   0x9   :  { %161 = vmatpush.bf16.msra.mxu1 %v149_v33  ;;  %189 = vmatpush.bf16.msra.mxu2 %v177_v34  ;;  %v205_v44 = vpack.c.b16 %v204_v35, %v203_v28  ;;  %v142_v45 = vunpack.c.l.b16 %v41_v36  ;;  %v44_v46 = vpack.c.bf16 %v20_v31, %v20_v31  ;;  %v45_v47 = vpack.c.bf16 %v21_v32, %v21_v32  ;;  %v25_v6 = vld [vmem:[%s1931_s0 + $0x50] sm:$0xff]  ;;  %v26_v7 = vld [vmem:[%s1931_s0 + $0x58] sm:$0xff]  ;;  %v27_v12 = vld [vmem:[%s1931_s0 + $0x60] sm:$0xff] }
   0xa   :  { %v115_v50 = vpack.c.b16 %v114_v39, %v113_v38  ;;  %v143_v51 = vunpack.c.l.b16 %v42_v40  ;;  %v170_v52 = vunpack.c.l.b16 %v43_v41  ;;  %v46_v53 = vpack.c.bf16 %v22_v37, %v22_v37  ;;  %v28_v13 = vld [vmem:[%s1931_s0 + $0x68] sm:$0xff]  ;;  %v29_v18 = vld [vmem:[%s1931_s0 + $0x70] sm:$0xff]  ;;  %v30_v23 = vld [vmem:[%s1931_s0 + $0x78] sm:$0xff] }
   0xb   :  { %217 = vmatpush.bf16.msra.mxu3 %v205_v44  ;;  %v171_v55 = vunpack.c.l.b16 %v44_v46  ;;  %v198_v56 = vunpack.c.l.b16 %v45_v47  ;;  %v97_v57 = vpack.c.bf16 %v73_v42, %v73_v42  ;;  %v98_v58 = vpack.c.bf16 %v74_v43, %v74_v43  ;;  %v23_v28 = vld [vmem:[%s1931_s0 + $0x40] sm:$0xff]  ;;  %v24_v29 = vld [vmem:[%s1931_s0 + $0x48] sm:$0xff]  ;;  %v85_v37 = vld [vmem:[%s1930_s1 + $0xb0] sm:$0xff] }
   0xc   :  { %1231 = vmatmul.msk.bf16.vlgmr.msra.gmra.mxu0 %vm122_vm0, %v115_v50  ;;  %v144_v60 = vpack.c.b16 %v143_v51, %v142_v45  ;;  %v199_v61 = vunpack.c.l.b16 %v46_v53  ;;  %v99_v62 = vpack.c.bf16 %v75_v48, %v75_v48  ;;  %v100_v63 = vpack.c.bf16 %v76_v49, %v76_v49  ;;  %v83_v32 = vld [vmem:[%s1930_s1 + $0xa0] sm:$0xff]  ;;  %v84_v33 = vld [vmem:[%s1930_s1 + $0xa8] sm:$0xff]  ;;  %v86_v38 = vld [vmem:[%s1930_s1 + $0xb8] sm:$0xff] }
   0xd   :  { %v172_v2 = vpack.c.b16 %v171_v55, %v170_v52  ;;  %v259_v3 = vunpack.c.l.b16 %v97_v57  ;;  %v260_v4 = vunpack.c.l.b16 %v98_v58  ;;  %v101_v5 = vpack.c.bf16 %v77_v54, %v77_v54  ;;  %v79_v43 = vld [vmem:[%s1930_s1 + $0x80] sm:$0xff]  ;;  %v80_v48 = vld [vmem:[%s1930_s1 + $0x88] sm:$0xff] }
   0xe   :  { %1232 = vmatmul.msk.bf16.vlgmr.msra.gmra.mxu1 %vm122_vm0, %v144_v60  ;;  %v200_v8 = vpack.c.b16 %v199_v61, %v198_v56  ;;  %v287_v9 = vunpack.c.l.b16 %v99_v62  ;;  %v288_v10 = vunpack.c.l.b16 %v100_v63  ;;  %v102_v11 = vpack.c.bf16 %v78_v59, %v78_v59  ;;  %v81_v63 = vld [vmem:[%s1930_s1 + $0x90] sm:$0xff] }
   0xf   :  { %1233 = vmatmul.msk.bf16.vlgmr.msra.gmra.mxu2 %vm122_vm0, %v172_v2  ;;  %v261_v14 = vpack.c.b16 %v260_v4, %v259_v3  ;;  %v315_v15 = vunpack.c.l.b16 %v101_v5  ;;  %v95_v16 = vpack.c.bf16 %v71_v0, %v71_v0  ;;  %v96_v17 = vpack.c.bf16 %v72_v1, %v72_v1  ;;  %v82_v3 = vld [vmem:[%s1930_s1 + $0x98] sm:$0xff] }
  0x10   :  { %1234 = vmatmul.msk.bf16.vlgmr.msra.gmra.mxu3 %vm122_vm0, %v200_v8  ;;  %v289_v19 = vpack.c.b16 %v288_v10, %v287_v9  ;;  %v316_v20 = vunpack.c.l.b16 %v102_v11  ;;  %v49_v21 = vpack.c.bf16 %v25_v6, %v25_v6  ;;  %v50_v22 = vpack.c.bf16 %v26_v7, %v26_v7  ;;  %v31_v8 = vld [vmem:[%s1931_s0 + $0x80] sm:$0xff]  ;;  %v32_v9 = vld [vmem:[%s1931_s0 + $0x88] sm:$0xff] }
  0x11   :  { %273 = vmatpush.bf16.msrb.mxu1 %v261_v14  ;;  %v231_v24 = vunpack.c.l.b16 %v95_v16  ;;  %v232_v25 = vunpack.c.l.b16 %v96_v17  ;;  %v51_v26 = vpack.c.bf16 %v27_v12, %v27_v12  ;;  %v52_v27 = vpack.c.bf16 %v28_v13, %v28_v13  ;;  %v33_v13 = vld [vmem:[%s1931_s0 + $0x90] sm:$0xff]  ;;  %v34_v14 = vld [vmem:[%s1931_s0 + $0x98] sm:$0xff]  ;;  %v36_v16 = vld [vmem:[%s1931_s0 + $0xa8] sm:$0xff] }
  0x12   :  { %301 = vmatpush.bf16.msrb.mxu2 %v289_v19  ;;  %v317_v30 = vpack.c.b16 %v316_v20, %v315_v15  ;;  %v53_v31 = vpack.c.bf16 %v29_v18, %v29_v18  ;;  %v254_v35 = vunpack.c.l.b16 %v49_v21  ;;  %v54_v36 = vpack.c.bf16 %v30_v23, %v30_v23  ;;  %v35_v15 = vld [vmem:[%s1931_s0 + $0xa0] sm:$0xff]  ;;  %v37_v19 = vld [vmem:[%s1931_s0 + $0xb0] sm:$0xff]  ;;  %v38_v20 = vld [vmem:[%s1931_s0 + $0xb8] sm:$0xff] }
  0x13   :  { %v233_v34 = vpack.c.b16 %v232_v25, %v231_v24  ;;  %v255_v39 = vunpack.c.l.b16 %v50_v22  ;;  %v282_v40 = vunpack.c.l.b16 %v51_v26  ;;  %v47_v41 = vpack.c.bf16 %v23_v28, %v23_v28 }
  0x14   :  { %329 = vmatpush.bf16.msrb.mxu3 %v317_v30  ;;  %v48_v42 = vpack.c.bf16 %v24_v29, %v24_v29  ;;  %v283_v44 = vunpack.c.l.b16 %v52_v27  ;;  %v310_v45 = vunpack.c.l.b16 %v53_v31  ;;  %v107_v46 = vpack.c.bf16 %v83_v32, %v83_v32 }
  0x15   :  { %245 = vmatpush.bf16.msrb.mxu0 %v233_v34  ;;  %v108_v47 = vpack.c.bf16 %v84_v33, %v84_v33  ;;  %v226_v49 = vunpack.c.l.b16 %v47_v41  ;;  %v109_v51 = vpack.c.bf16 %v85_v37, %v85_v37  ;;  %v110_v52 = vpack.c.bf16 %v86_v38, %v86_v38 }
  0x16   :  { %v227_v50 = vunpack.c.l.b16 %v48_v42  ;;  %v311_v53 = vunpack.c.l.b16 %v54_v36  ;;  %v399_v54 = vunpack.c.l.b16 %v107_v46  ;;  %v103_v56 = vpack.c.bf16 %v79_v43, %v79_v43 }
  0x17   :  { %v400_v55 = vunpack.c.l.b16 %v108_v47  ;;  %v427_v58 = vunpack.c.l.b16 %v109_v51  ;;  %v428_v59 = vunpack.c.l.b16 %v110_v52  ;;  %v104_v60 = vpack.c.bf16 %v80_v48, %v80_v48 }
  0x18   :  { %v228_v57 = vpack.c.b16 %v227_v50, %v226_v49  ;;  %v343_v62 = vunpack.c.l.b16 %v103_v56  ;;  %v256_v0 = vpack.c.b16 %v255_v39, %v254_v35  ;;  %v284_v4 = vpack.c.b16 %v283_v44, %v282_v40  ;;  %v749_v44 = vld [vmem:[%s1932_s2 + $0x10] sm:$0xff] }
  0x19   :  { %v401_v61 = vpack.c.b16 %v400_v55, %v399_v54  ;;  %v429_v1 = vpack.c.b16 %v428_v59, %v427_v58  ;;  %v344_v2 = vunpack.c.l.b16 %v104_v60  ;;  %v312_v5 = vpack.c.b16 %v311_v53, %v310_v45 }
  0x1a   :  { %v105_v7 = vpack.c.bf16 %v81_v63, %v81_v63  ;;  %v106_v10 = vpack.c.bf16 %v82_v3, %v82_v3  ;;  %v55_v17 = vpack.c.bf16 %v31_v8, %v31_v8  ;;  %v56_v18 = vpack.c.bf16 %v32_v9, %v32_v9 }
  0x1b   :  { %413 = vmatpush.bf16.msra.mxu2 %v401_v61  ;;  %441 = vmatpush.bf16.msra.mxu3 %v429_v1  ;;  %v345_v6 = vpack.c.b16 %v344_v2, %v343_v62  ;;  %v57_v22 = vpack.c.bf16 %v33_v13, %v33_v13  ;;  %v58_v23 = vpack.c.bf16 %v34_v14, %v34_v14  ;;  %v472_v40 = vlaneseq }
  0x1c   :  { %1235 = vmatmul.msk.bf16.vlgmr.msrb.gmra.mxu0 %vm122_vm0, %v228_v57  ;;  %v371_v11 = vunpack.c.l.b16 %v105_v7  ;;  %v372_v12 = vunpack.c.l.b16 %v106_v10  ;;  %v59_v24 = vpack.c.bf16 %v35_v15, %v35_v15  ;;  %v60_v25 = vpack.c.bf16 %v36_v16, %v36_v16 }
  0x1d   :  { %357 = vmatpush.bf16.msra.mxu0 %v345_v6  ;;  %v61_v26 = vpack.c.bf16 %v37_v19, %v37_v19  ;;  %v62_v27 = vpack.c.bf16 %v38_v20, %v38_v20  ;;  %v338_v28 = vunpack.c.l.b16 %v55_v17  ;;  %v339_v29 = vunpack.c.l.b16 %v56_v18 }
  0x1e   :  { %1236 = vmatmul.msk.bf16.vlgmr.msrb.gmra.mxu1 %vm122_vm0, %v256_v0  ;;  %v373_v21 = vpack.c.b16 %v372_v12, %v371_v11  ;;  %v366_v30 = vunpack.c.l.b16 %v57_v22  ;;  %v367_v31 = vunpack.c.l.b16 %v58_v23  ;;  %v394_v32 = vunpack.c.l.b16 %v59_v24 }
  0x1f   :  { %1237 = vmatmul.msk.bf16.vlgmr.msrb.gmra.mxu2 %vm122_vm0, %v284_v4  ;;  %v395_v33 = vunpack.c.l.b16 %v60_v25  ;;  %v422_v34 = vunpack.c.l.b16 %v61_v26  ;;  %v423_v35 = vunpack.c.l.b16 %v62_v27  ;;  %v340_v36 = vpack.c.b16 %v339_v29, %v338_v28 }
  0x20   :  { %1238 = vmatmul.msk.bf16.vlgmr.msrb.gmra.mxu3 %vm122_vm0, %v312_v5  ;;  %385 = vmatpush.bf16.msra.mxu1 %v373_v21  ;;  %v368_v37 = vpack.c.b16 %v367_v31, %v366_v30  ;;  %v473_v41 = vshrl.u32 %v472_v40, 7  ;;  %v476_v42 = vand.u32 127, %v472_v40 }
  0x21   :  { %v396_v38 = vpack.c.b16 %v395_v33, %v394_v32  ;;  %v424_v39 = vpack.c.b16 %v423_v35, %v422_v34 }
  0x22   :  { %vm1527_vm1 = vcmp.le.s32.totalorder %v476_v42, %v473_v41  ;;  %v474_v50 = vadd.s32 8, %v473_v41 }
  0x24   :  { %vm1543_vm2 = vcmp.le.s32.totalorder %v476_v42, %v474_v50 }
  0x2c   :  { %1239 = vmatmul.msk.bf16.vlgmr.msra.gmra.mxu0 %vm122_vm0, %v340_v36 }
  0x2e   :  { %1240 = vmatmul.msk.bf16.vlgmr.msra.gmra.mxu1 %vm122_vm0, %v368_v37 }
  0x2f   :  { %1241 = vmatmul.msk.bf16.vlgmr.msra.gmra.mxu2 %vm122_vm0, %v396_v38 }
  0x30   :  { %1242 = vmatmul.msk.bf16.vlgmr.msra.gmra.mxu3 %vm122_vm0, %v424_v39 }
  0x89   :  { %v135_v43 = vpop.f32.mrf.mxu0 }
  0x8a   :  { %v448_v45 = vmul.f32 0.25, %v135_v43 }
  0x8b   :  { %v163_v46 = vpop.f32.mrf.mxu1 }
  0x8c   :  { %v450_v47 = vmul.f32 0.25, %v163_v46  ;;  %v1533_v48 = vsel %vm1527_vm1, %v448_v45, -1e+30 }
  0x8d   :  { %v507_v49 = vsel %vm122_vm0, %v1533_v48, -inf }
  0x8e   :  { %v1539_v51 = vsel %vm1527_vm1, %v450_v47, -1e+30  ;;  %508 = vmax.xlane.f32.xlu2 %v507_v49 }
  0x8f   :  { %v513_v52 = vsel %vm122_vm0, %v1539_v51, -inf }
  0x90   :  { %514 = vmax.xlane.f32.xlu0 %v513_v52 }
  0x91   :  { %v137_v53 = vpop.f32.mrf.mxu0 }
  0x92   :  { %v191_v55 = vpop.f32.mrf.mxu2  ;;  %v449_v56 = vmul.f32 0.25, %v137_v53 }
  0x93   :  { %v452_v57 = vmul.f32 0.25, %v191_v55  ;;  %v219_v58 = vpop.f32.mrf.mxu3  ;;  %v165_v59 = vpop.f32.mrf.mxu1 }
  0x94   :  { %v454_v60 = vmul.f32 0.25, %v219_v58  ;;  %v1549_v61 = vsel %vm1543_vm2, %v449_v56, -1e+30  ;;  %v451_v3 = vmul.f32 0.25, %v165_v59 }
  0x95   :  { %v1553_v62 = vsel %vm1527_vm1, %v452_v57, -1e+30  ;;  %v510_v63 = vsel %vm122_vm0, %v1549_v61, -inf }
  0x96   :  { %v1559_v0 = vsel %vm1527_vm1, %v454_v60, -1e+30  ;;  %v519_v1 = vsel %vm122_vm0, %v1553_v62, -inf  ;;  %511 = vmax.xlane.f32.xlu2 %v510_v63  ;;  %v1567_v10 = vsel %vm1543_vm2, %v451_v3, -1e+30 }
  0x97   :  { %v525_v2 = vsel %vm122_vm0, %v1559_v0, -inf  ;;  %v516_v14 = vsel %vm122_vm0, %v1567_v10, -inf }
  0x98   :  { %526 = vmax.xlane.f32.xlu1 %v525_v2  ;;  %520 = vmax.xlane.f32.xlu0 %v519_v1 }
  0x99   :  { %v247_v5 = vpop.f32.mrf.mxu0 }
  0x9a   :  { %v193_v4 = vpop.f32.mrf.mxu2  ;;  %v456_v13 = vmul.f32 0.25, %v247_v5 }
  0x9b   :  { %v453_v6 = vmul.f32 0.25, %v193_v4  ;;  %v221_v7 = vpop.f32.mrf.mxu3  ;;  %v275_v8 = vpop.f32.mrf.mxu1 }
  0x9c   :  { %v458_v9 = vmul.f32 0.25, %v275_v8  ;;  %v455_v17 = vmul.f32 0.25, %v221_v7  ;;  %v1585_v19 = vsel %vm1527_vm1, %v456_v13, -1e+30 }
  0x9d   :  { %v1571_v11 = vsel %vm1543_vm2, %v453_v6, -1e+30  ;;  %v531_v25 = vsel %vm122_vm0, %v1585_v19, -inf }
  0x9e   :  { %v1575_v12 = vsel %vm1527_vm1, %v458_v9, -1e+30  ;;  %v522_v15 = vsel %vm122_vm0, %v1571_v11, -inf  ;;  %v1589_v22 = vsel %vm1543_vm2, %v455_v17, -1e+30 }
  0x9f   :  { %v537_v16 = vsel %vm122_vm0, %v1575_v12, -inf  ;;  %v528_v28 = vsel %vm122_vm0, %v1589_v22, -inf }
  0xa0   :  { %517 = vmax.xlane.f32.xlu1 %v516_v14  ;;  %523 = vmax.xlane.f32.xlu0 %v522_v15 }
  0xa1   :  { %538 = vmax.xlane.f32.xlu2 %v537_v16  ;;  %v249_v23 = vpop.f32.mrf.mxu0 }
  0xa2   :  { %v303_v18 = vpop.f32.mrf.mxu2  ;;  %v457_v42 = vmul.f32 0.25, %v249_v23 }
  0xa3   :  { %v460_v20 = vmul.f32 0.25, %v303_v18  ;;  %v331_v21 = vpop.f32.mrf.mxu3  ;;  %v277_v33 = vpop.f32.mrf.mxu1 }
  0xa4   :  { %v462_v26 = vmul.f32 0.25, %v331_v21  ;;  %v459_v41 = vmul.f32 0.25, %v277_v33  ;;  %v1625_v49 = vsel %vm1543_vm2, %v457_v42, -1e+30 }
  0xa5   :  { %v1593_v24 = vsel %vm1527_vm1, %v460_v20, -1e+30  ;;  %v534_v56 = vsel %vm122_vm0, %v1625_v49, -inf }
  0xa6   :  { %v543_v27 = vsel %vm122_vm0, %v1593_v24, -inf  ;;  %v1603_v30 = vsel %vm1527_vm1, %v462_v26, -1e+30  ;;  %v1629_v50 = vsel %vm1543_vm2, %v459_v41, -1e+30  ;;  %v747_v26 = vld [vmem:[%s1932_s2] sm:$0xff] }
  0xa7   :  { %v549_v35 = vsel %vm122_vm0, %v1603_v30, -inf  ;;  %v540_v57 = vsel %vm122_vm0, %v1629_v50, -inf }
  0xa8   :  { %529 = vmax.xlane.f32.xlu1 %v528_v28  ;;  %532 = vmax.xlane.f32.xlu0 %v531_v25  ;;  %v771_v28 = vpack.c.bf16 %v747_v26, %v747_v26 }
  0xa9   :  { %544 = vmax.xlane.f32.xlu2 %v543_v27  ;;  %v359_v38 = vpop.f32.mrf.mxu0  ;;  %v748_v27 = vld [vmem:[%s1932_s2 + $0x8] sm:$0xff] }
  0xaa   :  { %v305_v29 = vpop.f32.mrf.mxu2  ;;  %v464_v40 = vmul.f32 0.25, %v359_v38 }
  0xab   :  { %v461_v31 = vmul.f32 0.25, %v305_v29  ;;  %v333_v32 = vpop.f32.mrf.mxu3  ;;  %v387_v52 = vpop.f32.mrf.mxu1  ;;  %v772_v29 = vpack.c.bf16 %v748_v27, %v748_v27  ;;  %v759_v27 = vld [vmem:[%s1932_s2 + $0x60] sm:$0xff] }
  0xac   :  { %v463_v34 = vmul.f32 0.25, %v333_v32  ;;  %v1621_v47 = vsel %vm1527_vm1, %v464_v40, -1e+30  ;;  %v466_v21 = vmul.f32 0.25, %v387_v52  ;;  %v752_v40 = vld [vmem:[%s1932_s2 + $0x28] sm:$0xff] }
  0xad   :  { %v1609_v36 = vsel %vm1543_vm2, %v461_v31, -1e+30  ;;  %v555_v55 = vsel %vm122_vm0, %v1621_v47, -inf  ;;  %v802_v31 = vunpack.c.l.b16 %v771_v28  ;;  %v803_v32 = vunpack.c.l.b16 %v772_v29  ;;  %v760_v28 = vld [vmem:[%s1932_s2 + $0x68] sm:$0xff] }
  0xae   :  { %v1613_v37 = vsel %vm1543_vm2, %v463_v34, -1e+30  ;;  %v546_v39 = vsel %vm122_vm0, %v1609_v36, -inf  ;;  %v1675_v25 = vsel %vm1527_vm1, %v466_v21, -1e+30  ;;  %v750_v34 = vld [vmem:[%s1932_s2 + $0x18] sm:$0xff]  ;;  %v776_v42 = vpack.c.bf16 %v752_v40, %v752_v40 }
  0xaf   :  { %v552_v43 = vsel %vm122_vm0, %v1613_v37, -inf  ;;  %v561_v54 = vsel %vm122_vm0, %v1675_v25, -inf  ;;  %v804_v33 = vpack.c.b16 %v803_v32, %v802_v31  ;;  %v774_v38 = vpack.c.bf16 %v750_v34, %v750_v34  ;;  %v761_v40 = vld [vmem:[%s1932_s2 + $0x70] sm:$0xff] }
  0xb0   :  { %550 = vmax.xlane.f32.xlu1 %v549_v35  ;;  %547 = vmax.xlane.f32.xlu0 %v546_v39  ;;  %v773_v35 = vpack.c.bf16 %v749_v44, %v749_v44  ;;  %v751_v39 = vld [vmem:[%s1932_s2 + $0x20] sm:$0xff]  ;;  %v859_v52 = vunpack.c.l.b16 %v776_v42  ;;  %v784_v32 = vpack.c.bf16 %v760_v28, %v760_v28 }
  0xb1   :  { %553 = vmax.xlane.f32.xlu2 %v552_v43  ;;  %v361_v2 = vpop.f32.mrf.mxu0  ;;  %816 = vmatpush.bf16.msrb.mxu0 %v804_v33  ;;  %v775_v41 = vpack.c.bf16 %v751_v39, %v751_v39  ;;  %v755_v42 = vld [vmem:[%s1932_s2 + $0x40] sm:$0xff] }
  0xb2   :  { %v415_v45 = vpop.f32.mrf.mxu2  ;;  %v465_v8 = vmul.f32 0.25, %v361_v2  ;;  %v830_v43 = vunpack.c.l.b16 %v773_v35  ;;  %v971_v44 = vunpack.c.l.b16 %v784_v32 }
  0xb3   :  { %v443_v46 = vpop.f32.mrf.mxu3  ;;  %v468_v53 = vmul.f32 0.25, %v415_v45  ;;  %v389_v6 = vpop.f32.mrf.mxu1  ;;  %v831_v45 = vunpack.c.l.b16 %v774_v38 }
  0xb4   :  { %v470_v58 = vmul.f32 0.25, %v443_v46  ;;  %v467_v14 = vmul.f32 0.25, %v389_v6  ;;  %v1661_v16 = vsel %vm1543_vm2, %v465_v8, -1e+30  ;;  %v858_v46 = vunpack.c.l.b16 %v775_v41  ;;  %v762_v41 = vld [vmem:[%s1932_s2 + $0x78] sm:$0xff] }
  0xb5   :  { %v1639_v60 = vsel %vm1527_vm1, %v468_v53, -1e+30  ;;  %v558_v20 = vsel %vm122_vm0, %v1661_v16, -inf  ;;  %v832_v53 = vpack.c.b16 %v831_v45, %v830_v43 }
  0xb6   :  { %v1643_v1 = vsel %vm1527_vm1, %v470_v58, -1e+30  ;;  %v567_v4 = vsel %vm122_vm0, %v1639_v60, -inf  ;;  %v1665_v17 = vsel %vm1543_vm2, %v467_v14, -1e+30 }
  0xb7   :  { %v573_v7 = vsel %vm122_vm0, %v1643_v1, -inf  ;;  %v564_v23 = vsel %vm122_vm0, %v1665_v17, -inf  ;;  %844 = vmatpush.bf16.msrb.mxu1 %v832_v53  ;;  %v785_v53 = vpack.c.bf16 %v761_v40, %v761_v40 }
  0xb8   :  { %535 = vmax.xlane.f32.xlu1 %v534_v56  ;;  %541 = vmax.xlane.f32.xlu0 %v540_v57  ;;  %v860_v57 = vpack.c.b16 %v859_v52, %v858_v46 }
  0xb9   :  { %556 = vmax.xlane.f32.xlu2 %v555_v55 }
  0xba   :  { %v417_v59 = vpop.f32.mrf.mxu2  ;;  %872 = vmatpush.bf16.msrb.mxu2 %v860_v57  ;;  %v779_v57 = vpack.c.bf16 %v755_v42, %v755_v42 }
  0xbb   :  { %v469_v63 = vmul.f32 0.25, %v417_v59  ;;  %v445_v3 = vpop.f32.mrf.mxu3  ;;  %v753_v59 = vld [vmem:[%s1932_s2 + $0x30] sm:$0xff] }
  0xbc   :  { %v471_v9 = vmul.f32 0.25, %v445_v3 }
  0xbd   :  { %v1649_v5 = vsel %vm1543_vm2, %v469_v63, -1e+30  ;;  %v754_v63 = vld [vmem:[%s1932_s2 + $0x38] sm:$0xff] }
  0xbe   :  { %v570_v13 = vsel %vm122_vm0, %v1649_v5, -inf  ;;  %v1657_v15 = vsel %vm1543_vm2, %v471_v9, -1e+30  ;;  %v778_v6 = vpack.c.bf16 %v754_v63, %v754_v63 }
  0xbf   :  { %v576_v18 = vsel %vm122_vm0, %v1657_v15, -inf }
  0xc0   :  { %568 = vmax.xlane.f32.xlu1 %v567_v4  ;;  %574 = vmax.xlane.f32.xlu0 %v573_v7  ;;  %v777_v4 = vpack.c.bf16 %v753_v59, %v753_v59  ;;  %v887_v8 = vunpack.c.l.b16 %v778_v6 }
  0xc1   :  { %571 = vmax.xlane.f32.xlu2 %v570_v13 }
  0xc8   :  { %577 = vmax.xlane.f32.xlu1 %v576_v18  ;;  %559 = vmax.xlane.f32.xlu0 %v558_v20 }
  0xc9   :  { %565 = vmax.xlane.f32.xlu2 %v564_v23 }
  0xd0   :  { %562 = vmax.xlane.f32.xlu1 %v561_v54 }
 0x101   :  { %v509_v55 = vpop.xlane.xlu2 %508 }
 0x102   :  { %v579_v56 = vsub.f32 %v1533_v48, %v509_v55  ;;  %v886_v48 = vunpack.c.l.b16 %v777_v4  ;;  %v786_v55 = vpack.c.bf16 %v762_v41, %v762_v41  ;;  %v756_v4 = vld [vmem:[%s1932_s2 + $0x48] sm:$0xff] }
 0x103   :  { %v515_v58 = vpop.xlane.xlu0 %514 }
 0x104   :  { %v581_v2 = vsub.f32 %v1539_v51, %v515_v58  ;;  %v603_v3 = vmul.f32 1.442695, %v579_v56  ;;  %v888_v9 = vpack.c.b16 %v887_v8, %v886_v48  ;;  %v757_v48 = vld [vmem:[%s1932_s2 + $0x50] sm:$0xff] }
 0x106   :  { %v607_v7 = vmul.f32 1.442695, %v581_v2  ;;  %1255 = vpow2.f32 %v603_v3  ;;  %900 = vmatpush.bf16.msrb.mxu3 %v888_v9  ;;  %v998_v2 = vunpack.c.l.b16 %v785_v53  ;;  %v999_v3 = vunpack.c.l.b16 %v786_v55 }
 0x108   :  { %1257 = vpow2.f32 %v607_v7  ;;  %v1000_v9 = vpack.c.b16 %v999_v3, %v998_v2 }
 0x109   :  { %v512_v13 = vpop.xlane.xlu2 %511 }
 0x10a   :  { %v580_v14 = vsub.f32 %v1549_v61, %v512_v13  ;;  %v758_v13 = vld [vmem:[%s1932_s2 + $0x58] sm:$0xff]  ;;  %1012 = vmatpush.bf16.msra.mxu3 %v1000_v9 }
 0x10b   :  { %v527_v18 = vpop.xlane.xlu1 %526  ;;  %v521_v20 = vpop.xlane.xlu0 %520  ;;  %v782_v28 = vpack.c.bf16 %v758_v13, %v758_v13 }
 0x10c   :  { %v1256_v21 = vpop.eup %1255  ;;  %v585_v23 = vsub.f32 %v1559_v0, %v527_v18  ;;  %v583_v51 = vsub.f32 %v1553_v62, %v521_v20  ;;  %v605_v54 = vmul.f32 1.442695, %v580_v14  ;;  %v783_v0 = vpack.c.bf16 %v759_v27, %v759_v27 }
 0x10d   :  { %v651_v26 = vsel %vm122_vm0, %v1256_v21, 0.0  ;;  %v723_v34 = vpack.c.bf16 %v1256_v21, %v1256_v21  ;;  %v780_v18 = vpack.c.bf16 %v756_v4, %v756_v4  ;;  %v914_v20 = vunpack.c.l.b16 %v779_v57 }
 0x10e   :  { %v1715_v61 = vpop.eup %1257  ;;  %v615_v29 = vmul.f32 1.442695, %v585_v23  ;;  %v611_v31 = vmul.f32 1.442695, %v583_v51  ;;  %1259 = vpow2.f32 %v605_v54  ;;  %652 = vadd.xlane.f32.xlu0 %v651_v26  ;;  %v970_v33 = vunpack.c.l.b16 %v783_v0 }
 0x10f   :  { %v657_v62 = vsel %vm122_vm0, %v1715_v61, 0.0  ;;  %v797_v6 = vunpack.c.l.b16 %v723_v34  ;;  %v781_v21 = vpack.c.bf16 %v757_v48, %v757_v48  ;;  %v725_v23 = vpack.c.bf16 %v1715_v61, %v1715_v61 }
 0x110   :  { %1261 = vpow2.f32 %v615_v29  ;;  %658 = vadd.xlane.f32.xlu2 %v657_v62  ;;  %v972_v39 = vpack.c.b16 %v971_v44, %v970_v33  ;;  %v915_v27 = vunpack.c.l.b16 %v780_v18  ;;  %v943_v34 = vunpack.c.l.b16 %v782_v28 }
 0x111   :  { %1263 = vpow2.f32 %v611_v31  ;;  %v942_v32 = vunpack.c.l.b16 %v781_v21  ;;  %v825_v55 = vunpack.c.l.b16 %v725_v23  ;;  %v763_v23 = vld [vmem:[%s1932_s2 + $0x80] sm:$0xff] }
 0x112   :  { %984 = vmatpush.bf16.msra.mxu2 %v972_v39  ;;  %v916_v44 = vpack.c.b16 %v915_v27, %v914_v20 }
 0x113   :  { %v518_v35 = vpop.xlane.xlu1 %517  ;;  %v524_v38 = vpop.xlane.xlu0 %523 }
 0x114   :  { %v1260_v43 = vpop.eup %1259  ;;  %v582_v45 = vsub.f32 %v1567_v10, %v518_v35  ;;  %v584_v46 = vsub.f32 %v1571_v11, %v524_v38  ;;  %v1730_v52 = vpop.xlane.xlu2 %538  ;;  %v768_v35 = vld [vmem:[%s1932_s2 + $0xa8] sm:$0xff]  ;;  %928 = vmatpush.bf16.msra.mxu0 %v916_v44 }
 0x115   :  { %v724_v56 = vpack.c.bf16 %v1260_v43, %v1260_v43  ;;  %v589_v51 = vsub.f32 %v1575_v12, %v1730_v52  ;;  %v654_v62 = vsel %vm122_vm0, %v1260_v43, 0.0  ;;  %v767_v12 = vld [vmem:[%s1932_s2 + $0xa0] sm:$0xff]  ;;  %v792_v40 = vpack.c.bf16 %v768_v35, %v768_v35 }
 0x116   :  { %v1732_v58 = vpop.eup %1261  ;;  %v609_v59 = vmul.f32 1.442695, %v582_v45  ;;  %v613_v63 = vmul.f32 1.442695, %v584_v46  ;;  %v944_v45 = vpack.c.b16 %v943_v34, %v942_v32 }
 0x117   :  { %v1264_v10 = vpop.eup %1263  ;;  %v798_v11 = vunpack.c.l.b16 %v724_v56  ;;  %v669_v7 = vsel %vm122_vm0, %v1732_v58, 0.0  ;;  %v623_v57 = vmul.f32 1.442695, %v589_v51  ;;  %v1083_v2 = vunpack.c.l.b16 %v792_v40  ;;  %v766_v40 = vld [vmem:[%s1932_s2 + $0x98] sm:$0xff] }
 0x118   :  { %1265 = vpow2.f32 %v609_v59  ;;  %v663_v8 = vsel %vm122_vm0, %v1264_v10, 0.0  ;;  %670 = vadd.xlane.f32.xlu0 %v669_v7  ;;  %v727_v33 = vpack.c.bf16 %v1264_v10, %v1264_v10  ;;  %956 = vmatpush.bf16.msra.mxu1 %v944_v45 }
 0x119   :  { %v799_v14 = vpack.c.b16 %v798_v11, %v797_v6  ;;  %1267 = vpow2.f32 %v613_v63  ;;  %664 = vadd.xlane.f32.xlu1 %v663_v8  ;;  %v769_v6 = vld [vmem:[%s1932_s2 + $0xb0] sm:$0xff]  ;;  %v770_v11 = vld [vmem:[%s1932_s2 + $0xb8] sm:$0xff] }
 0x11a   :  { %v853_v59 = vunpack.c.l.b16 %v727_v33  ;;  %v793_v20 = vpack.c.bf16 %v769_v6, %v769_v6  ;;  %v794_v21 = vpack.c.bf16 %v770_v11, %v770_v11 }
 0x11b   :  { %v530_v54 = vpop.xlane.xlu1 %529  ;;  %v533_v26 = vpop.xlane.xlu0 %532  ;;  %1243 = vmatmul.msk.bf16.vlgmr.msrb.gmra.mxu0 %vm122_vm0, %v799_v14  ;;  %v729_v14 = vpack.c.bf16 %v1732_v58, %v1732_v58  ;;  %v787_v58 = vpack.c.bf16 %v763_v23, %v763_v23 }
 0x11c   :  { %v586_v29 = vsub.f32 %v1589_v22, %v530_v54  ;;  %v545_v31 = vpop.xlane.xlu2 %544  ;;  %v587_v0 = vsub.f32 %v1585_v19, %v533_v26  ;;  %v791_v19 = vpack.c.bf16 %v767_v12, %v767_v12  ;;  %v1110_v28 = vunpack.c.l.b16 %v793_v20 }
 0x11d   :  { %v591_v61 = vsub.f32 %v1593_v24, %v545_v31  ;;  %v1111_v32 = vunpack.c.l.b16 %v794_v21  ;;  %v881_v33 = vunpack.c.l.b16 %v729_v14  ;;  %v1026_v12 = vunpack.c.l.b16 %v787_v58 }
 0x11e   :  { %v1266_v22 = vpop.eup %1265  ;;  %v617_v38 = vmul.f32 1.442695, %v586_v29  ;;  %v619_v39 = vmul.f32 1.442695, %v587_v0  ;;  %v1082_v53 = vunpack.c.l.b16 %v791_v19  ;;  %v765_v19 = vld [vmem:[%s1932_s2 + $0x90] sm:$0xff] }
 0x11f   :  { %v1268_v41 = vpop.eup %1267  ;;  %v726_v42 = vpack.c.bf16 %v1266_v22, %v1266_v22  ;;  %v627_v43 = vmul.f32 1.442695, %v591_v61  ;;  %v660_v24 = vsel %vm122_vm0, %v1266_v22, 0.0  ;;  %v1112_v34 = vpack.c.b16 %v1111_v32, %v1110_v28 }
 0x120   :  { %v728_v46 = vpack.c.bf16 %v1268_v41, %v1268_v41  ;;  %1269 = vpow2.f32 %v617_v38  ;;  %v666_v52 = vsel %vm122_vm0, %v1268_v41, 0.0  ;;  %661 = vadd.xlane.f32.xlu0 %v660_v24  ;;  %v1084_v13 = vpack.c.b16 %v1083_v2, %v1082_v53 }
 0x121   :  { %v826_v56 = vunpack.c.l.b16 %v726_v42  ;;  %1271 = vpow2.f32 %v627_v43  ;;  %655 = vadd.xlane.f32.xlu1 %v654_v62  ;;  %667 = vadd.xlane.f32.xlu2 %v666_v52  ;;  %v789_v45 = vpack.c.bf16 %v765_v19, %v765_v19 }
 0x122   :  { %v854_v63 = vunpack.c.l.b16 %v728_v46  ;;  %1273 = vpow2.f32 %v619_v39  ;;  %v790_v46 = vpack.c.bf16 %v766_v40, %v766_v40 }
 0x123   :  { %v827_v3 = vpack.c.b16 %v826_v56, %v825_v55  ;;  %v551_v4 = vpop.xlane.xlu1 %550  ;;  %v548_v10 = vpop.xlane.xlu0 %547  ;;  %1275 = vpow2.f32 %v623_v57  ;;  %v1054_v57 = vunpack.c.l.b16 %v789_v45 }
 0x124   :  { %v855_v7 = vpack.c.b16 %v854_v63, %v853_v59  ;;  %v593_v48 = vsub.f32 %v1603_v30, %v551_v4  ;;  %v554_v8 = vpop.xlane.xlu2 %553  ;;  %v592_v9 = vsub.f32 %v1609_v36, %v548_v10  ;;  %v764_v30 = vld [vmem:[%s1932_s2 + $0x88] sm:$0xff]  ;;  %v1055_v59 = vunpack.c.l.b16 %v790_v46 }
 0x125   :  { %1244 = vmatmul.msk.bf16.vlgmr.msrb.gmra.mxu1 %vm122_vm0, %v827_v3  ;;  %v594_v18 = vsub.f32 %v1613_v37, %v554_v8  ;;  %v788_v29 = vpack.c.bf16 %v764_v30, %v764_v30 }
 0x126   :  { %v1270_v51 = vpop.eup %1269  ;;  %v631_v36 = vmul.f32 1.442695, %v593_v48  ;;  %v629_v54 = vmul.f32 1.442695, %v592_v9  ;;  %1245 = vmatmul.msk.bf16.vlgmr.msrb.gmra.mxu2 %vm122_vm0, %v855_v7  ;;  %v1056_v4 = vpack.c.b16 %v1055_v59, %v1054_v57 }
 0x127   :  { %v1272_v26 = vpop.eup %1271  ;;  %v730_v27 = vpack.c.bf16 %v1270_v51, %v1270_v51  ;;  %v633_v37 = vmul.f32 1.442695, %v594_v18  ;;  %1096 = vmatpush.bf16.msrb.mxu2 %v1084_v13  ;;  %v672_v0 = vsel %vm122_vm0, %v1270_v51, 0.0  ;;  %v1027_v39 = vunpack.c.l.b16 %v788_v29 }
 0x128   :  { %v1782_v31 = vpop.eup %1273  ;;  %1277 = vpow2.f32 %v631_v36  ;;  %v687_v62 = vsel %vm122_vm0, %v1272_v26, 0.0  ;;  %v735_v2 = vpack.c.bf16 %v1272_v26, %v1272_v26  ;;  %1068 = vmatpush.bf16.msrb.mxu1 %v1056_v4 }
 0x129   :  { %v882_v61 = vunpack.c.l.b16 %v730_v27  ;;  %1279 = vpow2.f32 %v633_v37  ;;  %673 = vadd.xlane.f32.xlu1 %v672_v0  ;;  %v675_v44 = vsel %vm122_vm0, %v1782_v31, 0.0  ;;  %688 = vadd.xlane.f32.xlu0 %v687_v62  ;;  %v1276_v41 = vpop.eup %1275  ;;  %v1028_v52 = vpack.c.b16 %v1027_v39, %v1026_v12 }
 0x12a   :  { %1281 = vpow2.f32 %v629_v54  ;;  %676 = vadd.xlane.f32.xlu2 %v675_v44  ;;  %v965_v7 = vunpack.c.l.b16 %v735_v2  ;;  %v731_v20 = vpack.c.bf16 %v1782_v31, %v1782_v31  ;;  %v733_v36 = vpack.c.bf16 %v1276_v41, %v1276_v41 }
 0x12b   :  { %v883_v35 = vpack.c.b16 %v882_v61, %v881_v33  ;;  %v536_v22 = vpop.xlane.xlu1 %535  ;;  %v542_v38 = vpop.xlane.xlu0 %541  ;;  %1040 = vmatpush.bf16.msrb.mxu0 %v1028_v52 }
 0x12c   :  { %v588_v42 = vsub.f32 %v1625_v49, %v536_v22  ;;  %v590_v43 = vsub.f32 %v1629_v50, %v542_v38  ;;  %v557_v24 = vpop.xlane.xlu2 %556  ;;  %v681_v50 = vsel %vm122_vm0, %v1276_v41, 0.0  ;;  %v909_v31 = vunpack.c.l.b16 %v731_v20 }
 0x12d   :  { %1246 = vmatmul.msk.bf16.vlgmr.msrb.gmra.mxu3 %vm122_vm0, %v883_v35  ;;  %v595_v3 = vsub.f32 %v1621_v47, %v557_v24  ;;  %v937_v32 = vunpack.c.l.b16 %v733_v36 }
 0x12e   :  { %v1278_v53 = vpop.eup %1277  ;;  %v621_v55 = vmul.f32 1.442695, %v588_v42  ;;  %v625_v56 = vmul.f32 1.442695, %v590_v43  ;;  %1124 = vmatpush.bf16.msrb.mxu3 %v1112_v34 }
 0x12f   :  { %v1797_v63 = vpop.eup %1279  ;;  %v693_v6 = vsel %vm122_vm0, %v1278_v53, 0.0  ;;  %v635_v8 = vmul.f32 1.442695, %v595_v3  ;;  %v737_v21 = vpack.c.bf16 %v1278_v53, %v1278_v53 }
 0x130   :  { %v1282_v49 = vpop.eup %1281  ;;  %1283 = vpow2.f32 %v621_v55  ;;  %v738_v11 = vpack.c.bf16 %v1797_v63, %v1797_v63 }
 0x131   :  { %v736_v10 = vpack.c.bf16 %v1282_v49, %v1282_v49  ;;  %1285 = vpow2.f32 %v625_v56  ;;  %682 = vadd.xlane.f32.xlu1 %v681_v50  ;;  %v690_v26 = vsel %vm122_vm0, %v1282_v49, 0.0  ;;  %v993_v0 = vunpack.c.l.b16 %v737_v21 }
 0x132   :  { %694 = vadd.xlane.f32.xlu2 %v693_v6  ;;  %v994_v54 = vunpack.c.l.b16 %v738_v11  ;;  %1287 = vpow2.f32 %v635_v8 }
 0x133   :  { %v966_v48 = vunpack.c.l.b16 %v736_v10  ;;  %v569_v47 = vpop.xlane.xlu1 %568  ;;  %v575_v9 = vpop.xlane.xlu0 %574 }
 0x134   :  { %v599_v13 = vsub.f32 %v1639_v60, %v569_v47  ;;  %v601_v14 = vsub.f32 %v1643_v1, %v575_v9  ;;  %v572_v18 = vpop.xlane.xlu2 %571  ;;  %v995_v61 = vpack.c.b16 %v994_v54, %v993_v0 }
 0x135   :  { %v967_v23 = vpack.c.b16 %v966_v48, %v965_v7  ;;  %v600_v30 = vsub.f32 %v1649_v5, %v572_v18 }
 0x136   :  { %v1284_v51 = vpop.eup %1283  ;;  %v643_v58 = vmul.f32 1.442695, %v599_v13  ;;  %v647_v29 = vmul.f32 1.442695, %v601_v14 }
 0x137   :  { %v1286_v27 = vpop.eup %1285  ;;  %v732_v37 = vpack.c.bf16 %v1284_v51, %v1284_v51  ;;  %v645_v60 = vmul.f32 1.442695, %v600_v30  ;;  %1249 = vmatmul.msk.bf16.vlgmr.msra.gmra.mxu2 %vm122_vm0, %v967_v23  ;;  %v678_v1 = vsel %vm122_vm0, %v1284_v51, 0.0 }
 0x138   :  { %v734_v28 = vpack.c.bf16 %v1286_v27, %v1286_v27  ;;  %1289 = vpow2.f32 %v643_v58  ;;  %679 = vadd.xlane.f32.xlu0 %v678_v1  ;;  %v684_v5 = vsel %vm122_vm0, %v1286_v27, 0.0  ;;  %v1288_v19 = vpop.eup %1287 }
 0x139   :  { %v910_v62 = vunpack.c.l.b16 %v732_v37  ;;  %691 = vadd.xlane.f32.xlu1 %v690_v26  ;;  %1291 = vpow2.f32 %v645_v60  ;;  %v739_v4 = vpack.c.bf16 %v1288_v19, %v1288_v19 }
 0x13a   :  { %v938_v33 = vunpack.c.l.b16 %v734_v28  ;;  %685 = vadd.xlane.f32.xlu2 %v684_v5  ;;  %1293 = vpow2.f32 %v647_v29 }
 0x13b   :  { %v911_v44 = vpack.c.b16 %v910_v62, %v909_v31  ;;  %v578_v34 = vpop.xlane.xlu1 %577  ;;  %v560_v12 = vpop.xlane.xlu0 %559 }
 0x13c   :  { %v939_v35 = vpack.c.b16 %v938_v33, %v937_v32  ;;  %v602_v22 = vsub.f32 %v1657_v15, %v578_v34  ;;  %v566_v38 = vpop.xlane.xlu2 %565  ;;  %v596_v39 = vsub.f32 %v1661_v16, %v560_v12  ;;  %v696_v15 = vsel %vm122_vm0, %v1797_v63, 0.0 }
 0x13d   :  { %1247 = vmatmul.msk.bf16.vlgmr.msra.gmra.mxu0 %vm122_vm0, %v911_v44  ;;  %1250 = vmatmul.msk.bf16.vlgmr.msra.gmra.mxu3 %vm122_vm0, %v995_v61  ;;  %v598_v40 = vsub.f32 %v1665_v17, %v566_v38  ;;  %v699_v16 = vsel %vm122_vm0, %v1288_v19, 0.0 }
 0x13e   :  { %v1290_v41 = vpop.eup %1289  ;;  %v649_v42 = vmul.f32 1.442695, %v602_v22  ;;  %v637_v43 = vmul.f32 1.442695, %v596_v39  ;;  %1248 = vmatmul.msk.bf16.vlgmr.msra.gmra.mxu1 %vm122_vm0, %v939_v35 }
 0x13f   :  { %v743_v24 = vpack.c.bf16 %v1290_v41, %v1290_v41  ;;  %v641_v45 = vmul.f32 1.442695, %v598_v40  ;;  %v1292_v46 = vpop.eup %1291  ;;  %v711_v53 = vsel %vm122_vm0, %v1290_v41, 0.0 }
 0x140   :  { %1295 = vpow2.f32 %v649_v42  ;;  %697 = vadd.xlane.f32.xlu0 %v696_v15  ;;  %v744_v52 = vpack.c.bf16 %v1292_v46, %v1292_v46  ;;  %v1294_v17 = vpop.eup %1293  ;;  %v714_v26 = vsel %vm122_vm0, %v1292_v46, 0.0 }
 0x141   :  { %1297 = vpow2.f32 %v641_v45  ;;  %700 = vadd.xlane.f32.xlu1 %v699_v16  ;;  %v1077_v55 = vunpack.c.l.b16 %v743_v24  ;;  %v745_v2 = vpack.c.bf16 %v1294_v17, %v1294_v17  ;;  %v717_v30 = vsel %vm122_vm0, %v1294_v17, 0.0 }
 0x142   :  { %1299 = vpow2.f32 %v637_v43  ;;  %712 = vadd.xlane.f32.xlu2 %v711_v53  ;;  %v1078_v56 = vunpack.c.l.b16 %v744_v52 }
 0x143   :  { %v563_v57 = vpop.xlane.xlu1 %562  ;;  %v1105_v7 = vunpack.c.l.b16 %v745_v2 }
 0x144   :  { %v597_v59 = vsub.f32 %v1675_v25, %v563_v57  ;;  %v1079_v63 = vpack.c.b16 %v1078_v56, %v1077_v55  ;;  %v1021_v25 = vunpack.c.l.b16 %v739_v4 }
 0x146   :  { %v1296_v3 = vpop.eup %1295  ;;  %v639_v49 = vmul.f32 1.442695, %v597_v59 }
 0x147   :  { %v1298_v50 = vpop.eup %1297  ;;  %v746_v10 = vpack.c.bf16 %v1296_v3, %v1296_v3  ;;  %1253 = vmatmul.msk.bf16.vlgmr.msrb.gmra.mxu2 %vm122_vm0, %v1079_v63  ;;  %v720_v54 = vsel %vm122_vm0, %v1296_v3, 0.0 }
 0x148   :  { %v1300_v6 = vpop.eup %1299  ;;  %1301 = vpow2.f32 %v639_v49  ;;  %v708_v11 = vsel %vm122_vm0, %v1298_v50, 0.0  ;;  %v742_v14 = vpack.c.bf16 %v1298_v50, %v1298_v50 }
 0x149   :  { %v1106_v48 = vunpack.c.l.b16 %v746_v10  ;;  %v740_v8 = vpack.c.bf16 %v1300_v6, %v1300_v6  ;;  %709 = vadd.xlane.f32.xlu1 %v708_v11  ;;  %v702_v47 = vsel %vm122_vm0, %v1300_v6, 0.0 }
 0x14a   :  { %703 = vadd.xlane.f32.xlu2 %v702_v47  ;;  %v1050_v51 = vunpack.c.l.b16 %v742_v14 }
 0x14b   :  { %v1107_v9 = vpack.c.b16 %v1106_v48, %v1105_v7  ;;  %v1022_v13 = vunpack.c.l.b16 %v740_v8 }
 0x14d   :  { %v1023_v18 = vpack.c.b16 %v1022_v13, %v1021_v25  ;;  %1254 = vmatmul.msk.bf16.vlgmr.msrb.gmra.mxu3 %vm122_vm0, %v1107_v9 }
 0x14e   :  { %v1302_v20 = vpop.eup %1301 }
 0x14f   :  { %v741_v21 = vpack.c.bf16 %v1302_v20, %v1302_v20  ;;  %1251 = vmatmul.msk.bf16.vlgmr.msrb.gmra.mxu0 %vm122_vm0, %v1023_v18  ;;  %v705_v23 = vsel %vm122_vm0, %v1302_v20, 0.0 }
 0x150   :  { %706 = vadd.xlane.f32.xlu0 %v705_v23 }
 0x151   :  { %v1049_v36 = vunpack.c.l.b16 %v741_v21  ;;  %718 = vadd.xlane.f32.xlu1 %v717_v30 }
 0x152   :  { %721 = vadd.xlane.f32.xlu2 %v720_v54 }
 0x153   :  { %v1051_v58 = vpack.c.b16 %v1050_v51, %v1049_v36 }
 0x155   :  { %1252 = vmatmul.msk.bf16.vlgmr.msrb.gmra.mxu1 %vm122_vm0, %v1051_v58 }
 0x158   :  { %715 = vadd.xlane.f32.xlu0 %v714_v26 }
 0x181   :  { %v653_v27 = vpop.xlane.xlu0 %652 }
 0x182   :  { %1303 = vrcp.f32 %v653_v27 }
 0x183   :  { %v659_v37 = vpop.xlane.xlu2 %658 }
 0x188   :  { %v1304_v28 = vpop.eup %1303 }
 0x189   :  { %v1155_v31 = vmul.f32 0.5, %v1304_v28 }
 0x18b   :  { %v671_v1 = vpop.xlane.xlu0 %670 }
 0x18c   :  { %v665_v60 = vpop.xlane.xlu1 %664 }
 0x193   :  { %v662_v61 = vpop.xlane.xlu0 %661 }
 0x194   :  { %v656_v29 = vpop.xlane.xlu1 %655  ;;  %v668_v5 = vpop.xlane.xlu2 %667 }
 0x195   :  { %1305 = vrcp.f32 %v656_v29 }
 0x196   :  { %1307 = vrcp.f32 %v659_v37 }
 0x197   :  { %1309 = vrcp.f32 %v665_v60 }
 0x198   :  { %v818_v0 = vpop.f32.mrf.mxu0  ;;  %1311 = vrcp.f32 %v662_v61 }
 0x199   :  { %v1179_v62 = vmul.f32 %v1155_v31, %v818_v0  ;;  %1313 = vrcp.f32 %v671_v1 }
 0x19a   :  { %1315 = vrcp.f32 %v668_v5 }
 0x19b   :  { %1203 = vst.msk [vmem:[%s1933_s3] sm:$0xff] %vm122_vm0, %v1179_v62  ;;  %v1306_v32 = vpop.eup %1305 }
 0x19c   :  { %v674_v33 = vpop.xlane.xlu1 %673  ;;  %v1308_v34 = vpop.eup %1307  ;;  %v1156_v12 = vmul.f32 0.5, %v1306_v32 }
 0x19d   :  { %v677_v44 = vpop.xlane.xlu2 %676  ;;  %v1157_v22 = vmul.f32 0.5, %v1308_v34  ;;  %v1310_v41 = vpop.eup %1309  ;;  %1317 = vrcp.f32 %v674_v33 }
 0x19e   :  { %v1312_v43 = vpop.eup %1311  ;;  %v1159_v24 = vmul.f32 0.5, %v1310_v41  ;;  %v689_v15 = vpop.xlane.xlu0 %688  ;;  %1319 = vrcp.f32 %v677_v44 }
 0x19f   :  { %v1158_v45 = vmul.f32 0.5, %v1312_v43  ;;  %v1314_v17 = vpop.eup %1313  ;;  %1321 = vrcp.f32 %v689_v15 }
 0x1a0   :  { %v820_v35 = vpop.f32.mrf.mxu0  ;;  %v1316_v56 = vpop.eup %1315  ;;  %v1161_v59 = vmul.f32 0.5, %v1314_v17 }
 0x1a1   :  { %v1180_v38 = vmul.f32 %v1156_v12, %v820_v35  ;;  %v1160_v2 = vmul.f32 0.5, %v1316_v56 }
 0x1a2   :  { %v846_v39 = vpop.f32.mrf.mxu1 }
 0x1a3   :  { %v1181_v19 = vmul.f32 %v1157_v22, %v846_v39  ;;  %1204 = vst.msk [vmem:[%s1933_s3 + $0x8] sm:$0xff] %vm122_vm0, %v1180_v38  ;;  %v1318_v10 = vpop.eup %1317 }
 0x1a4   :  { %v683_v40 = vpop.xlane.xlu1 %682  ;;  %v1320_v11 = vpop.eup %1319  ;;  %v1162_v8 = vmul.f32 0.5, %v1318_v10 }
 0x1a5   :  { %1205 = vst.msk [vmem:[%s1933_s3 + $0x10] sm:$0xff] %vm122_vm0, %v1181_v19  ;;  %v695_v42 = vpop.xlane.xlu2 %694  ;;  %1323 = vrcp.f32 %v683_v40  ;;  %v1322_v7 = vpop.eup %1321  ;;  %v1163_v9 = vmul.f32 0.5, %v1320_v11 }
 0x1a6   :  { %1325 = vrcp.f32 %v695_v42  ;;  %v1167_v13 = vmul.f32 0.5, %v1322_v7 }
 0x1a9   :  { %v874_v46 = vpop.f32.mrf.mxu2 }
 0x1aa   :  { %v848_v16 = vpop.f32.mrf.mxu1  ;;  %v1183_v52 = vmul.f32 %v1159_v24, %v874_v46 }
 0x1ab   :  { %v1182_v53 = vmul.f32 %v1158_v45, %v848_v16  ;;  %v680_v3 = vpop.xlane.xlu0 %679  ;;  %v1324_v48 = vpop.eup %1323 }
 0x1ac   :  { %1207 = vst.msk [vmem:[%s1933_s3 + $0x20] sm:$0xff] %vm122_vm0, %v1183_v52  ;;  %v692_v55 = vpop.xlane.xlu1 %691  ;;  %1327 = vrcp.f32 %v680_v3  ;;  %v1165_v18 = vmul.f32 0.5, %v1324_v48  ;;  %v1326_v54 = vpop.eup %1325 }
 0x1ad   :  { %1206 = vst.msk [vmem:[%s1933_s3 + $0x18] sm:$0xff] %vm122_vm0, %v1182_v53  ;;  %v686_v57 = vpop.xlane.xlu2 %685  ;;  %1329 = vrcp.f32 %v692_v55  ;;  %v1169_v1 = vmul.f32 0.5, %v1326_v54 }
 0x1ae   :  { %1331 = vrcp.f32 %v686_v57 }
 0x1b0   :  { %v902_v63 = vpop.f32.mrf.mxu3 }
 0x1b1   :  { %v1185_v49 = vmul.f32 %v1161_v59, %v902_v63  ;;  %v876_v50 = vpop.f32.mrf.mxu2 }
 0x1b2   :  { %v1184_v4 = vmul.f32 %v1160_v2, %v876_v50  ;;  %v1328_v27 = vpop.eup %1327 }
 0x1b3   :  { %1209 = vst.msk [vmem:[%s1933_s3 + $0x30] sm:$0xff] %vm122_vm0, %v1185_v49  ;;  %v698_v23 = vpop.xlane.xlu0 %697  ;;  %v1330_v37 = vpop.eup %1329  ;;  %v1164_v29 = vmul.f32 0.5, %v1328_v27 }
 0x1b4   :  { %1208 = vst.msk [vmem:[%s1933_s3 + $0x28] sm:$0xff] %vm122_vm0, %v1184_v4  ;;  %v701_v6 = vpop.xlane.xlu1 %700  ;;  %1333 = vrcp.f32 %v698_v23  ;;  %v1332_v60 = vpop.eup %1331  ;;  %v1168_v5 = vmul.f32 0.5, %v1330_v37 }
 0x1b5   :  { %v713_v47 = vpop.xlane.xlu2 %712  ;;  %v1166_v62 = vmul.f32 0.5, %v1332_v60 }
 0x1b6   :  { %1335 = vrcp.f32 %v713_v47 }
 0x1b7   :  { %1337 = vrcp.f32 %v701_v6 }
 0x1b8   :  { %v904_v25 = vpop.f32.mrf.mxu3 }
 0x1b9   :  { %v1186_v14 = vmul.f32 %v1162_v8, %v904_v25 }
 0x1ba   :  { %v930_v20 = vpop.f32.mrf.mxu0  ;;  %v986_v21 = vpop.f32.mrf.mxu2 }
 0x1bb   :  { %1210 = vst.msk [vmem:[%s1933_s3 + $0x38] sm:$0xff] %vm122_vm0, %v1186_v14  ;;  %v1187_v30 = vmul.f32 %v1163_v9, %v930_v20  ;;  %v1191_v51 = vmul.f32 %v1167_v13, %v986_v21  ;;  %v958_v36 = vpop.f32.mrf.mxu1  ;;  %v1334_v35 = vpop.eup %1333 }
 0x1bc   :  { %v1189_v58 = vmul.f32 %v1165_v18, %v958_v36  ;;  %v710_v26 = vpop.xlane.xlu1 %709  ;;  %v1336_v39 = vpop.eup %1335  ;;  %v1170_v19 = vmul.f32 0.5, %v1334_v35 }
 0x1bd   :  { %1211 = vst.msk [vmem:[%s1933_s3 + $0x40] sm:$0xff] %vm122_vm0, %v1187_v30  ;;  %v704_v31 = vpop.xlane.xlu2 %703  ;;  %v1338_v40 = vpop.eup %1337  ;;  %v1175_v42 = vmul.f32 0.5, %v1336_v39 }
 0x1be   :  { %1215 = vst.msk [vmem:[%s1933_s3 + $0x60] sm:$0xff] %vm122_vm0, %v1191_v51  ;;  %v1171_v45 = vmul.f32 0.5, %v1338_v40 }
 0x1bf   :  { %1213 = vst.msk [vmem:[%s1933_s3 + $0x50] sm:$0xff] %vm122_vm0, %v1189_v58 }
 0x1c0   :  { %v1014_v28 = vpop.f32.mrf.mxu3 }
 0x1c1   :  { %v1193_v0 = vmul.f32 %v1169_v1, %v1014_v28 }
 0x1c2   :  { %v932_v32 = vpop.f32.mrf.mxu0  ;;  %v988_v33 = vpop.f32.mrf.mxu2 }
 0x1c3   :  { %1217 = vst.msk [vmem:[%s1933_s3 + $0x70] sm:$0xff] %vm122_vm0, %v1193_v0  ;;  %v1188_v61 = vmul.f32 %v1164_v29, %v932_v32  ;;  %v1192_v44 = vmul.f32 %v1168_v5, %v988_v33  ;;  %v707_v34 = vpop.xlane.xlu0 %706  ;;  %v960_v12 = vpop.f32.mrf.mxu1 }
 0x1c4   :  { %v1190_v22 = vmul.f32 %v1166_v62, %v960_v12  ;;  %v719_v38 = vpop.xlane.xlu1 %718 }
 0x1c5   :  { %1212 = vst.msk [vmem:[%s1933_s3 + $0x48] sm:$0xff] %vm122_vm0, %v1188_v61  ;;  %1339 = vrcp.f32 %v719_v38  ;;  %v722_v15 = vpop.xlane.xlu2 %721 }
 0x1c6   :  { %1216 = vst.msk [vmem:[%s1933_s3 + $0x68] sm:$0xff] %vm122_vm0, %v1192_v44  ;;  %1341 = vrcp.f32 %v707_v34 }
 0x1c7   :  { %1214 = vst.msk [vmem:[%s1933_s3 + $0x58] sm:$0xff] %vm122_vm0, %v1190_v22  ;;  %1343 = vrcp.f32 %v704_v31 }
 0x1c8   :  { %v1016_v41 = vpop.f32.mrf.mxu3 }
 0x1c9   :  { %v1194_v43 = vmul.f32 %v1170_v19, %v1016_v41 }
 0x1ca   :  { %v1098_v24 = vpop.f32.mrf.mxu2 }
 0x1cb   :  { %1218 = vst.msk [vmem:[%s1933_s3 + $0x78] sm:$0xff] %vm122_vm0, %v1194_v43  ;;  %v1199_v46 = vmul.f32 %v1175_v42, %v1098_v24  ;;  %v716_v16 = vpop.xlane.xlu0 %715  ;;  %v1340_v52 = vpop.eup %1339 }
 0x1cc   :  { %1345 = vrcp.f32 %v716_v16  ;;  %v1042_v53 = vpop.f32.mrf.mxu0  ;;  %v1342_v55 = vpop.eup %1341  ;;  %v1177_v56 = vmul.f32 0.5, %v1340_v52 }
 0x1cd   :  { %1223 = vst.msk [vmem:[%s1933_s3 + $0xa0] sm:$0xff] %vm122_vm0, %v1199_v46  ;;  %v1195_v17 = vmul.f32 %v1171_v45, %v1042_v53  ;;  %1347 = vrcp.f32 %v722_v15  ;;  %v1344_v57 = vpop.eup %1343  ;;  %v1173_v2 = vmul.f32 0.5, %v1342_v55 }
 0x1ce   :  { %1349 = vrcp.f32 %v710_v26  ;;  %v1172_v50 = vmul.f32 0.5, %v1344_v57 }
 0x1cf   :  { %1219 = vst.msk [vmem:[%s1933_s3 + $0x80] sm:$0xff] %vm122_vm0, %v1195_v17 }
 0x1d0   :  { %v1126_v59 = vpop.f32.mrf.mxu3 }
 0x1d1   :  { %v1201_v63 = vmul.f32 %v1177_v56, %v1126_v59 }
 0x1d2   :  { %v1346_v3 = vpop.eup %1345  ;;  %v1070_v49 = vpop.f32.mrf.mxu1 }
 0x1d3   :  { %v1176_v4 = vmul.f32 0.5, %v1346_v3  ;;  %1225 = vst.msk [vmem:[%s1933_s3 + $0xb0] sm:$0xff] %vm122_vm0, %v1201_v63  ;;  %v1197_v10 = vmul.f32 %v1173_v2, %v1070_v49  ;;  %v1348_v6 = vpop.eup %1347  ;;  %v1100_v11 = vpop.f32.mrf.mxu2 }
 0x1d4   :  { %v1044_v7 = vpop.f32.mrf.mxu0  ;;  %v1350_v47 = vpop.eup %1349  ;;  %v1178_v25 = vmul.f32 0.5, %v1348_v6 }
 0x1d5   :  { %1221 = vst.msk [vmem:[%s1933_s3 + $0x90] sm:$0xff] %vm122_vm0, %v1197_v10  ;;  %v1200_v48 = vmul.f32 %v1176_v4, %v1100_v11  ;;  %v1196_v8 = vmul.f32 %v1172_v50, %v1044_v7  ;;  %v1174_v13 = vmul.f32 0.5, %v1350_v47 }
 0x1d7   :  { %1224 = vst.msk [vmem:[%s1933_s3 + $0xa8] sm:$0xff] %vm122_vm0, %v1200_v48 }
 0x1d8   :  { %1220 = vst.msk [vmem:[%s1933_s3 + $0x88] sm:$0xff] %vm122_vm0, %v1196_v8  ;;  %v1128_v9 = vpop.f32.mrf.mxu3 }
 0x1d9   :  { %v1202_v14 = vmul.f32 %v1178_v25, %v1128_v9 }
 0x1da   :  { %v1072_v18 = vpop.f32.mrf.mxu1 }
 0x1db   :  { %1226 = vst.msk [vmem:[%s1933_s3 + $0xb8] sm:$0xff] %vm122_vm0, %v1202_v14  ;;  %v1198_v20 = vmul.f32 %v1174_v13, %v1072_v18 }
 0x1dd   :  { %1222 = vst.msk [vmem:[%s1933_s3 + $0x98] sm:$0xff] %vm122_vm0, %v1198_v20 }

// kernel: _lambda_.32
= control target key start
LH: loop header
LB: loop body
LE: loop exit
PB: predicated region body
PF: predicated region fallthrough
CT: control target
= control target key end

     0   :  { %vm29_vm0 = vcmask 523264   ;;  %v396_v16 = vmov 64.0   ;;  %s634_s0 = inlined_call_operand.vmem [shape: f32[64,64], index: 0, kind: input, shape index: {}]   ;;  %s635_s1 = inlined_call_operand.vmem [shape: f32[1,64], index: 1, kind: input, shape index: {}]   ;;  %s636_s2 = inlined_call_operand.vmem [shape: f32[1,64], index: 2, kind: input, shape index: {}]   ;;  %s637_s4 = inlined_call_operand.vmem [shape: f32[1,128], index: 4, kind: input, shape index: {}]   ;;  %s638_s3 = inlined_call_operand.vmem [shape: bf16[64,128], index: 3, kind: input, shape index: {}]   ;;  %s639_s5 = inlined_call_operand.vmem [shape: f32[64,128], index: 5, kind: output, shape index: {}]  }
   0x1   :  { %v27_v0 = vld [vmem:[%s634_s0 + $0x30] sm:$0xff]  ;;  %v25_v1 = vld [vmem:[%s634_s0 + $0x20] sm:$0xff]  ;;  %v28_v6 = vld [vmem:[%s634_s0 + $0x38] sm:$0xff]  ;;  %378 = vrcp.f32 %v396_v16 }
   0x2   :  { %v21_v2 = vld [vmem:[%s634_s0] sm:$0xff]  ;;  %v48_v3 = vsel %vm29_vm0, %v27_v0, 0.0  ;;  %v42_v4 = vsel %vm29_vm0, %v25_v1, 0.0  ;;  %v26_v7 = vld [vmem:[%s634_s0 + $0x28] sm:$0xff]  ;;  %v51_v9 = vsel %vm29_vm0, %v28_v6, 0.0  ;;  %v23_v12 = vld [vmem:[%s634_s0 + $0x10] sm:$0xff] }
   0x3   :  { %v30_v5 = vsel %vm29_vm0, %v21_v2, 0.0  ;;  %49 = vadd.xlane.f32.xlu1 %v48_v3  ;;  %43 = vadd.xlane.f32.xlu0 %v42_v4  ;;  %v22_v8 = vld [vmem:[%s634_s0 + $0x8] sm:$0xff]  ;;  %v45_v10 = vsel %vm29_vm0, %v26_v7, 0.0  ;;  %v24_v13 = vld [vmem:[%s634_s0 + $0x18] sm:$0xff]  ;;  %v36_v14 = vsel %vm29_vm0, %v23_v12, 0.0 }
   0x4   :  { %31 = vadd.xlane.f32.xlu2 %v30_v5  ;;  %v33_v11 = vsel %vm29_vm0, %v22_v8, 0.0  ;;  %v39_v15 = vsel %vm29_vm0, %v24_v13, 0.0  ;;  %v361_v63 = vld [vmem:[%s638_s3 + $0x18] sm:$0xff]  ;;  %v359_v5 = vld [vmem:[%s638_s3 + $0x8] sm:$0xff] }
   0x5   :  { %363 = vmatpush.bf16.msra.mxu2 %v361_v63  ;;  %364 = vmatpush.bf16.msra.mxu3 %v361_v63 }
   0x6   :  { %293 = vmatpush.bf16.msra.mxu0 %v361_v63  ;;  %362 = vmatpush.bf16.msra.mxu1 %v361_v63 }
   0x7   :  { %v379_v17 = vpop.eup %378 }
   0x8   :  { %v55_v18 = vmul.f32 64.0, %v379_v17  ;;  %vm59_vm1 = vweird.f32 %v379_v17 }
   0xa   :  { %v56_v19 = vsub.f32 1.0, %v55_v18 }
   0xb   :  { %52 = vadd.xlane.f32.xlu1 %v51_v9  ;;  %46 = vadd.xlane.f32.xlu0 %v45_v10 }
   0xc   :  { %34 = vadd.xlane.f32.xlu2 %v33_v11  ;;  %v57_v20 = vmul.f32 %v379_v17, %v56_v19 }
   0xe   :  { %v58_v21 = vadd.f32 %v379_v17, %v57_v20 }
  0x10   :  { %v459_v22 = vsel %vm59_vm1, %v379_v17, %v58_v21 }
  0x13   :  { %37 = vadd.xlane.f32.xlu0 %v36_v14  ;;  %40 = vadd.xlane.f32.xlu1 %v39_v15 }
  0x76   :  { %v50_v23 = vpop.xlane.xlu1 %49  ;;  %v44_v24 = vpop.xlane.xlu0 %43 }
  0x77   :  { %v67_v25 = vmul.f32 %v459_v22, %v50_v23  ;;  %v65_v26 = vmul.f32 %v459_v22, %v44_v24  ;;  %v32_v27 = vpop.xlane.xlu2 %31 }
  0x78   :  { %v61_v36 = vmul.f32 %v459_v22, %v32_v27 }
  0x79   :  { %v463_v28 = vsub.f32 %v27_v0, %v67_v25  ;;  %v465_v29 = vsub.f32 %v25_v1, %v65_v26  ;;  %v360_v0 = vld [vmem:[%s638_s3 + $0x10] sm:$0xff] }
  0x7a   :  { %v483_v44 = vsub.f32 %v21_v2, %v61_v36  ;;  %366 = vmatpush.bf16.msra.mxu2 %v360_v0  ;;  %367 = vmatpush.bf16.msra.mxu3 %v360_v0 }
  0x7b   :  { %v83_v30 = vmul.f32 %v463_v28, %v463_v28  ;;  %v81_v31 = vmul.f32 %v465_v29, %v465_v29  ;;  %294 = vmatpush.bf16.msra.mxu0 %v360_v0  ;;  %365 = vmatpush.bf16.msra.mxu1 %v360_v0 }
  0x7c   :  { %v77_v55 = vmul.f32 %v483_v44, %v483_v44 }
  0x7d   :  { %v103_v32 = vsel %vm29_vm0, %v83_v30, 0.0  ;;  %v97_v33 = vsel %vm29_vm0, %v81_v31, 0.0 }
  0x7e   :  { %v53_v34 = vpop.xlane.xlu1 %52  ;;  %v47_v35 = vpop.xlane.xlu0 %46  ;;  %104 = vadd.xlane.f32.xlu1 %v103_v32  ;;  %98 = vadd.xlane.f32.xlu2 %v97_v33  ;;  %v85_v59 = vsel %vm29_vm0, %v77_v55, 0.0 }
  0x7f   :  { %v68_v37 = vmul.f32 %v459_v22, %v53_v34  ;;  %v66_v38 = vmul.f32 %v459_v22, %v47_v35  ;;  %v35_v39 = vpop.xlane.xlu2 %34  ;;  %369 = vmatpush.bf16.msra.mxu2 %v359_v5  ;;  %370 = vmatpush.bf16.msra.mxu3 %v359_v5 }
  0x80   :  { %v62_v40 = vmul.f32 %v459_v22, %v35_v39  ;;  %295 = vmatpush.bf16.msra.mxu0 %v359_v5  ;;  %368 = vmatpush.bf16.msra.mxu1 %v359_v5 }
  0x81   :  { %v477_v41 = vsub.f32 %v28_v6, %v68_v37  ;;  %v479_v42 = vsub.f32 %v26_v7, %v66_v38 }
  0x82   :  { %v481_v43 = vsub.f32 %v22_v8, %v62_v40  ;;  %v358_v8 = vld [vmem:[%s638_s3] sm:$0xff] }
  0x83   :  { %v82_v45 = vmul.f32 %v479_v42, %v479_v42  ;;  %v84_v46 = vmul.f32 %v477_v41, %v477_v41  ;;  %372 = vmatpush.bf16.msra.mxu2 %v358_v8  ;;  %373 = vmatpush.bf16.msra.mxu3 %v358_v8 }
  0x84   :  { %v78_v47 = vmul.f32 %v481_v43, %v481_v43  ;;  %296 = vmatpush.bf16.msra.mxu0 %v358_v8  ;;  %371 = vmatpush.bf16.msra.mxu1 %v358_v8 }
  0x85   :  { %v100_v48 = vsel %vm29_vm0, %v82_v45, 0.0  ;;  %v106_v49 = vsel %vm29_vm0, %v84_v46, 0.0 }
  0x86   :  { %101 = vadd.xlane.f32.xlu0 %v100_v48  ;;  %v38_v50 = vpop.xlane.xlu0 %37  ;;  %107 = vadd.xlane.f32.xlu2 %v106_v49  ;;  %v88_v51 = vsel %vm29_vm0, %v78_v47, 0.0  ;;  %v41_v52 = vpop.xlane.xlu1 %40 }
  0x87   :  { %v63_v53 = vmul.f32 %v459_v22, %v38_v50  ;;  %89 = vadd.xlane.f32.xlu1 %v88_v51  ;;  %v64_v54 = vmul.f32 %v459_v22, %v41_v52 }
  0x89   :  { %v498_v56 = vsub.f32 %v23_v12, %v63_v53  ;;  %v500_v57 = vsub.f32 %v24_v13, %v64_v54 }
  0x8b   :  { %v79_v58 = vmul.f32 %v498_v56, %v498_v56  ;;  %v80_v61 = vmul.f32 %v500_v57, %v500_v57 }
  0x8d   :  { %v91_v60 = vsel %vm29_vm0, %v79_v58, 0.0  ;;  %v94_v62 = vsel %vm29_vm0, %v80_v61, 0.0 }
  0x8e   :  { %92 = vadd.xlane.f32.xlu2 %v91_v60  ;;  %86 = vadd.xlane.f32.xlu0 %v85_v59 }
  0x96   :  { %95 = vadd.xlane.f32.xlu0 %v94_v62 }
  0xf1   :  { %v105_v1 = vpop.xlane.xlu1 %104  ;;  %v99_v2 = vpop.xlane.xlu2 %98 }
  0xf2   :  { %v115_v3 = vmul.f32 %v105_v1, %v459_v22  ;;  %v113_v4 = vmul.f32 %v99_v2, %v459_v22  ;;  %v562_v1 = vld [vmem:[%s635_s1] ss:$0 sm:$0xff] }
  0xf4   :  { %v123_v6 = vadd.f32 1e-05, %v115_v3  ;;  %v121_v7 = vadd.f32 1e-05, %v113_v4 }
  0xf6   :  { %380 = vrsqrt.f32 %v123_v6  ;;  %vm191_vm2 = vweird.f32 %v123_v6  ;;  %vm171_vm5 = vweird.f32 %v121_v7 }
  0xf7   :  { %382 = vrsqrt.f32 %v121_v7 }
  0xf9   :  { %v102_v9 = vpop.xlane.xlu0 %101  ;;  %v108_v10 = vpop.xlane.xlu2 %107 }
  0xfa   :  { %v114_v11 = vmul.f32 %v102_v9, %v459_v22  ;;  %v90_v12 = vpop.xlane.xlu1 %89  ;;  %v116_v13 = vmul.f32 %v108_v10, %v459_v22 }
  0xfb   :  { %v110_v14 = vmul.f32 %v90_v12, %v459_v22 }
  0xfc   :  { %v381_v15 = vpop.eup %380  ;;  %v122_v16 = vadd.f32 1e-05, %v114_v11  ;;  %v526_v17 = vadd.f32 1e-05, %v116_v13  ;;  %v376_v13 = vld [vmem:[%s636_s2] ss:$0 sm:$0xff] }
  0xfd   :  { %v383_v18 = vpop.eup %382  ;;  %v186_v19 = vmul.f32 %v381_v15, %v123_v6  ;;  %v118_v20 = vadd.f32 1e-05, %v110_v14  ;;  %vm192_vm4 = vweird.f32 %v381_v15 }
  0xfe   :  { %v166_v21 = vmul.f32 %v383_v18, %v121_v7  ;;  %384 = vrsqrt.f32 %v122_v16  ;;  %vm172_vm3 = vweird.f32 %v383_v18  ;;  %vm181_vm7 = vweird.f32 %v122_v16  ;;  %vm549_vm8 = vmor %vm191_vm2, %vm192_vm4 }
  0xff   :  { %v187_v23 = vmul.f32 %v381_v15, %v186_v19  ;;  %386 = vrsqrt.f32 %v118_v20  ;;  %vm539_vm6 = vmor %vm171_vm5, %vm172_vm3  ;;  %vm141_vm9 = vweird.f32 %v118_v20  ;;  %vm201_vm12 = vweird.f32 %v526_v17 }
 0x100   :  { %v167_v24 = vmul.f32 %v383_v18, %v166_v21  ;;  %388 = vrsqrt.f32 %v526_v17 }
 0x101   :  { %v188_v25 = vmul.f32 0.5, %v187_v23  ;;  %v87_v26 = vpop.xlane.xlu0 %86  ;;  %v93_v27 = vpop.xlane.xlu2 %92 }
 0x102   :  { %v168_v30 = vmul.f32 0.5, %v167_v24  ;;  %v109_v31 = vmul.f32 %v87_v26, %v459_v22  ;;  %v111_v32 = vmul.f32 %v93_v27, %v459_v22 }
 0x103   :  { %v189_v33 = vsub.f32 1.5, %v188_v25 }
 0x104   :  { %v385_v34 = vpop.eup %384  ;;  %v169_v35 = vsub.f32 1.5, %v168_v30  ;;  %v531_v36 = vadd.f32 1e-05, %v109_v31  ;;  %v535_v39 = vadd.f32 1e-05, %v111_v32 }
 0x105   :  { %v533_v37 = vpop.eup %386  ;;  %v176_v38 = vmul.f32 %v385_v34, %v122_v16  ;;  %v190_v45 = vmul.f32 %v381_v15, %v189_v33  ;;  %vm182_vm10 = vweird.f32 %v385_v34 }
 0x106   :  { %v389_v40 = vpop.eup %388  ;;  %v170_v46 = vmul.f32 %v383_v18, %v169_v35  ;;  %v136_v47 = vmul.f32 %v533_v37, %v118_v20  ;;  %390 = vrsqrt.f32 %v531_v36  ;;  %vm142_vm11 = vweird.f32 %v533_v37  ;;  %vm183_vm14 = vmor %vm181_vm7, %vm182_vm10 }
 0x107   :  { %v177_v49 = vmul.f32 %v385_v34, %v176_v38  ;;  %v196_v50 = vmul.f32 %v389_v40, %v526_v17  ;;  %392 = vrsqrt.f32 %v535_v39  ;;  %v194_v59 = vsel %vm549_vm8, %v381_v15, %v190_v45  ;;  %vm571_vm15 = vmor %vm141_vm9, %vm142_vm11 }
 0x108   :  { %v174_v51 = vsel %vm539_vm6, %v383_v18, %v170_v46  ;;  %v137_v52 = vmul.f32 %v533_v37, %v136_v47  ;;  %vm202_vm13 = vweird.f32 %v389_v40  ;;  %v211_v5 = vmul.f32 %v194_v59, %v463_v28 }
 0x109   :  { %v178_v54 = vmul.f32 0.5, %v177_v49  ;;  %v197_v55 = vmul.f32 %v389_v40, %v196_v50  ;;  %v96_v58 = vpop.xlane.xlu0 %95  ;;  %v209_v62 = vmul.f32 %v174_v51, %v465_v29  ;;  %vm203_vm1 = vmor %vm201_vm12, %vm202_vm13  ;;  %vm131_vm2 = vweird.f32 %v531_v36 }
 0x10a   :  { %v138_v60 = vmul.f32 0.5, %v137_v52  ;;  %v112_v61 = vmul.f32 %v96_v58, %v459_v22  ;;  %v223_v20 = vmul.f32 %v562_v1, %v211_v5  ;;  %vm151_vm4 = vweird.f32 %v535_v39 }
 0x10b   :  { %v179_v63 = vsub.f32 1.5, %v178_v54  ;;  %v198_v0 = vmul.f32 0.5, %v197_v55  ;;  %v221_v28 = vmul.f32 %v562_v1, %v209_v62 }
 0x10c   :  { %v391_v2 = vpop.eup %390  ;;  %v139_v3 = vsub.f32 1.5, %v138_v60  ;;  %v120_v4 = vadd.f32 1e-05, %v112_v61 }
 0x10d   :  { %v180_v22 = vmul.f32 %v385_v34, %v179_v63  ;;  %v199_v29 = vsub.f32 1.5, %v198_v0  ;;  %v126_v6 = vmul.f32 %v391_v2, %v531_v36  ;;  %v393_v9 = vpop.eup %392  ;;  %vm132_vm3 = vweird.f32 %v391_v2 }
 0x10e   :  { %v140_v7 = vmul.f32 %v533_v37, %v139_v3  ;;  %394 = vrsqrt.f32 %v120_v4  ;;  %v146_v15 = vmul.f32 %v393_v9, %v535_v39  ;;  %v233_v17 = vadd.f32 %v376_v13, %v221_v28  ;;  %vm133_vm5 = vmor %vm131_vm2, %vm132_vm3 }
 0x10f   :  { %v184_v10 = vsel %vm183_vm14, %v385_v34, %v180_v22  ;;  %v200_v11 = vmul.f32 %v389_v40, %v199_v29  ;;  %v127_v12 = vmul.f32 %v391_v2, %v126_v6  ;;  %vm152_vm6 = vweird.f32 %v393_v9 }
 0x110   :  { %v210_v14 = vmul.f32 %v184_v10, %v479_v42  ;;  %v144_v16 = vsel %vm571_vm15, %v533_v37, %v140_v7  ;;  %v147_v23 = vmul.f32 %v393_v9, %v146_v15  ;;  %vm153_vm7 = vmor %vm151_vm4, %vm152_vm6  ;;  %vm161_vm9 = vweird.f32 %v120_v4 }
 0x111   :  { %v204_v18 = vsel %vm203_vm1, %v389_v40, %v200_v11  ;;  %v128_v19 = vmul.f32 0.5, %v127_v12  ;;  %v206_v26 = vmul.f32 %v144_v16, %v481_v43 }
 0x112   :  { %v212_v21 = vmul.f32 %v204_v18, %v477_v41  ;;  %v222_v24 = vmul.f32 %v562_v1, %v210_v14  ;;  %v148_v27 = vmul.f32 0.5, %v147_v23  ;;  %v235_v41 = vadd.f32 %v376_v13, %v223_v20 }
 0x113   :  { %v129_v42 = vsub.f32 1.5, %v128_v19  ;;  %v218_v46 = vmul.f32 %v562_v1, %v206_v26 }
 0x114   :  { %v395_v25 = vpop.eup %394  ;;  %v234_v30 = vadd.f32 %v376_v13, %v222_v24  ;;  %v224_v31 = vmul.f32 %v562_v1, %v212_v21  ;;  %v149_v34 = vsub.f32 1.5, %v148_v27 }
 0x115   :  { %v130_v32 = vmul.f32 %v391_v2, %v129_v42  ;;  %v156_v33 = vmul.f32 %v395_v25, %v120_v4  ;;  %vm162_vm8 = vweird.f32 %v395_v25  ;;  %v230_v52 = vadd.f32 %v376_v13, %v218_v46 }
 0x116   :  { %v239_v35 = vpack.c.bf16 %v234_v30, %v233_v17  ;;  %v236_v37 = vadd.f32 %v376_v13, %v224_v31  ;;  %v150_v45 = vmul.f32 %v393_v9, %v149_v34  ;;  %vm163_vm10 = vmor %vm161_vm9, %vm162_vm8 }
 0x117   :  { %v134_v36 = vsel %vm133_vm5, %v391_v2, %v130_v32  ;;  %v157_v38 = vmul.f32 %v395_v25, %v156_v33 }
 0x118   :  { %v205_v40 = vmul.f32 %v134_v36, %v483_v44  ;;  %356 = vmatmul.msk.bf16.vlgmr.msra.gmra.mxu2 %vm29_vm0, %v239_v35  ;;  %v240_v43 = vpack.c.bf16 %v236_v37, %v235_v41  ;;  %v154_v48 = vsel %vm153_vm7, %v393_v9, %v150_v45 }
 0x119   :  { %v158_v47 = vmul.f32 0.5, %v157_v38  ;;  %v207_v51 = vmul.f32 %v154_v48, %v498_v56  ;;  %v377_v56 = vld [vmem:[%s637_s4] ss:$0 sm:$0xff] }
 0x11a   :  { %357 = vmatmul.msk.bf16.vlgmr.msra.gmra.mxu3 %vm29_vm0, %v240_v43  ;;  %v217_v49 = vmul.f32 %v562_v1, %v205_v40 }
 0x11b   :  { %v159_v50 = vsub.f32 1.5, %v158_v47  ;;  %v219_v58 = vmul.f32 %v562_v1, %v207_v51 }
 0x11c   :  { %v229_v44 = vadd.f32 %v376_v13, %v217_v49 }
 0x11d   :  { %v160_v53 = vmul.f32 %v395_v25, %v159_v50  ;;  %v231_v60 = vadd.f32 %v376_v13, %v219_v58 }
 0x11e   :  { %v237_v54 = vpack.c.bf16 %v230_v52, %v229_v44 }
 0x11f   :  { %v164_v55 = vsel %vm163_vm10, %v395_v25, %v160_v53 }
 0x120   :  { %v208_v39 = vmul.f32 %v164_v55, %v500_v57  ;;  %354 = vmatmul.msk.bf16.vlgmr.msra.gmra.mxu0 %vm29_vm0, %v237_v54 }
 0x122   :  { %v220_v59 = vmul.f32 %v562_v1, %v208_v39 }
 0x124   :  { %v232_v61 = vadd.f32 %v376_v13, %v220_v59 }
 0x126   :  { %v238_v62 = vpack.c.bf16 %v232_v61, %v231_v60 }
 0x128   :  { %355 = vmatmul.msk.bf16.vlgmr.msra.gmra.mxu1 %vm29_vm0, %v238_v62 }
 0x19b   :  { %v308_v63 = vpop.f32.mrf.mxu2 }
 0x19c   :  { %v309_v0 = vadd.f32 %v377_v56, %v308_v63 }
 0x19d   :  { %v313_v2 = vpop.f32.mrf.mxu3  ;;  %v298_v3 = vpop.f32.mrf.mxu0 }
 0x19e   :  { %v322_v57 = vmax.f32 %v309_v0, 0.0  ;;  %v314_v4 = vadd.f32 %v377_v56, %v313_v2  ;;  %v299_v5 = vadd.f32 %v377_v56, %v298_v3 }
 0x1a0   :  { %330 = vst [vmem:[%s639_s5 + $0x20] sm:$0xff] %v322_v57  ;;  %v324_v1 = vmax.f32 %v314_v4, 0.0  ;;  %v318_v22 = vmax.f32 %v299_v5, 0.0 }
 0x1a2   :  { %332 = vst [vmem:[%s639_s5 + $0x30] sm:$0xff] %v324_v1 }
 0x1a3   :  { %326 = vst [vmem:[%s639_s5] sm:$0xff] %v318_v22  ;;  %v310_v29 = vpop.f32.mrf.mxu2 }
 0x1a4   :  { %v311_v6 = vadd.f32 %v377_v56, %v310_v29 }
 0x1a5   :  { %v315_v7 = vpop.f32.mrf.mxu3  ;;  %v300_v8 = vpop.f32.mrf.mxu0 }
 0x1a6   :  { %v323_v9 = vmax.f32 %v311_v6, 0.0  ;;  %v316_v10 = vadd.f32 %v377_v56, %v315_v7  ;;  %v301_v11 = vadd.f32 %v377_v56, %v300_v8  ;;  %v303_v12 = vpop.f32.mrf.mxu1 }
 0x1a7   :  { %v304_v28 = vadd.f32 %v377_v56, %v303_v12 }
 0x1a8   :  { %331 = vst [vmem:[%s639_s5 + $0x28] sm:$0xff] %v323_v9  ;;  %v325_v13 = vmax.f32 %v316_v10, 0.0  ;;  %v319_v14 = vmax.f32 %v301_v11, 0.0 }
 0x1a9   :  { %v320_v15 = vmax.f32 %v304_v28, 0.0 }
 0x1aa   :  { %333 = vst [vmem:[%s639_s5 + $0x38] sm:$0xff] %v325_v13 }
 0x1ab   :  { %327 = vst [vmem:[%s639_s5 + $0x8] sm:$0xff] %v319_v14 }
 0x1ac   :  { %328 = vst [vmem:[%s639_s5 + $0x10] sm:$0xff] %v320_v15 }
 0x1ae   :  { %v305_v16 = vpop.f32.mrf.mxu1 }
 0x1af   :  { %v306_v18 = vadd.f32 %v377_v56, %v305_v16 }
 0x1b1   :  { %v321_v19 = vmax.f32 %v306_v18, 0.0 }
 0x1b3   :  { %329 = vst [vmem:[%s639_s5 + $0x18] sm:$0xff] %v321_v19 }

// kernel: _lambda_.33
= control target key start
LH: loop header
LB: loop body
LE: loop exit
PB: predicated region body
PF: predicated region fallthrough
CT: control target
= control target key end

     0   :  { %v438_v8 = vmov 128.0   ;;  %s718_s0 = inlined_call_operand.vmem [shape: f32[64,128], index: 0, kind: input, shape index: {}]   ;;  %s719_s1 = inlined_call_operand.vmem [shape: f32[1,128], index: 1, kind: input, shape index: {}]   ;;  %s720_s2 = inlined_call_operand.vmem [shape: f32[1,128], index: 2, kind: input, shape index: {}]   ;;  %s721_s4 = inlined_call_operand.vmem [shape: f32[1,64], index: 4, kind: input, shape index: {}]   ;;  %s722_s3 = inlined_call_operand.vmem [shape: bf16[128,64], index: 3, kind: input, shape index: {}]   ;;  %s723_s5 = inlined_call_operand.vmem [shape: f32[64,64], index: 5, kind: input, shape index: {}]   ;;  %s724_s6 = inlined_call_operand.vmem [shape: f32[64,64], index: 6, kind: output, shape index: {}]  }
   0x1   :  { %v29_v0 = vld [vmem:[%s718_s0 + $0x30] sm:$0xff]  ;;  %v27_v1 = vld [vmem:[%s718_s0 + $0x20] sm:$0xff]  ;;  %v30_v3 = vld [vmem:[%s718_s0 + $0x38] sm:$0xff]  ;;  %420 = vrcp.f32 %v438_v8 }
   0x2   :  { %v23_v2 = vld [vmem:[%s718_s0] sm:$0xff]  ;;  %43 = vadd.xlane.f32.xlu1 %v29_v0  ;;  %39 = vadd.xlane.f32.xlu0 %v27_v1  ;;  %v28_v4 = vld [vmem:[%s718_s0 + $0x28] sm:$0xff]  ;;  %v25_v6 = vld [vmem:[%s718_s0 + $0x10] sm:$0xff] }
   0x3   :  { %31 = vadd.xlane.f32.xlu2 %v23_v2  ;;  %v24_v5 = vld [vmem:[%s718_s0 + $0x8] sm:$0xff]  ;;  %v26_v7 = vld [vmem:[%s718_s0 + $0x18] sm:$0xff]  ;;  %v390_v48 = vld [vmem:[%s722_s3 + $0x30] sm:$0xff] }
   0x4   :  { %v391_v47 = vld [vmem:[%s722_s3 + $0x38] sm:$0xff]  ;;  %v389_v49 = vld [vmem:[%s722_s3 + $0x28] sm:$0xff]  ;;  %v388_v50 = vld [vmem:[%s722_s3 + $0x20] sm:$0xff] }
   0x5   :  { %393 = vmatpush.bf16.msra.mxu2 %v391_v47  ;;  %394 = vmatpush.bf16.msra.mxu3 %v391_v47  ;;  %v387_v51 = vld [vmem:[%s722_s3 + $0x18] sm:$0xff]  ;;  %v386_v52 = vld [vmem:[%s722_s3 + $0x10] sm:$0xff]  ;;  %v385_v55 = vld [vmem:[%s722_s3 + $0x8] sm:$0xff] }
   0x6   :  { %294 = vmatpush.bf16.msra.mxu0 %v391_v47  ;;  %392 = vmatpush.bf16.msra.mxu1 %v391_v47  ;;  %v384_v60 = vld [vmem:[%s722_s3] sm:$0xff] }
   0x7   :  { %v421_v9 = vpop.eup %420 }
   0x8   :  { %v48_v10 = vmul.f32 128.0, %v421_v9  ;;  %vm52_vm0 = vweird.f32 %v421_v9 }
   0x9   :  { %396 = vmatpush.bf16.msra.mxu2 %v390_v48  ;;  %397 = vmatpush.bf16.msra.mxu3 %v390_v48 }
   0xa   :  { %45 = vadd.xlane.f32.xlu1 %v30_v3  ;;  %41 = vadd.xlane.f32.xlu0 %v28_v4  ;;  %v49_v11 = vsub.f32 1.0, %v48_v10 }
   0xb   :  { %33 = vadd.xlane.f32.xlu2 %v24_v5  ;;  %295 = vmatpush.bf16.msra.mxu0 %v390_v48 }
   0xc   :  { %v50_v12 = vmul.f32 %v421_v9, %v49_v11  ;;  %395 = vmatpush.bf16.msra.mxu1 %v390_v48 }
   0xd   :  { %399 = vmatpush.bf16.msra.mxu2 %v389_v49  ;;  %400 = vmatpush.bf16.msra.mxu3 %v389_v49 }
   0xe   :  { %v51_v13 = vadd.f32 %v421_v9, %v50_v12 }
   0xf   :  { %296 = vmatpush.bf16.msra.mxu0 %v389_v49 }
  0x10   :  { %v498_v14 = vsel %vm52_vm0, %v421_v9, %v51_v13  ;;  %398 = vmatpush.bf16.msra.mxu1 %v389_v49 }
  0x11   :  { %402 = vmatpush.bf16.msra.mxu2 %v388_v50  ;;  %403 = vmatpush.bf16.msra.mxu3 %v388_v50 }
  0x12   :  { %35 = vadd.xlane.f32.xlu0 %v25_v6  ;;  %37 = vadd.xlane.f32.xlu1 %v26_v7 }
  0x13   :  { %297 = vmatpush.bf16.msra.mxu0 %v388_v50 }
  0x14   :  { %401 = vmatpush.bf16.msra.mxu1 %v388_v50 }
  0x15   :  { %405 = vmatpush.bf16.msra.mxu2 %v387_v51  ;;  %406 = vmatpush.bf16.msra.mxu3 %v387_v51 }
  0x17   :  { %298 = vmatpush.bf16.msra.mxu0 %v387_v51 }
  0x18   :  { %404 = vmatpush.bf16.msra.mxu1 %v387_v51 }
  0x19   :  { %408 = vmatpush.bf16.msra.mxu2 %v386_v52  ;;  %409 = vmatpush.bf16.msra.mxu3 %v386_v52 }
  0x1b   :  { %299 = vmatpush.bf16.msra.mxu0 %v386_v52 }
  0x1c   :  { %407 = vmatpush.bf16.msra.mxu1 %v386_v52 }
  0x1d   :  { %411 = vmatpush.bf16.msra.mxu2 %v385_v55  ;;  %412 = vmatpush.bf16.msra.mxu3 %v385_v55 }
  0x1f   :  { %300 = vmatpush.bf16.msra.mxu0 %v385_v55 }
  0x20   :  { %410 = vmatpush.bf16.msra.mxu1 %v385_v55 }
  0x21   :  { %414 = vmatpush.bf16.msra.mxu2 %v384_v60  ;;  %415 = vmatpush.bf16.msra.mxu3 %v384_v60 }
  0x23   :  { %301 = vmatpush.bf16.msra.mxu0 %v384_v60 }
  0x24   :  { %413 = vmatpush.bf16.msra.mxu1 %v384_v60 }
  0x75   :  { %v44_v15 = vpop.xlane.xlu1 %43  ;;  %v40_v16 = vpop.xlane.xlu0 %39 }
  0x76   :  { %v60_v17 = vmul.f32 %v498_v14, %v44_v15  ;;  %v58_v18 = vmul.f32 %v498_v14, %v40_v16  ;;  %v32_v19 = vpop.xlane.xlu2 %31 }
  0x77   :  { %v54_v30 = vmul.f32 %v498_v14, %v32_v19 }
  0x78   :  { %v502_v20 = vsub.f32 %v29_v0, %v60_v17  ;;  %v504_v21 = vsub.f32 %v27_v1, %v58_v18 }
  0x79   :  { %v526_v37 = vsub.f32 %v23_v2, %v54_v30 }
  0x7a   :  { %v76_v22 = vmul.f32 %v502_v20, %v502_v20  ;;  %v74_v23 = vmul.f32 %v504_v21, %v504_v21 }
  0x7b   :  { %v70_v42 = vmul.f32 %v526_v37, %v526_v37 }
  0x7c   :  { %90 = vadd.xlane.f32.xlu1 %v76_v22  ;;  %86 = vadd.xlane.f32.xlu2 %v74_v23 }
  0x7d   :  { %v46_v24 = vpop.xlane.xlu1 %45  ;;  %v42_v25 = vpop.xlane.xlu0 %41 }
  0x7e   :  { %v61_v26 = vmul.f32 %v498_v14, %v46_v24  ;;  %v59_v27 = vmul.f32 %v498_v14, %v42_v25  ;;  %v34_v28 = vpop.xlane.xlu2 %33 }
  0x7f   :  { %v55_v29 = vmul.f32 %v498_v14, %v34_v28 }
  0x80   :  { %v514_v31 = vsub.f32 %v30_v3, %v61_v26  ;;  %v516_v32 = vsub.f32 %v28_v4, %v59_v27 }
  0x81   :  { %v518_v33 = vsub.f32 %v24_v5, %v55_v29 }
  0x82   :  { %v75_v34 = vmul.f32 %v516_v32, %v516_v32  ;;  %v77_v35 = vmul.f32 %v514_v31, %v514_v31 }
  0x83   :  { %v71_v36 = vmul.f32 %v518_v33, %v518_v33 }
  0x84   :  { %88 = vadd.xlane.f32.xlu0 %v75_v34  ;;  %92 = vadd.xlane.f32.xlu2 %v77_v35 }
  0x85   :  { %80 = vadd.xlane.f32.xlu1 %v71_v36  ;;  %v36_v38 = vpop.xlane.xlu0 %35  ;;  %v38_v39 = vpop.xlane.xlu1 %37 }
  0x86   :  { %v56_v40 = vmul.f32 %v498_v14, %v36_v38  ;;  %v57_v43 = vmul.f32 %v498_v14, %v38_v39 }
  0x88   :  { %v529_v41 = vsub.f32 %v25_v6, %v56_v40  ;;  %v536_v45 = vsub.f32 %v26_v7, %v57_v43 }
  0x8a   :  { %v72_v44 = vmul.f32 %v529_v41, %v529_v41  ;;  %v73_v46 = vmul.f32 %v536_v45, %v536_v45 }
  0x8c   :  { %82 = vadd.xlane.f32.xlu2 %v72_v44  ;;  %78 = vadd.xlane.f32.xlu0 %v70_v42 }
  0x94   :  { %84 = vadd.xlane.f32.xlu0 %v73_v46 }
  0xef   :  { %v91_v53 = vpop.xlane.xlu1 %90  ;;  %v87_v54 = vpop.xlane.xlu2 %86 }
  0xf0   :  { %v100_v56 = vmul.f32 %v91_v53, %v498_v14  ;;  %v98_v57 = vmul.f32 %v87_v54, %v498_v14 }
  0xf2   :  { %v108_v58 = vadd.f32 1e-05, %v100_v56  ;;  %v106_v59 = vadd.f32 1e-05, %v98_v57 }
  0xf4   :  { %422 = vrsqrt.f32 %v108_v58  ;;  %vm176_vm1 = vweird.f32 %v108_v58  ;;  %vm156_vm5 = vweird.f32 %v106_v59 }
  0xf5   :  { %424 = vrsqrt.f32 %v106_v59 }
  0xf7   :  { %v89_v61 = vpop.xlane.xlu0 %88  ;;  %v93_v62 = vpop.xlane.xlu2 %92 }
  0xf8   :  { %v99_v63 = vmul.f32 %v89_v61, %v498_v14  ;;  %v81_v0 = vpop.xlane.xlu1 %80  ;;  %v101_v1 = vmul.f32 %v93_v62, %v498_v14  ;;  %v417_v61 = vld [vmem:[%s719_s1] ss:$0 sm:$0xff] }
  0xf9   :  { %v95_v2 = vmul.f32 %v81_v0, %v498_v14 }
  0xfa   :  { %v569_v3 = vpop.eup %422  ;;  %v571_v4 = vadd.f32 1e-05, %v99_v63  ;;  %v573_v5 = vadd.f32 1e-05, %v101_v1 }
  0xfb   :  { %v575_v6 = vpop.eup %424  ;;  %v171_v7 = vmul.f32 %v569_v3, %v108_v58  ;;  %v103_v8 = vadd.f32 1e-05, %v95_v2  ;;  %vm177_vm2 = vweird.f32 %v569_v3 }
  0xfc   :  { %v151_v9 = vmul.f32 %v575_v6, %v106_v59  ;;  %426 = vrsqrt.f32 %v571_v4  ;;  %vm157_vm3 = vweird.f32 %v575_v6  ;;  %vm601_vm4 = vmor %vm176_vm1, %vm177_vm2  ;;  %vm166_vm6 = vweird.f32 %v571_v4 }
  0xfd   :  { %v172_v10 = vmul.f32 %v569_v3, %v171_v7  ;;  %428 = vrsqrt.f32 %v103_v8  ;;  %vm608_vm7 = vmor %vm156_vm5, %vm157_vm3  ;;  %vm126_vm8 = vweird.f32 %v103_v8  ;;  %vm186_vm11 = vweird.f32 %v573_v5 }
  0xfe   :  { %v152_v11 = vmul.f32 %v575_v6, %v151_v9  ;;  %430 = vrsqrt.f32 %v573_v5 }
  0xff   :  { %v173_v12 = vmul.f32 0.5, %v172_v10  ;;  %v79_v13 = vpop.xlane.xlu0 %78  ;;  %v83_v15 = vpop.xlane.xlu2 %82 }
 0x100   :  { %v153_v16 = vmul.f32 0.5, %v152_v11  ;;  %v94_v17 = vmul.f32 %v79_v13, %v498_v14  ;;  %v96_v18 = vmul.f32 %v83_v15, %v498_v14 }
 0x101   :  { %v174_v19 = vsub.f32 1.5, %v173_v12 }
 0x102   :  { %v427_v22 = vpop.eup %426  ;;  %v154_v23 = vsub.f32 1.5, %v153_v16  ;;  %v585_v24 = vadd.f32 1e-05, %v94_v17  ;;  %v587_v25 = vadd.f32 1e-05, %v96_v18 }
 0x103   :  { %v589_v26 = vpop.eup %428  ;;  %v161_v27 = vmul.f32 %v427_v22, %v571_v4  ;;  %v175_v30 = vmul.f32 %v569_v3, %v174_v19  ;;  %vm167_vm10 = vweird.f32 %v427_v22  ;;  %v418_v4 = vld [vmem:[%s720_s2] ss:$0 sm:$0xff] }
 0x104   :  { %v431_v28 = vpop.eup %430  ;;  %v121_v29 = vmul.f32 %v589_v26, %v103_v8  ;;  %432 = vrsqrt.f32 %v585_v24  ;;  %v155_v34 = vmul.f32 %v575_v6, %v154_v23  ;;  %vm127_vm9 = vweird.f32 %v589_v26  ;;  %vm168_vm14 = vmor %vm166_vm6, %vm167_vm10 }
 0x105   :  { %v162_v35 = vmul.f32 %v427_v22, %v161_v27  ;;  %v181_v36 = vmul.f32 %v431_v28, %v573_v5  ;;  %434 = vrsqrt.f32 %v587_v25  ;;  %v179_v51 = vsel %vm601_vm4, %v569_v3, %v175_v30  ;;  %vm623_vm12 = vmor %vm126_vm8, %vm127_vm9 }
 0x106   :  { %v122_v38 = vmul.f32 %v589_v26, %v121_v29  ;;  %v159_v50 = vsel %vm608_vm7, %v575_v6, %v155_v34  ;;  %vm187_vm13 = vweird.f32 %v431_v28  ;;  %v196_v62 = vmul.f32 %v179_v51, %v502_v20  ;;  %v419_v51 = vld [vmem:[%s721_s4] ss:$0 sm:$0xff] }
 0x107   :  { %v163_v40 = vmul.f32 0.5, %v162_v35  ;;  %v182_v42 = vmul.f32 %v431_v28, %v181_v36  ;;  %v85_v43 = vpop.xlane.xlu0 %84  ;;  %v194_v60 = vmul.f32 %v159_v50, %v504_v21  ;;  %vm188_vm15 = vmor %vm186_vm11, %vm187_vm13  ;;  %vm116_vm1 = vweird.f32 %v585_v24 }
 0x108   :  { %v123_v46 = vmul.f32 0.5, %v122_v38  ;;  %v97_v47 = vmul.f32 %v85_v43, %v498_v14  ;;  %v208_v10 = vmul.f32 %v417_v61, %v196_v62  ;;  %vm136_vm2 = vweird.f32 %v587_v25  ;;  %v328_v62 = vld [vmem:[%s723_s5 + $0x28] sm:$0xff] }
 0x109   :  { %v164_v48 = vsub.f32 1.5, %v163_v40  ;;  %v183_v49 = vmul.f32 0.5, %v182_v42  ;;  %v206_v8 = vmul.f32 %v417_v61, %v194_v60  ;;  %vm339_vm9 = vcmask 523264  }
 0x10a   :  { %v433_v52 = vpop.eup %432  ;;  %v124_v53 = vsub.f32 1.5, %v123_v46  ;;  %v621_v54 = vadd.f32 1e-05, %v97_v47 }
 0x10b   :  { %v165_v55 = vmul.f32 %v427_v22, %v164_v48  ;;  %v184_v56 = vsub.f32 1.5, %v183_v49  ;;  %v111_v57 = vmul.f32 %v433_v52, %v585_v24  ;;  %v435_v58 = vpop.eup %434  ;;  %vm117_vm0 = vweird.f32 %v433_v52 }
 0x10c   :  { %v125_v59 = vmul.f32 %v589_v26, %v124_v53  ;;  %436 = vrsqrt.f32 %v621_v54  ;;  %v131_v1 = vmul.f32 %v435_v58, %v587_v25  ;;  %vm137_vm3 = vweird.f32 %v435_v58  ;;  %vm118_vm4 = vmor %vm116_vm1, %vm117_vm0 }
 0x10d   :  { %v185_v63 = vmul.f32 %v431_v28, %v184_v56  ;;  %v112_v0 = vmul.f32 %v433_v52, %v111_v57  ;;  %v169_v2 = vsel %vm168_vm14, %v427_v22, %v165_v55  ;;  %v220_v22 = vadd.f32 %v418_v4, %v208_v10  ;;  %vm138_vm5 = vmor %vm136_vm2, %vm137_vm3  ;;  %v323_v56 = vld [vmem:[%s723_s5] sm:$0xff] }
 0x10e   :  { %v129_v21 = vsel %vm623_vm12, %v589_v26, %v125_v59  ;;  %v132_v6 = vmul.f32 %v435_v58, %v131_v1  ;;  %v195_v20 = vmul.f32 %v169_v2, %v516_v32  ;;  %vm146_vm7 = vweird.f32 %v621_v54 }
 0x10f   :  { %v113_v3 = vmul.f32 0.5, %v112_v0  ;;  %v189_v7 = vsel %vm188_vm15, %v431_v28, %v185_v63  ;;  %v191_v32 = vmul.f32 %v129_v21, %v518_v33  ;;  %v330_v0 = vld [vmem:[%s723_s5 + $0x38] sm:$0xff] }
 0x110   :  { %v197_v9 = vmul.f32 %v189_v7, %v514_v31  ;;  %v133_v11 = vmul.f32 0.5, %v132_v6  ;;  %v207_v12 = vmul.f32 %v417_v61, %v195_v20  ;;  %v218_v31 = vadd.f32 %v418_v4, %v206_v8  ;;  %v325_v20 = vld [vmem:[%s723_s5 + $0x10] sm:$0xff] }
 0x111   :  { %v114_v5 = vsub.f32 1.5, %v113_v3  ;;  %v203_v30 = vmul.f32 %v417_v61, %v191_v32  ;;  %v324_v3 = vld [vmem:[%s723_s5 + $0x8] sm:$0xff] }
 0x112   :  { %v437_v13 = vpop.eup %436  ;;  %v209_v15 = vmul.f32 %v417_v61, %v197_v9  ;;  %v134_v17 = vsub.f32 1.5, %v133_v11  ;;  %v219_v19 = vadd.f32 %v418_v4, %v207_v12  ;;  %v326_v12 = vld [vmem:[%s723_s5 + $0x18] sm:$0xff] }
 0x113   :  { %v115_v16 = vmul.f32 %v433_v52, %v114_v5  ;;  %v141_v18 = vmul.f32 %v437_v13, %v621_v54  ;;  %vm147_vm6 = vweird.f32 %v437_v13  ;;  %v215_v40 = vadd.f32 %v418_v4, %v203_v30 }
 0x114   :  { %v221_v23 = vadd.f32 %v418_v4, %v209_v15  ;;  %v135_v26 = vmul.f32 %v435_v58, %v134_v17  ;;  %v224_v24 = vpack.c.bf16 %v219_v19, %v218_v31  ;;  %vm148_vm8 = vmor %vm146_vm7, %vm147_vm6 }
 0x115   :  { %v142_v27 = vmul.f32 %v437_v13, %v141_v18  ;;  %v119_v28 = vsel %vm118_vm4, %v433_v52, %v115_v16  ;;  %v327_v52 = vld [vmem:[%s723_s5 + $0x20] sm:$0xff] }
 0x116   :  { %v225_v29 = vpack.c.bf16 %v221_v23, %v220_v22  ;;  %v190_v33 = vmul.f32 %v119_v28, %v526_v37  ;;  %v139_v35 = vsel %vm138_vm5, %v435_v58, %v135_v26  ;;  %312 = vmatmul.bf16.vlgmr.msra.gmra.mxu2 %v224_v24 }
 0x117   :  { %v143_v34 = vmul.f32 0.5, %v142_v27  ;;  %v192_v42 = vmul.f32 %v139_v35, %v529_v41 }
 0x118   :  { %317 = vmatmul.bf16.vlgmr.msra.gmra.mxu3 %v225_v29  ;;  %v202_v36 = vmul.f32 %v417_v61, %v190_v33 }
 0x119   :  { %v144_v38 = vsub.f32 1.5, %v143_v34  ;;  %v204_v46 = vmul.f32 %v417_v61, %v192_v42 }
 0x11a   :  { %v214_v39 = vadd.f32 %v418_v4, %v202_v36 }
 0x11b   :  { %v145_v43 = vmul.f32 %v437_v13, %v144_v38  ;;  %v216_v48 = vadd.f32 %v418_v4, %v204_v46 }
 0x11c   :  { %v222_v25 = vpack.c.bf16 %v215_v40, %v214_v39 }
 0x11d   :  { %v149_v44 = vsel %vm148_vm8, %v437_v13, %v145_v43 }
 0x11e   :  { %302 = vmatmul.bf16.vlgmr.msra.gmra.mxu0 %v222_v25  ;;  %v193_v37 = vmul.f32 %v149_v44, %v536_v45  ;;  %v329_v45 = vld [vmem:[%s723_s5 + $0x30] sm:$0xff] }
 0x120   :  { %v205_v47 = vmul.f32 %v417_v61, %v193_v37 }
 0x122   :  { %v217_v49 = vadd.f32 %v418_v4, %v205_v47 }
 0x124   :  { %v223_v50 = vpack.c.bf16 %v217_v49, %v216_v48 }
 0x126   :  { %307 = vmatmul.bf16.vlgmr.msra.gmra.mxu1 %v223_v50 }
 0x199   :  { %v313_v41 = vpop.f32.mrf.mxu2 }
 0x19a   :  { %v314_v54 = vadd.f32 %v419_v51, %v313_v41 }
 0x19b   :  { %v318_v53 = vpop.f32.mrf.mxu3  ;;  %v303_v14 = vpop.f32.mrf.mxu0 }
 0x19c   :  { %v319_v55 = vadd.f32 %v419_v51, %v318_v53  ;;  %v304_v57 = vadd.f32 %v419_v51, %v303_v14  ;;  %v335_v58 = vadd.f32 %v327_v52, %v314_v54 }
 0x19e   :  { %v337_v59 = vadd.f32 %v329_v45, %v319_v55  ;;  %v331_v60 = vadd.f32 %v323_v56, %v304_v57  ;;  %344 = vst.msk [vmem:[%s724_s6 + $0x20] sm:$0xff] %vm339_vm9, %v335_v58 }
 0x1a0   :  { %346 = vst.msk [vmem:[%s724_s6 + $0x30] sm:$0xff] %vm339_vm9, %v337_v59 }
 0x1a1   :  { %340 = vst.msk [vmem:[%s724_s6] sm:$0xff] %vm339_vm9, %v331_v60  ;;  %v315_v61 = vpop.f32.mrf.mxu2 }
 0x1a2   :  { %v316_v1 = vadd.f32 %v419_v51, %v315_v61 }
 0x1a3   :  { %v320_v63 = vpop.f32.mrf.mxu3  ;;  %v305_v21 = vpop.f32.mrf.mxu0 }
 0x1a4   :  { %v321_v2 = vadd.f32 %v419_v51, %v320_v63  ;;  %v308_v6 = vpop.f32.mrf.mxu1  ;;  %v306_v7 = vadd.f32 %v419_v51, %v305_v21  ;;  %v336_v4 = vadd.f32 %v328_v62, %v316_v1 }
 0x1a5   :  { %v309_v8 = vadd.f32 %v419_v51, %v308_v6 }
 0x1a6   :  { %v338_v9 = vadd.f32 %v330_v0, %v321_v2  ;;  %v332_v10 = vadd.f32 %v324_v3, %v306_v7  ;;  %345 = vst.msk [vmem:[%s724_s6 + $0x28] sm:$0xff] %vm339_vm9, %v336_v4 }
 0x1a7   :  { %v333_v5 = vadd.f32 %v325_v20, %v309_v8 }
 0x1a8   :  { %347 = vst.msk [vmem:[%s724_s6 + $0x38] sm:$0xff] %vm339_vm9, %v338_v9 }
 0x1a9   :  { %341 = vst.msk [vmem:[%s724_s6 + $0x8] sm:$0xff] %vm339_vm9, %v332_v10 }
 0x1aa   :  { %342 = vst.msk [vmem:[%s724_s6 + $0x10] sm:$0xff] %vm339_vm9, %v333_v5 }
 0x1ac   :  { %v310_v11 = vpop.f32.mrf.mxu1 }
 0x1ad   :  { %v311_v13 = vadd.f32 %v419_v51, %v310_v11 }
 0x1af   :  { %v334_v15 = vadd.f32 %v326_v12, %v311_v13 }
 0x1b1   :  { %343 = vst.msk [vmem:[%s724_s6 + $0x18] sm:$0xff] %vm339_vm9, %v334_v15 }

// kernel: _lambda_.57
= control target key start
LH: loop header
LB: loop body
LE: loop exit
PB: predicated region body
PF: predicated region fallthrough
CT: control target
= control target key end

     0   :  { %vm30_vm0 = vcmask 523264   ;;  %s1009_s0 = inlined_call_operand.vmem [shape: f32[64,64], index: 0, kind: input, shape index: {}]   ;;  %s1010_s1 = inlined_call_operand.vmem [shape: f32[1,64], index: 1, kind: input, shape index: {}]   ;;  %s1011_s2 = inlined_call_operand.vmem [shape: f32[1,64], index: 2, kind: input, shape index: {}]   ;;  %s1012_s3 = inlined_call_operand.vmem [shape: bf16[64,512], index: 3, kind: input, shape index: {}]   ;;  %s1013_s4 = inlined_call_operand.vmem [shape: f32[1,512], index: 4, kind: input, shape index: {}]   ;;  %s1014_s5 = inlined_call_operand.hbm [shape: f32[64,512], index: 5, kind: output, shape index: {}]  }
   0x1   :  { %v26_v0 = vld [vmem:[%s1009_s0 + $0x20] sm:$0xff]  ;;  %v24_v1 = vld [vmem:[%s1009_s0 + $0x10] sm:$0xff] }
   0x2   :  { %v22_v2 = vld [vmem:[%s1009_s0] sm:$0xff]  ;;  %v43_v3 = vsel %vm30_vm0, %v26_v0, 0.0  ;;  %v37_v4 = vsel %vm30_vm0, %v24_v1, 0.0 }
   0x3   :  { %v31_v5 = vsel %vm30_vm0, %v22_v2, 0.0  ;;  %44 = vadd.xlane.f32.xlu2 %v43_v3  ;;  %38 = vadd.xlane.f32.xlu1 %v37_v4 }
   0x4   :  { %32 = vadd.xlane.f32.xlu0 %v31_v5 }
   0x5   :  { %10 = vsyncpa [#allocation3], 0  ;;  %v27_v6 = vld [vmem:[%s1009_s0 + $0x28] sm:$0xff]  ;;  %v25_v7 = vld [vmem:[%s1009_s0 + $0x18] sm:$0xff]  ;;  %v672_v14 = vmov 64.0   ;;  %s514_s26 = sshll.u32 %s1014_s5, 4  ;;  %s515_s26 = int_to_ptr.hbm [resolvable:$true] %s514_s26 }
   0x6   :  { %v23_v8 = vld [vmem:[%s1009_s0 + $0x8] sm:$0xff]  ;;  %v46_v9 = vsel %vm30_vm0, %v27_v6, 0.0  ;;  %v40_v10 = vsel %vm30_vm0, %v25_v7, 0.0  ;;  %v28_v12 = vld [vmem:[%s1009_s0 + $0x30] sm:$0xff]  ;;  %628 = vrcp.f32 %v672_v14  ;;  %v751_v36 = vld [vmem:[%s1009_s0 + $0x38] sm:$0xff]  ;;  %s674_s27 = smov 512  }
   0x7   :  { %v34_v11 = vsel %vm30_vm0, %v23_v8, 0.0  ;;  %v49_v13 = vsel %vm30_vm0, %v28_v12, 0.0  ;;  %v52_v41 = vsel %vm30_vm0, %v751_v36, 0.0  ;;  %v576_v58 = vld [vmem:[%s1012_s3 + $0x60] sm:$0xf]  ;;  %s675_s28 = smov 32  }
   0x8   :  { %v620_v59 = vld [vmem:[%s1012_s3 + $0x6c] sm:$0xf0]  ;;  %v618_v60 = vld [vmem:[%s1012_s3 + $0x64] sm:$0xf]  ;;  %v578_v62 = vld [vmem:[%s1012_s3 + $0x70] sm:$0xf0] }
   0x9   :  { %v577_v61 = vor.u32 %v620_v59, %v576_v58  ;;  %v584_v63 = vld [vmem:[%s1012_s3 + $0x68] sm:$0xf]  ;;  %v619_v3 = vld [vmem:[%s1012_s3 + $0x6c] sm:$0xf]  ;;  %v586_v4 = vld [vmem:[%s1012_s3 + $0x78] sm:$0xf0] }
   0xa   :  { %v589_v5 = vor.u32 %v619_v3, %v586_v4 }
   0xb   :  { %47 = vadd.xlane.f32.xlu2 %v46_v9  ;;  %41 = vadd.xlane.f32.xlu1 %v40_v10  ;;  %v562_v10 = vld [vmem:[%s1012_s3 + $0x50] sm:$0xf0] }
   0xc   :  { %35 = vadd.xlane.f32.xlu0 %v34_v11  ;;  %v629_v15 = vpop.eup %628  ;;  %364 = vmatpush.bf16.msra.mxu0 %v577_v61  ;;  %v568_v11 = vld [vmem:[%s1012_s3 + $0x48] sm:$0xf] }
   0xd   :  { %v56_v16 = vmul.f32 64.0, %v629_v15  ;;  %vm60_vm1 = vweird.f32 %v629_v15  ;;  %451 = vmatpush.bf16.msra.mxu3 %v589_v5 }
   0xf   :  { %v57_v17 = vsub.f32 1.0, %v56_v16  ;;  %v570_v16 = vld [vmem:[%s1012_s3 + $0x58] sm:$0xf0] }
  0x11   :  { %v58_v18 = vmul.f32 %v629_v15, %v57_v17 }
  0x13   :  { %50 = vadd.xlane.f32.xlu2 %v49_v13  ;;  %v59_v19 = vadd.f32 %v629_v15, %v58_v18  ;;  %v544_v18 = vld [vmem:[%s1012_s3 + $0x20] sm:$0xf] }
  0x15   :  { %v734_v20 = vsel %vm60_vm1, %v629_v15, %v59_v19  ;;  %v615_v15 = vld [vmem:[%s1012_s3 + $0x4c] sm:$0xf]  ;;  %v612_v19 = vld [vmem:[%s1012_s3 + $0x2c] sm:$0xf0] }
  0x16   :  { %v573_v17 = vor.u32 %v615_v15, %v570_v16 }
  0x18   :  { %452 = vmatpush.bf16.msra.mxu3 %v573_v17 }
  0x76   :  { %v45_v21 = vpop.xlane.xlu2 %44  ;;  %v39_v22 = vpop.xlane.xlu1 %38 }
  0x77   :  { %v33_v23 = vpop.xlane.xlu0 %32  ;;  %v66_v32 = vmul.f32 %v734_v20, %v45_v21  ;;  %v64_v33 = vmul.f32 %v734_v20, %v39_v22  ;;  %v610_v21 = vld [vmem:[%s1012_s3 + $0x24] sm:$0xf]  ;;  %v545_v22 = vor.u32 %v612_v19, %v544_v18 }
  0x78   :  { %v62_v24 = vmul.f32 %v734_v20, %v33_v23  ;;  %v546_v23 = vld [vmem:[%s1012_s3 + $0x30] sm:$0xf0] }
  0x79   :  { %v757_v39 = vsub.f32 %v26_v0, %v66_v32  ;;  %v759_v40 = vsub.f32 %v24_v1, %v64_v33  ;;  %v621_v0 = vld [vmem:[%s1012_s3 + $0x74] sm:$0xf0]  ;;  %v581_v1 = vor.u32 %v618_v60, %v578_v62 }
  0x7a   :  { %v737_v25 = vsub.f32 %v22_v2, %v62_v24  ;;  %v585_v2 = vor.u32 %v621_v0, %v584_v63  ;;  %v552_v24 = vld [vmem:[%s1012_s3 + $0x28] sm:$0xf] }
  0x7b   :  { %v82_v48 = vmul.f32 %v757_v39, %v757_v39  ;;  %v80_v49 = vmul.f32 %v759_v40, %v759_v40  ;;  %393 = vmatpush.bf16.msra.mxu1 %v581_v1 }
  0x7c   :  { %v78_v26 = vmul.f32 %v737_v25, %v737_v25  ;;  %422 = vmatpush.bf16.msra.mxu2 %v585_v2 }
  0x7d   :  { %v98_v53 = vsel %vm30_vm0, %v82_v48, 0.0  ;;  %v92_v54 = vsel %vm30_vm0, %v80_v49, 0.0  ;;  %v607_v48 = vld [vmem:[%s1012_s3 + $0xc] sm:$0xf]  ;;  %v538_v49 = vld [vmem:[%s1012_s3 + $0x18] sm:$0xf0] }
  0x7e   :  { %v48_v27 = vpop.xlane.xlu2 %47  ;;  %v42_v28 = vpop.xlane.xlu1 %41  ;;  %v86_v29 = vsel %vm30_vm0, %v78_v26, 0.0  ;;  %v613_v26 = vld [vmem:[%s1012_s3 + $0x34] sm:$0xf0] }
  0x7f   :  { %v65_v30 = vmul.f32 %v734_v20, %v42_v28  ;;  %87 = vadd.xlane.f32.xlu0 %v86_v29  ;;  %v36_v31 = vpop.xlane.xlu0 %35  ;;  %v67_v47 = vmul.f32 %v734_v20, %v48_v27  ;;  %v549_v28 = vor.u32 %v610_v21, %v546_v23  ;;  %v553_v29 = vor.u32 %v613_v26, %v552_v24 }
  0x80   :  { %v63_v34 = vmul.f32 %v734_v20, %v36_v31  ;;  %v554_v31 = vld [vmem:[%s1012_s3 + $0x38] sm:$0xf0] }
  0x81   :  { %v746_v35 = vsub.f32 %v25_v7, %v65_v30  ;;  %v777_v52 = vsub.f32 %v27_v6, %v67_v47  ;;  %v560_v6 = vld [vmem:[%s1012_s3 + $0x40] sm:$0xf]  ;;  %v616_v7 = vld [vmem:[%s1012_s3 + $0x4c] sm:$0xf0]  ;;  %v611_v30 = vld [vmem:[%s1012_s3 + $0x2c] sm:$0xf] }
  0x82   :  { %v753_v37 = vsub.f32 %v23_v8, %v63_v34  ;;  %v614_v8 = vld [vmem:[%s1012_s3 + $0x44] sm:$0xf]  ;;  %v561_v9 = vor.u32 %v616_v7, %v560_v6  ;;  %v557_v33 = vor.u32 %v611_v30, %v554_v31  ;;  %v528_v34 = vld [vmem:[%s1012_s3] sm:$0xf]  ;;  %v609_v47 = vld [vmem:[%s1012_s3 + $0x14] sm:$0xf0] }
  0x83   :  { %v81_v38 = vmul.f32 %v746_v35, %v746_v35  ;;  %v83_v56 = vmul.f32 %v777_v52, %v777_v52  ;;  %v565_v13 = vor.u32 %v614_v8, %v562_v10  ;;  %v909_v30 = vld [vmem:[%s1010_s1] ss:$0 sm:$0xff] }
  0x84   :  { %v79_v42 = vmul.f32 %v753_v37, %v753_v37  ;;  %365 = vmatpush.bf16.msra.mxu0 %v561_v9  ;;  %453 = vmatpush.bf16.msra.mxu3 %v557_v33 }
  0x85   :  { %v95_v43 = vsel %vm30_vm0, %v81_v38, 0.0  ;;  %v101_v57 = vsel %vm30_vm0, %v83_v56, 0.0  ;;  %394 = vmatpush.bf16.msra.mxu1 %v565_v13  ;;  %v608_v38 = vld [vmem:[%s1012_s3 + $0xc] sm:$0xf0] }
  0x86   :  { %v51_v44 = vpop.xlane.xlu2 %50  ;;  %96 = vadd.xlane.f32.xlu2 %v95_v43  ;;  %v89_v45 = vsel %vm30_vm0, %v79_v42, 0.0  ;;  %v529_v43 = vor.u32 %v608_v38, %v528_v34 }
  0x87   :  { %v68_v46 = vmul.f32 %v734_v20, %v51_v44  ;;  %53 = vadd.xlane.f32.xlu0 %v52_v41  ;;  %90 = vadd.xlane.f32.xlu1 %v89_v45  ;;  %v606_v41 = vld [vmem:[%s1012_s3 + $0x4] sm:$0xf]  ;;  %v530_v44 = vld [vmem:[%s1012_s3 + $0x10] sm:$0xf0]  ;;  %v536_v45 = vld [vmem:[%s1012_s3 + $0x8] sm:$0xf] }
  0x88   :  { %366 = vmatpush.bf16.msra.mxu0 %v545_v22 }
  0x89   :  { %v773_v50 = vsub.f32 %v28_v12, %v68_v46  ;;  %v617_v12 = vld [vmem:[%s1012_s3 + $0x54] sm:$0xf0]  ;;  %395 = vmatpush.bf16.msra.mxu1 %v549_v28  ;;  %v533_v46 = vor.u32 %v606_v41, %v530_v44 }
  0x8a   :  { %v569_v14 = vor.u32 %v617_v12, %v568_v11 }
  0x8b   :  { %v84_v51 = vmul.f32 %v773_v50, %v773_v50 }
  0x8c   :  { %423 = vmatpush.bf16.msra.mxu2 %v569_v14  ;;  %367 = vmatpush.bf16.msra.mxu0 %v529_v43 }
  0x8d   :  { %v104_v55 = vsel %vm30_vm0, %v84_v51, 0.0  ;;  %v537_v51 = vor.u32 %v609_v47, %v536_v45  ;;  %396 = vmatpush.bf16.msra.mxu1 %v533_v46 }
  0x8e   :  { %105 = vadd.xlane.f32.xlu2 %v104_v55 }
  0x8f   :  { %99 = vadd.xlane.f32.xlu0 %v98_v53  ;;  %93 = vadd.xlane.f32.xlu1 %v92_v54  ;;  %v541_v53 = vor.u32 %v607_v48, %v538_v49 }
  0x90   :  { %424 = vmatpush.bf16.msra.mxu2 %v553_v29 }
  0x91   :  { %454 = vmatpush.bf16.msra.mxu3 %v541_v53 }
  0x94   :  { %425 = vmatpush.bf16.msra.mxu2 %v537_v51 }
  0x97   :  { %102 = vadd.xlane.f32.xlu1 %v101_v57 }
  0xf2   :  { %v88_v27 = vpop.xlane.xlu0 %87 }
  0xf3   :  { %v110_v32 = vmul.f32 %v88_v27, %v734_v20 }
  0xf5   :  { %v118_v42 = vadd.f32 1e-05, %v110_v32 }
  0xf7   :  { %630 = vrsqrt.f32 %v118_v42  ;;  %vm132_vm3 = vweird.f32 %v118_v42 }
  0xf9   :  { %v97_v54 = vpop.xlane.xlu2 %96 }
  0xfa   :  { %v113_v55 = vmul.f32 %v97_v54, %v734_v20  ;;  %v91_v56 = vpop.xlane.xlu1 %90  ;;  %v54_v57 = vpop.xlane.xlu0 %53 }
  0xfb   :  { %v111_v58 = vmul.f32 %v91_v56, %v734_v20  ;;  %v69_v59 = vmul.f32 %v734_v20, %v54_v57 }
  0xfc   :  { %v885_v60 = vadd.f32 1e-05, %v113_v55 }
  0xfd   :  { %v631_v61 = vpop.eup %630  ;;  %v119_v62 = vadd.f32 1e-05, %v111_v58  ;;  %v888_v63 = vsub.f32 %v751_v36, %v69_v59 }
  0xfe   :  { %v127_v0 = vmul.f32 %v631_v61, %v118_v42  ;;  %632 = vrsqrt.f32 %v885_v60  ;;  %vm133_vm2 = vweird.f32 %v631_v61  ;;  %vm162_vm10 = vweird.f32 %v885_v60 }
  0xff   :  { %634 = vrsqrt.f32 %v119_v62  ;;  %v85_v1 = vmul.f32 %v888_v63, %v888_v63  ;;  %vm134_vm4 = vmor %vm132_vm3, %vm133_vm2  ;;  %vm142_vm5 = vweird.f32 %v119_v62 }
 0x100   :  { %v128_v2 = vmul.f32 %v631_v61, %v127_v0 }
 0x101   :  { %v107_v3 = vsel %vm30_vm0, %v85_v1, 0.0 }
 0x102   :  { %v129_v4 = vmul.f32 0.5, %v128_v2  ;;  %v94_v5 = vpop.xlane.xlu1 %93  ;;  %108 = vadd.xlane.f32.xlu0 %v107_v3  ;;  %v100_v7 = vpop.xlane.xlu0 %99 }
 0x103   :  { %v112_v6 = vmul.f32 %v94_v5, %v734_v20  ;;  %v114_v12 = vmul.f32 %v100_v7, %v734_v20 }
 0x104   :  { %v895_v8 = vpop.eup %632  ;;  %v130_v36 = vsub.f32 1.5, %v129_v4 }
 0x105   :  { %v635_v9 = vpop.eup %634  ;;  %v120_v10 = vadd.f32 1e-05, %v112_v6  ;;  %v157_v14 = vmul.f32 %v895_v8, %v885_v60  ;;  %v900_v17 = vadd.f32 1e-05, %v114_v12  ;;  %vm163_vm11 = vweird.f32 %v895_v8 }
 0x106   :  { %v137_v11 = vmul.f32 %v635_v9, %v119_v62  ;;  %v131_v13 = vmul.f32 %v631_v61, %v130_v36  ;;  %vm143_vm6 = vweird.f32 %v635_v9  ;;  %vm164_vm13 = vmor %vm162_vm10, %vm163_vm11 }
 0x107   :  { %636 = vrsqrt.f32 %v120_v10  ;;  %v158_v21 = vmul.f32 %v895_v8, %v157_v14  ;;  %vm144_vm7 = vmor %vm142_vm5, %vm143_vm6  ;;  %vm152_vm8 = vweird.f32 %v120_v10  ;;  %vm172_vm1 = vweird.f32 %v900_v17 }
 0x108   :  { %v138_v15 = vmul.f32 %v635_v9, %v137_v11  ;;  %v135_v19 = vsel %vm134_vm4, %v631_v61, %v131_v13  ;;  %638 = vrsqrt.f32 %v900_v17 }
 0x109   :  { %v206_v27 = vmul.f32 %v135_v19, %v737_v25  ;;  %v159_v31 = vmul.f32 0.5, %v158_v21  ;;  %v916_v25 = vld [vmem:[%s1011_s2] ss:$0 sm:$0xff] }
 0x10a   :  { %v139_v16 = vmul.f32 0.5, %v138_v15  ;;  %v103_v18 = vpop.xlane.xlu1 %102 }
 0x10b   :  { %v115_v22 = vmul.f32 %v103_v18, %v734_v20  ;;  %v218_v41 = vmul.f32 %v909_v30, %v206_v27  ;;  %v160_v42 = vsub.f32 1.5, %v159_v31 }
 0x10c   :  { %v140_v23 = vsub.f32 1.5, %v139_v16 }
 0x10d   :  { %v637_v24 = vpop.eup %636  ;;  %v123_v26 = vadd.f32 1e-05, %v115_v22  ;;  %v230_v48 = vadd.f32 %v916_v25, %v218_v41  ;;  %v161_v49 = vmul.f32 %v895_v8, %v160_v42 }
 0x10e   :  { %v141_v28 = vmul.f32 %v635_v9, %v140_v23  ;;  %v147_v29 = vmul.f32 %v637_v24, %v120_v10  ;;  %vm153_vm9 = vweird.f32 %v637_v24  ;;  %v639_v44 = vpop.eup %638 }
 0x10f   :  { %640 = vrsqrt.f32 %v123_v26  ;;  %vm154_vm12 = vmor %vm152_vm8, %vm153_vm9  ;;  %v167_v51 = vmul.f32 %v639_v44, %v900_v17  ;;  %v165_v57 = vsel %vm164_vm13, %v895_v8, %v161_v49  ;;  %vm182_vm14 = vweird.f32 %v123_v26 }
 0x110   :  { %v145_v32 = vsel %vm144_vm7, %v635_v9, %v141_v28  ;;  %v148_v33 = vmul.f32 %v637_v24, %v147_v29  ;;  %v209_v61 = vmul.f32 %v165_v57, %v746_v35  ;;  %vm173_vm2 = vweird.f32 %v639_v44 }
 0x111   :  { %v207_v34 = vmul.f32 %v145_v32, %v753_v37  ;;  %v168_v58 = vmul.f32 %v639_v44, %v167_v51  ;;  %vm174_vm4 = vmor %vm172_vm1, %vm173_vm2 }
 0x112   :  { %v149_v38 = vmul.f32 0.5, %v148_v33  ;;  %v221_v2 = vmul.f32 %v909_v30, %v209_v61 }
 0x113   :  { %v219_v43 = vmul.f32 %v909_v30, %v207_v34  ;;  %v169_v62 = vmul.f32 0.5, %v168_v58 }
 0x114   :  { %v150_v45 = vsub.f32 1.5, %v149_v38 }
 0x115   :  { %v231_v37 = vadd.f32 %v916_v25, %v219_v43  ;;  %v641_v46 = vpop.eup %640  ;;  %v170_v3 = vsub.f32 1.5, %v169_v62 }
 0x116   :  { %v151_v47 = vmul.f32 %v637_v24, %v150_v45  ;;  %v177_v53 = vmul.f32 %v641_v46, %v123_v26  ;;  %vm183_vm15 = vweird.f32 %v641_v46 }
 0x117   :  { %v238_v54 = vpack.c.bf16 %v231_v37, %v230_v48  ;;  %vm184_vm3 = vmor %vm182_vm14, %vm183_vm15  ;;  %v171_v6 = vmul.f32 %v639_v44, %v170_v3  ;;  %v258_v37 = vld [vmem:[%s1013_s4] sm:$0xf]  ;;  %s673_s4 = smov [#allocation2]  }
 0x118   :  { %v155_v55 = vsel %vm154_vm12, %v637_v24, %v151_v47  ;;  %v178_v56 = vmul.f32 %v641_v46, %v177_v53  ;;  %v972_v49 = vperm.slane %v258_v37, 2  ;;  %v974_v51 = vperm.slane %v258_v37, 3  ;;  %s512_s23 = sshll.u32 %s673_s4, 4  ;;  %s513_s23 = int_to_ptr.vmem [resolvable:$true] %s512_s23 }
 0x119   :  { %590 = vmatmul.msk.bf16.vlgmr.msra.gmra.mxu0 %vm30_vm0, %v238_v54  ;;  %594 = vmatmul.msk.bf16.vlgmr.msra.gmra.mxu1 %vm30_vm0, %v238_v54  ;;  %v208_v59 = vmul.f32 %v155_v55, %v759_v40  ;;  %v233_v40 = vadd.f32 %v916_v25, %v221_v2  ;;  %v175_v8 = vsel %vm174_vm4, %v639_v44, %v171_v6 }
 0x11a   :  { %598 = vmatmul.msk.bf16.vlgmr.msra.gmra.mxu2 %vm30_vm0, %v238_v54  ;;  %602 = vmatmul.msk.bf16.vlgmr.msra.gmra.mxu3 %vm30_vm0, %v238_v54  ;;  %v179_v60 = vmul.f32 0.5, %v178_v56  ;;  %v210_v9 = vmul.f32 %v175_v8, %v757_v39 }
 0x11b   :  { %v220_v0 = vmul.f32 %v909_v30, %v208_v59 }
 0x11c   :  { %v180_v1 = vsub.f32 1.5, %v179_v60  ;;  %v222_v11 = vmul.f32 %v909_v30, %v210_v9 }
 0x11d   :  { %v232_v4 = vadd.f32 %v916_v25, %v220_v0 }
 0x11e   :  { %v181_v5 = vmul.f32 %v641_v46, %v180_v1  ;;  %v234_v13 = vadd.f32 %v916_v25, %v222_v11 }
 0x11f   :  { %v239_v35 = vpack.c.bf16 %v233_v40, %v232_v4 }
 0x120   :  { %v185_v7 = vsel %vm184_vm3, %v641_v46, %v181_v5 }
 0x121   :  { %v211_v36 = vmul.f32 %v185_v7, %v777_v52  ;;  %v106_v52 = vpop.xlane.xlu2 %105 }
 0x122   :  { %v116_v39 = vmul.f32 %v106_v52, %v734_v20 }
 0x123   :  { %v223_v10 = vmul.f32 %v909_v30, %v211_v36 }
 0x124   :  { %v124_v15 = vadd.f32 1e-05, %v116_v39 }
 0x125   :  { %v235_v12 = vadd.f32 %v916_v25, %v223_v10 }
 0x126   :  { %642 = vrsqrt.f32 %v124_v15  ;;  %vm192_vm5 = vweird.f32 %v124_v15 }
 0x127   :  { %v240_v14 = vpack.c.bf16 %v235_v12, %v234_v13 }
 0x129   :  { %591 = vmatmul.msk.bf16.gmra.mxu0 %vm30_vm0, %v239_v35  ;;  %595 = vmatmul.msk.bf16.gmra.mxu1 %vm30_vm0, %v239_v35 }
 0x12a   :  { %599 = vmatmul.msk.bf16.gmra.mxu2 %vm30_vm0, %v239_v35  ;;  %603 = vmatmul.msk.bf16.gmra.mxu3 %vm30_vm0, %v239_v35 }
 0x12c   :  { %v643_v16 = vpop.eup %642 }
 0x12d   :  { %v187_v17 = vmul.f32 %v643_v16, %v124_v15  ;;  %vm193_vm6 = vweird.f32 %v643_v16 }
 0x12e   :  { %vm194_vm7 = vmor %vm192_vm5, %vm193_vm6 }
 0x12f   :  { %v188_v18 = vmul.f32 %v643_v16, %v187_v17 }
 0x131   :  { %v189_v23 = vmul.f32 0.5, %v188_v18 }
 0x133   :  { %v190_v24 = vsub.f32 1.5, %v189_v23 }
 0x135   :  { %v191_v27 = vmul.f32 %v643_v16, %v190_v24 }
 0x137   :  { %v195_v31 = vsel %vm194_vm7, %v643_v16, %v191_v27 }
 0x138   :  { %v212_v34 = vmul.f32 %v195_v31, %v773_v50  ;;  %v964_v50 = vperm.slane %v258_v37, 0 }
 0x139   :  { %592 = vmatmul.msk.bf16.gmra.mxu0 %vm30_vm0, %v240_v14  ;;  %596 = vmatmul.msk.bf16.gmra.mxu1 %vm30_vm0, %v240_v14 }
 0x13a   :  { %600 = vmatmul.msk.bf16.gmra.mxu2 %vm30_vm0, %v240_v14  ;;  %604 = vmatmul.msk.bf16.gmra.mxu3 %vm30_vm0, %v240_v14  ;;  %v224_v42 = vmul.f32 %v909_v30, %v212_v34 }
 0x13c   :  { %v236_v44 = vadd.f32 %v916_v25, %v224_v42 }
 0x175   :  { %v109_v19 = vpop.xlane.xlu0 %108 }
 0x176   :  { %v117_v21 = vmul.f32 %v109_v19, %v734_v20 }
 0x178   :  { %v125_v22 = vadd.f32 1e-05, %v117_v21 }
 0x17a   :  { %644 = vrsqrt.f32 %v125_v22  ;;  %vm202_vm9 = vweird.f32 %v125_v22 }
 0x180   :  { %v645_v26 = vpop.eup %644 }
 0x181   :  { %v197_v28 = vmul.f32 %v645_v26, %v125_v22  ;;  %vm203_vm8 = vweird.f32 %v645_v26 }
 0x182   :  { %vm204_vm10 = vmor %vm202_vm9, %vm203_vm8 }
 0x183   :  { %v198_v29 = vmul.f32 %v645_v26, %v197_v28 }
 0x185   :  { %v199_v32 = vmul.f32 0.5, %v198_v29 }
 0x187   :  { %v200_v33 = vsub.f32 1.5, %v199_v32 }
 0x189   :  { %v201_v38 = vmul.f32 %v645_v26, %v200_v33 }
 0x18b   :  { %v205_v20 = vsel %vm204_vm10, %v645_v26, %v201_v38 }
 0x18c   :  { %v213_v41 = vmul.f32 %v205_v20, %v888_v63  ;;  %v966_v63 = vperm.slane %v258_v37, 1 }
 0x18e   :  { %v225_v43 = vmul.f32 %v909_v30, %v213_v41 }
 0x190   :  { %v237_v45 = vadd.f32 %v916_v25, %v225_v43 }
 0x192   :  { %v241_v46 = vpack.c.bf16 %v237_v45, %v236_v44 }
 0x194   :  { %593 = vmatmul.msk.bf16.gmra.mxu0 %vm30_vm0, %v241_v46  ;;  %597 = vmatmul.msk.bf16.gmra.mxu1 %vm30_vm0, %v241_v46 }
 0x195   :  { %601 = vmatmul.msk.bf16.gmra.mxu2 %vm30_vm0, %v241_v46  ;;  %605 = vmatmul.msk.bf16.gmra.mxu3 %vm30_vm0, %v241_v46 }
 0x196   :  { %v369_v30 = vpop.f32.mrf.mxu0  ;;  %v398_v47 = vpop.f32.mrf.mxu1 }
 0x197   :  { %v370_v25 = vadd.f32 %v369_v30, %v964_v50  ;;  %v399_v48 = vadd.f32 %v398_v47, %v966_v63 }
 0x199   :  { %476 = vst [vmem:[#allocation2] sm:$0xff] %v370_v25 }
 0x19a   :  { %477 = vst [vmem:[#allocation2 + $0x8] sm:$0xff] %v399_v48 }
 0x19d   :  { %v427_v53 = vpop.f32.mrf.mxu2  ;;  %v456_v54 = vpop.f32.mrf.mxu3 }
 0x19e   :  { %v428_v55 = vadd.f32 %v427_v53, %v972_v49  ;;  %v457_v56 = vadd.f32 %v456_v54, %v974_v51  ;;  %v371_v57 = vpop.f32.mrf.mxu0  ;;  %v400_v58 = vpop.f32.mrf.mxu1 }
 0x19f   :  { %v372_v59 = vadd.f32 %v371_v57, %v964_v50  ;;  %v401_v60 = vadd.f32 %v400_v58, %v966_v63 }
 0x1a0   :  { %478 = vst [vmem:[#allocation2 + $0x10] sm:$0xff] %v428_v55 }
 0x1a1   :  { %479 = vst [vmem:[#allocation2 + $0x18] sm:$0xff] %v457_v56 }
 0x1a2   :  { %480 = vst [vmem:[#allocation2 + $0x20] sm:$0xff] %v372_v59 }
 0x1a3   :  { %481 = vst [vmem:[#allocation2 + $0x28] sm:$0xff] %v401_v60 }
 0x1a5   :  { %v429_v61 = vpop.f32.mrf.mxu2  ;;  %v458_v62 = vpop.f32.mrf.mxu3 }
 0x1a6   :  { %v430_v0 = vadd.f32 %v429_v61, %v972_v49  ;;  %v459_v1 = vadd.f32 %v458_v62, %v974_v51  ;;  %v374_v2 = vpop.f32.mrf.mxu0  ;;  %v403_v3 = vpop.f32.mrf.mxu1 }
 0x1a7   :  { %v375_v4 = vadd.f32 %v374_v2, %v964_v50  ;;  %v404_v5 = vadd.f32 %v403_v3, %v966_v63 }
 0x1a8   :  { %482 = vst [vmem:[#allocation2 + $0x30] sm:$0xff] %v430_v0 }
 0x1a9   :  { %483 = vst [vmem:[#allocation2 + $0x38] sm:$0xff] %v459_v1 }
 0x1aa   :  { %484 = vst [vmem:[#allocation2 + $0x40] sm:$0xff] %v375_v4 }
 0x1ab   :  { %485 = vst [vmem:[#allocation2 + $0x48] sm:$0xff] %v404_v5 }
 0x1ad   :  { %v432_v40 = vpop.f32.mrf.mxu2  ;;  %v461_v6 = vpop.f32.mrf.mxu3 }
 0x1ae   :  { %v433_v35 = vadd.f32 %v432_v40, %v972_v49  ;;  %v462_v7 = vadd.f32 %v461_v6, %v974_v51  ;;  %v376_v8 = vpop.f32.mrf.mxu0  ;;  %v405_v36 = vpop.f32.mrf.mxu1 }
 0x1af   :  { %v377_v9 = vadd.f32 %v376_v8, %v964_v50  ;;  %v406_v10 = vadd.f32 %v405_v36, %v966_v63 }
 0x1b0   :  { %486 = vst [vmem:[#allocation2 + $0x50] sm:$0xff] %v433_v35 }
 0x1b1   :  { %487 = vst [vmem:[#allocation2 + $0x58] sm:$0xff] %v462_v7 }
 0x1b2   :  { %488 = vst [vmem:[#allocation2 + $0x60] sm:$0xff] %v377_v9 }
 0x1b3   :  { %489 = vst [vmem:[#allocation2 + $0x68] sm:$0xff] %v406_v10 }
 0x1b5   :  { %v434_v11 = vpop.f32.mrf.mxu2  ;;  %v463_v12 = vpop.f32.mrf.mxu3 }
 0x1b6   :  { %v435_v13 = vadd.f32 %v434_v11, %v972_v49  ;;  %v464_v14 = vadd.f32 %v463_v12, %v974_v51  ;;  %v379_v52 = vpop.f32.mrf.mxu0  ;;  %v408_v39 = vpop.f32.mrf.mxu1 }
 0x1b7   :  { %v380_v15 = vadd.f32 %v379_v52, %v964_v50  ;;  %v409_v16 = vadd.f32 %v408_v39, %v966_v63 }
 0x1b8   :  { %490 = vst [vmem:[#allocation2 + $0x70] sm:$0xff] %v435_v13 }
 0x1b9   :  { %491 = vst [vmem:[#allocation2 + $0x78] sm:$0xff] %v464_v14 }
 0x1ba   :  { %492 = vst [vmem:[#allocation2 + $0x80] sm:$0xff] %v380_v15 }
 0x1bb   :  { %493 = vst [vmem:[#allocation2 + $0x88] sm:$0xff] %v409_v16 }
 0x1bd   :  { %v437_v17 = vpop.f32.mrf.mxu2  ;;  %v466_v18 = vpop.f32.mrf.mxu3 }
 0x1be   :  { %v438_v19 = vadd.f32 %v437_v17, %v972_v49  ;;  %v467_v21 = vadd.f32 %v466_v18, %v974_v51  ;;  %v381_v22 = vpop.f32.mrf.mxu0  ;;  %v410_v23 = vpop.f32.mrf.mxu1 }
 0x1bf   :  { %v382_v24 = vadd.f32 %v381_v22, %v964_v50  ;;  %v411_v26 = vadd.f32 %v410_v23, %v966_v63 }
 0x1c0   :  { %494 = vst [vmem:[#allocation2 + $0x90] sm:$0xff] %v438_v19 }
 0x1c1   :  { %495 = vst [vmem:[#allocation2 + $0x98] sm:$0xff] %v467_v21 }
 0x1c2   :  { %496 = vst [vmem:[#allocation2 + $0xa0] sm:$0xff] %v382_v24 }
 0x1c3   :  { %497 = vst [vmem:[#allocation2 + $0xa8] sm:$0xff] %v411_v26 }
 0x1c5   :  { %v439_v27 = vpop.f32.mrf.mxu2  ;;  %v468_v28 = vpop.f32.mrf.mxu3 }
 0x1c6   :  { %v440_v29 = vadd.f32 %v439_v27, %v972_v49  ;;  %v469_v31 = vadd.f32 %v468_v28, %v974_v51 }
 0x1c8   :  { %498 = vst [vmem:[#allocation2 + $0xb0] sm:$0xff] %v440_v29 }
 0x1c9   :  { %499 = vst [vmem:[#allocation2 + $0xb8] sm:$0xff] %v469_v31 }
 0x211   :  { %v384_v32 = vpop.f32.mrf.mxu0  ;;  %v413_v33 = vpop.f32.mrf.mxu1 }
 0x212   :  { %v385_v34 = vadd.f32 %v384_v32, %v964_v50  ;;  %v414_v38 = vadd.f32 %v413_v33, %v966_v63 }
 0x214   :  { %500 = vst [vmem:[#allocation2 + $0xc0] sm:$0xff] %v385_v34 }
 0x215   :  { %501 = vst [vmem:[#allocation2 + $0xc8] sm:$0xff] %v414_v38 }
 0x218   :  { %v442_v20 = vpop.f32.mrf.mxu2  ;;  %v471_v41 = vpop.f32.mrf.mxu3 }
 0x219   :  { %v443_v42 = vadd.f32 %v442_v20, %v972_v49  ;;  %v472_v43 = vadd.f32 %v471_v41, %v974_v51  ;;  %v386_v44 = vpop.f32.mrf.mxu0  ;;  %v415_v45 = vpop.f32.mrf.mxu1 }
 0x21a   :  { %v387_v37 = vadd.f32 %v386_v44, %v964_v50  ;;  %v416_v46 = vadd.f32 %v415_v45, %v966_v63 }
 0x21b   :  { %502 = vst [vmem:[#allocation2 + $0xd0] sm:$0xff] %v443_v42 }
 0x21c   :  { %503 = vst [vmem:[#allocation2 + $0xd8] sm:$0xff] %v472_v43 }
 0x21d   :  { %504 = vst [vmem:[#allocation2 + $0xe0] sm:$0xff] %v387_v37 }
 0x21e   :  { %505 = vst [vmem:[#allocation2 + $0xe8] sm:$0xff] %v416_v46 }
 0x220   :  { %v444_v30 = vpop.f32.mrf.mxu2  ;;  %v473_v47 = vpop.f32.mrf.mxu3 }
 0x221   :  { %v445_v25 = vadd.f32 %v444_v30, %v972_v49  ;;  %v474_v48 = vadd.f32 %v473_v47, %v974_v51 }
 0x223   :  { %506 = vst [vmem:[#allocation2 + $0xf0] sm:$0xff] %v445_v25 }
 0x224   :  { %507 = vst [vmem:[#allocation2 + $0xf8] sm:$0xff] %v474_v48 }
 0x225   :  { %520 = dma.vmem_to_hbm [thread:$0]  %s513_s23, 4096, %s515_s26, [#allocation3], %s674_s27, %s674_s27, %s675_s28  }
 0x226   :  { %670 = dma.done.wait [#allocation3], 4096  }
 0x227   :  { %671 = vsyncadd [#allocation3], 4294963200 }
 0x228   :  { %525 = vsyncpa [#allocation3], 1 }

</bundles_post_ra>
